<compile_context>
chip_gen: v7x
topology: tpu7x:2x2x1
jax: 0.10.0
libtpu: 0.0.40
codegen_flags: <defaults>
</compile_context>

<pallas_src>
import jax
import jax.numpy as jnp
import numpy as np
from jax import lax
from jax.experimental import pallas as pl
from jax.experimental.pallas import tpu as pltpu

# Module hyper-parameters (from the PyTorch source).
INPUT_DIM = 13
HIDDEN_DIM = 512
OUTPUT_DIM = 1
NUM_LAYERS = 1
D = 1        # unidirectional
B_PAD = 8    # f32 sublane tile


def rnn_kernel(x_ref, wih_ref, whh_hbm, bias_ref, fcw_ref, fcb_ref, out_ref,
               whh_vmem, dma_sem):
    """Whole forward pass in one kernel invocation.

    x_ref:    (T*B_PAD, I) bf16  time-major rows (row index = t*B_PAD + b)
    wih_ref:  (I, H)   bf16  (W_ih^T)
    whh_hbm:  (H, H)   bf16  (W_hh^T) — raw HBM ref, DMA'd manually
    bias_ref: (1, H)   f32   (b_ih + b_hh)
    fcw_ref:  (1, H)   f32   (fc.weight)
    fcb_ref:  (1, 1)   f32
    out_ref:  (B_PAD, OUTPUT_DIM) f32
    whh_vmem: (H, H)   bf16  VMEM scratch for W_hh^T
    dma_sem:  DMA semaphore
    """
    TB = x_ref.shape[0]
    T = TB // B_PAD

    # Kick off the only large DMA immediately; it overlaps with the input
    # projection + t=0 step below, neither of which needs W_hh.
    whh_cp = pltpu.make_async_copy(whh_hbm, whh_vmem, dma_sem)
    whh_cp.start()

    # Input projection + bias for ALL timesteps in one bf16 MXU pass
    # (M = T*B_PAD), hoisted off the serial recurrent chain.
    x_proj = (jnp.dot(x_ref[...], wih_ref[...],
                      preferred_element_type=jnp.float32)
              + bias_ref[...])                              # (T*B_PAD, H) f32

    # t = 0: h_0 == 0, so the recurrent term vanishes.  h is kept in bf16 so
    # no cast sits in front of the recurrent matmul on the serial chain.
    h = jnp.tanh(x_proj[0:B_PAD, :].astype(jnp.bfloat16))   # (B_PAD, H) bf16

    whh_cp.wait()
    w_hh = whh_vmem[...]   # read once; loop-invariant RHS for every step

    # Fully unrolled serial recurrence (T static and small).  Only the
    # unavoidable h @ W_hh^T dependency stays serialized; slices below are
    # sublane-tile aligned (offsets are multiples of 8).
    for t in range(1, T):
        rec = jnp.dot(h, w_hh, preferred_element_type=jnp.float32)  # (B_PAD,H) f32
        pre = x_proj[t * B_PAD:(t + 1) * B_PAD, :] + rec             # f32 add
        h = jnp.tanh(pre.astype(jnp.bfloat16))                       # bf16 tanh

    # Fused FC head on the last hidden state, on the VPU/XLU (N=1 would waste
    # the MXU and add a weight push + FIFO drain at the very tail).
    h32 = h.astype(jnp.float32)                                      # (B_PAD, H)
    y = jnp.sum(h32 * fcw_ref[...], axis=-1, keepdims=True) + fcb_ref[...]
    out_ref[...] = y.astype(out_ref.dtype)


def prepare_params(w_ih, w_hh, b_ih, b_hh, fc_w, fc_b):
    """One-time weight prep (outside jit): transposes + bf16 casts."""
    return dict(
        wih_t=jnp.asarray(w_ih, jnp.float32).T.astype(jnp.bfloat16),     # (I, H)
        whh_t=jnp.asarray(w_hh, jnp.float32).T.astype(jnp.bfloat16),     # (H, H)
        bias=(jnp.asarray(b_ih, jnp.float32)
              + jnp.asarray(b_hh, jnp.float32)).reshape(1, HIDDEN_DIM),  # (1, H)
        fcw=jnp.asarray(fc_w, jnp.float32).reshape(1, HIDDEN_DIM),       # (1, H)
        fcb=jnp.asarray(fc_b, jnp.float32).reshape(1, OUTPUT_DIM),       # (1, 1)
    )


@jax.jit
def rnn_model_forward(x, wih_t, whh_t, bias, fcw, fcb):
    """x: (B, T, I) batch_first float32.  Returns (B, OUTPUT_DIM) float32."""
    B, T, I = x.shape
    # Pad batch to the f32 sublane tile so every per-step slice in the kernel
    # is tile-aligned; the MXU pads M to >= 8 anyway, so the rows are free.
    x_pad = jnp.pad(x, ((0, B_PAD - B), (0, 0), (0, 0)))
    # Time-major, flattened to (T*B_PAD, I): row index = t*B_PAD + b.
    x_flat = (jnp.transpose(x_pad, (1, 0, 2))
              .reshape(T * B_PAD, I)
              .astype(jnp.bfloat16))

    vmem = pl.BlockSpec(memory_space=pltpu.MemorySpace.VMEM)
    out = pl.pallas_call(
        rnn_kernel,
        out_shape=jax.ShapeDtypeStruct((B_PAD, OUTPUT_DIM), jnp.float32),
        in_specs=[vmem,                                 # x_flat
                  vmem,                                 # W_ih^T
                  pl.BlockSpec(memory_space=pl.ANY),    # W_hh^T stays in HBM; manual DMA
                  vmem,                                 # bias
                  vmem,                                 # fc weight
                  vmem],                                # fc bias
        out_specs=vmem,
        scratch_shapes=[pltpu.VMEM((HIDDEN_DIM, HIDDEN_DIM), jnp.bfloat16),
                        pltpu.SemaphoreType.DMA],
    )(x_flat, wih_t, whh_t, bias, fcw, fcb)
    return out[:B]


def reference_forward(x, w_ih, w_hh, b_ih, b_hh, fc_w, fc_b):
    """Pure-JAX f32 reference matching torch.nn.RNN(batch_first=True) + Linear."""
    B = x.shape[0]
    h0 = jnp.zeros((B, HIDDEN_DIM), jnp.float32)

    def step(h, x_t):
        h_new = jnp.tanh(x_t @ w_ih.T + b_ih + h @ w_hh.T + b_hh)
        return h_new, h_new

    x_tm = jnp.transpose(x, (1, 0, 2))          # (T, B, I)
    h_last, _ = lax.scan(step, h0, x_tm)
    return h_last @ fc_w.T + fc_b


if __name__ == "__main__":
    B, T = 2, 8
    key = jax.random.PRNGKey(0)
    k_x, k1, k2, k3, k4, k5, k6 = jax.random.split(key, 7)

    # Deterministic init (same uniform range PyTorch uses: 1/sqrt(H)).
    bound = 1.0 / np.sqrt(HIDDEN_DIM)
    x = jax.random.normal(k_x, (B, T, INPUT_DIM), jnp.float32)
    w_ih = jax.random.uniform(k1, (HIDDEN_DIM, INPUT_DIM), jnp.float32, -bound, bound)
    w_hh = jax.random.uniform(k2, (HIDDEN_DIM, HIDDEN_DIM), jnp.float32, -bound, bound)
    b_ih = jax.random.uniform(k3, (HIDDEN_DIM,), jnp.float32, -bound, bound)
    b_hh = jax.random.uniform(k4, (HIDDEN_DIM,), jnp.float32, -bound, bound)
    fc_w = jax.random.uniform(k5, (OUTPUT_DIM, HIDDEN_DIM), jnp.float32, -bound, bound)
    fc_b = jax.random.uniform(k6, (OUTPUT_DIM,), jnp.float32, -bound, bound)

    params = prepare_params(w_ih, w_hh, b_ih, b_hh, fc_w, fc_b)
    out = rnn_model_forward(x, params["wih_t"], params["whh_t"], params["bias"],
                            params["fcw"], params["fcb"])
    out = jax.block_until_ready(out)

    ref = reference_forward(x, w_ih, w_hh, b_ih, b_hh, fc_w, fc_b)
    # Input projection, W_hh, h and the per-step tanh run in bf16 (with f32
    # accumulation), so compare against the f32 reference with loosened
    # tolerance.
    np.testing.assert_allclose(np.asarray(out), np.asarray(ref),
                               rtol=3e-2, atol=1.5e-2)

    print("KERNEL_OK")
</pallas_src>

<mosaic_0001>
module attributes {stable_mosaic.version = 11 : i64} {
  func.func @rnn_kernel(%arg0: memref<64x13xbf16, #tpu.memory_space<vmem>>, %arg1: memref<13x512xbf16, #tpu.memory_space<vmem>>, %arg2: memref<512x512xbf16, #tpu.memory_space<any>>, %arg3: memref<1x512xf32, #tpu.memory_space<vmem>>, %arg4: memref<1x512xf32, #tpu.memory_space<vmem>>, %arg5: memref<1x1xf32, #tpu.memory_space<vmem>>, %arg6: memref<8x1xf32, #tpu.memory_space<vmem>>, %arg7: memref<512x512xbf16, #tpu.memory_space<vmem>>, %arg8: memref<!tpu.dma_semaphore, #tpu.memory_space<semaphore_mem>>) attributes {dimension_semantics = [], scalar_prefetch = 0 : i64, scratch_operands = 2 : i64, tpu.core_type = #tpu.core_type<tc>} {
    tpu.enqueue_dma source(%arg2 : memref<512x512xbf16, #tpu.memory_space<any>>) target(%arg7 : memref<512x512xbf16, #tpu.memory_space<vmem>>) target_semaphore(%arg8 : memref<!tpu.dma_semaphore, #tpu.memory_space<semaphore_mem>>)
    %c0 = arith.constant 0 : index
    %c0_0 = arith.constant 0 : index
    %0 = vector.load %arg0[%c0, %c0_0] : memref<64x13xbf16, #tpu.memory_space<vmem>>, vector<64x13xbf16>
    %c0_1 = arith.constant 0 : index
    %c0_2 = arith.constant 0 : index
    %1 = vector.load %arg1[%c0_1, %c0_2] : memref<13x512xbf16, #tpu.memory_space<vmem>>, vector<13x512xbf16>
    %cst = arith.constant dense<0.000000e+00> : vector<64x512xf32>
    %2 = tpu.matmul %0, %1, %cst {dimension_numbers = #tpu.dot_dimension_numbers<[1], [0], [0], [1], [0, 0, 1, 1], [], []>} : vector<64x13xbf16>, vector<13x512xbf16>, vector<64x512xf32> -> vector<64x512xf32>
    %c0_3 = arith.constant 0 : index
    %c0_4 = arith.constant 0 : index
    %3 = vector.load %arg3[%c0_3, %c0_4] : memref<1x512xf32, #tpu.memory_space<vmem>>, vector<1x512xf32>
    %4 = vector.broadcast %3 : vector<1x512xf32> to vector<64x512xf32>
    %5 = arith.addf %2, %4 : vector<64x512xf32>
    %6 = vector.extract_strided_slice %5 {offsets = [0, 0], sizes = [8, 512], strides = [1, 1]} : vector<64x512xf32> to vector<8x512xf32>
    %7 = arith.truncf %6 : vector<8x512xf32> to vector<8x512xbf16>
    %8 = math.tanh %7 : vector<8x512xbf16>
    tpu.wait_dma2 semaphore(%arg8 : memref<!tpu.dma_semaphore, #tpu.memory_space<semaphore_mem>>) src(%arg2 : memref<512x512xbf16, #tpu.memory_space<any>>) dst(%arg7 : memref<512x512xbf16, #tpu.memory_space<vmem>>)
    %c0_5 = arith.constant 0 : index
    %c0_6 = arith.constant 0 : index
    %9 = vector.load %arg7[%c0_5, %c0_6] : memref<512x512xbf16, #tpu.memory_space<vmem>>, vector<512x512xbf16>
    %cst_7 = arith.constant dense<0.000000e+00> : vector<8x512xf32>
    %10 = tpu.matmul %8, %9, %cst_7 {dimension_numbers = #tpu.dot_dimension_numbers<[1], [0], [0], [1], [0, 0, 1, 1], [], []>} : vector<8x512xbf16>, vector<512x512xbf16>, vector<8x512xf32> -> vector<8x512xf32>
    %11 = vector.extract_strided_slice %5 {offsets = [8, 0], sizes = [8, 512], strides = [1, 1]} : vector<64x512xf32> to vector<8x512xf32>
    %12 = arith.addf %11, %10 : vector<8x512xf32>
    %13 = arith.truncf %12 : vector<8x512xf32> to vector<8x512xbf16>
    %14 = math.tanh %13 : vector<8x512xbf16>
    %cst_8 = arith.constant dense<0.000000e+00> : vector<8x512xf32>
    %15 = tpu.matmul %14, %9, %cst_8 {dimension_numbers = #tpu.dot_dimension_numbers<[1], [0], [0], [1], [0, 0, 1, 1], [], []>} : vector<8x512xbf16>, vector<512x512xbf16>, vector<8x512xf32> -> vector<8x512xf32>
    %16 = vector.extract_strided_slice %5 {offsets = [16, 0], sizes = [8, 512], strides = [1, 1]} : vector<64x512xf32> to vector<8x512xf32>
    %17 = arith.addf %16, %15 : vector<8x512xf32>
    %18 = arith.truncf %17 : vector<8x512xf32> to vector<8x512xbf16>
    %19 = math.tanh %18 : vector<8x512xbf16>
    %cst_9 = arith.constant dense<0.000000e+00> : vector<8x512xf32>
    %20 = tpu.matmul %19, %9, %cst_9 {dimension_numbers = #tpu.dot_dimension_numbers<[1], [0], [0], [1], [0, 0, 1, 1], [], []>} : vector<8x512xbf16>, vector<512x512xbf16>, vector<8x512xf32> -> vector<8x512xf32>
    %21 = vector.extract_strided_slice %5 {offsets = [24, 0], sizes = [8, 512], strides = [1, 1]} : vector<64x512xf32> to vector<8x512xf32>
    %22 = arith.addf %21, %20 : vector<8x512xf32>
    %23 = arith.truncf %22 : vector<8x512xf32> to vector<8x512xbf16>
    %24 = math.tanh %23 : vector<8x512xbf16>
    %cst_10 = arith.constant dense<0.000000e+00> : vector<8x512xf32>
    %25 = tpu.matmul %24, %9, %cst_10 {dimension_numbers = #tpu.dot_dimension_numbers<[1], [0], [0], [1], [0, 0, 1, 1], [], []>} : vector<8x512xbf16>, vector<512x512xbf16>, vector<8x512xf32> -> vector<8x512xf32>
    %26 = vector.extract_strided_slice %5 {offsets = [32, 0], sizes = [8, 512], strides = [1, 1]} : vector<64x512xf32> to vector<8x512xf32>
    %27 = arith.addf %26, %25 : vector<8x512xf32>
    %28 = arith.truncf %27 : vector<8x512xf32> to vector<8x512xbf16>
    %29 = math.tanh %28 : vector<8x512xbf16>
    %cst_11 = arith.constant dense<0.000000e+00> : vector<8x512xf32>
    %30 = tpu.matmul %29, %9, %cst_11 {dimension_numbers = #tpu.dot_dimension_numbers<[1], [0], [0], [1], [0, 0, 1, 1], [], []>} : vector<8x512xbf16>, vector<512x512xbf16>, vector<8x512xf32> -> vector<8x512xf32>
    %31 = vector.extract_strided_slice %5 {offsets = [40, 0], sizes = [8, 512], strides = [1, 1]} : vector<64x512xf32> to vector<8x512xf32>
    %32 = arith.addf %31, %30 : vector<8x512xf32>
    %33 = arith.truncf %32 : vector<8x512xf32> to vector<8x512xbf16>
    %34 = math.tanh %33 : vector<8x512xbf16>
    %cst_12 = arith.constant dense<0.000000e+00> : vector<8x512xf32>
    %35 = tpu.matmul %34, %9, %cst_12 {dimension_numbers = #tpu.dot_dimension_numbers<[1], [0], [0], [1], [0, 0, 1, 1], [], []>} : vector<8x512xbf16>, vector<512x512xbf16>, vector<8x512xf32> -> vector<8x512xf32>
    %36 = vector.extract_strided_slice %5 {offsets = [48, 0], sizes = [8, 512], strides = [1, 1]} : vector<64x512xf32> to vector<8x512xf32>
    %37 = arith.addf %36, %35 : vector<8x512xf32>
    %38 = arith.truncf %37 : vector<8x512xf32> to vector<8x512xbf16>
    %39 = math.tanh %38 : vector<8x512xbf16>
    %cst_13 = arith.constant dense<0.000000e+00> : vector<8x512xf32>
    %40 = tpu.matmul %39, %9, %cst_13 {dimension_numbers = #tpu.dot_dimension_numbers<[1], [0], [0], [1], [0, 0, 1, 1], [], []>} : vector<8x512xbf16>, vector<512x512xbf16>, vector<8x512xf32> -> vector<8x512xf32>
    %41 = vector.extract_strided_slice %5 {offsets = [56, 0], sizes = [8, 512], strides = [1, 1]} : vector<64x512xf32> to vector<8x512xf32>
    %42 = arith.addf %41, %40 : vector<8x512xf32>
    %43 = arith.truncf %42 : vector<8x512xf32> to vector<8x512xbf16>
    %44 = math.tanh %43 : vector<8x512xbf16>
    %45 = arith.extf %44 : vector<8x512xbf16> to vector<8x512xf32>
    %c0_14 = arith.constant 0 : index
    %c0_15 = arith.constant 0 : index
    %46 = vector.load %arg4[%c0_14, %c0_15] : memref<1x512xf32, #tpu.memory_space<vmem>>, vector<1x512xf32>
    %47 = vector.broadcast %46 : vector<1x512xf32> to vector<8x512xf32>
    %48 = arith.mulf %45, %47 : vector<8x512xf32>
    %cst_16 = arith.constant dense<0.000000e+00> : vector<8xf32>
    %49 = vector.multi_reduction <add>, %48, %cst_16 [1] : vector<8x512xf32> to vector<8xf32>
    %50 = vector.shape_cast %49 : vector<8xf32> to vector<8x1xf32>
    %c0_17 = arith.constant 0 : index
    %c0_18 = arith.constant 0 : index
    %51 = vector.load %arg5[%c0_17, %c0_18] : memref<1x1xf32, #tpu.memory_space<vmem>>, vector<1x1xf32>
    %52 = vector.broadcast %51 : vector<1x1xf32> to vector<8x1xf32>
    %53 = arith.addf %50, %52 : vector<8x1xf32>
    %c0_19 = arith.constant 0 : index
    %c0_20 = arith.constant 0 : index
    %54 = vector.load %arg6[%c0_19, %c0_20] : memref<8x1xf32, #tpu.memory_space<vmem>>, vector<8x1xf32>
    tpu.vector_store %arg6[%c0_19, %c0_20], %53 {strides = array<i32>} : memref<8x1xf32, #tpu.memory_space<vmem>>, vector<8x1xf32>,
    return
  }
}

</mosaic_0001>

<bundles_post_ra>
// kernel: rnn_model_forward.1
= control target key start
LH: loop header
LB: loop body
LE: loop exit
PB: predicated region body
PF: predicated region fallthrough
CT: control target
= control target key end

     0   :  { %s3699_s0 = inlined_call_operand.vmem [shape: bf16[64,13], index: 0, kind: input, shape index: {}]   ;;  %s3700_s1 = inlined_call_operand.vmem [shape: bf16[13,512], index: 1, kind: input, shape index: {}]   ;;  %s3701_s2 = inlined_call_operand.hbm [shape: bf16[512,512], index: 2, kind: input, shape index: {}]   ;;  %s3702_s3 = inlined_call_operand.vmem [shape: f32[1,512], index: 3, kind: input, shape index: {}]   ;;  %s3703_s4 = inlined_call_operand.vmem [shape: f32[1,512], index: 4, kind: input, shape index: {}]   ;;  %s3704_s5 = inlined_call_operand.<no memory space> [shape: f32[1,1], index: 5, kind: input, shape index: {}]   ;;  %s3705_s6 = inlined_call_operand.vmem [shape: f32[8,1], index: 6, kind: output, shape index: {}]  }
   0x1   :  { %v11_v0 = vstv %s3704_s5 }
   0x2   :  { %12 = vst [vmem:[#allocation4] sm:$0x1] %v11_v0 }
   0x3   :  { %s28_s23 = sld [smem:[#allocation0]]   ;;  %s2022_s24 = smov [#allocation2]   ;;  %v2024_v1 = vmov 0   ;;  %vm142_vm0 = vcmask 1045504   ;;  %vm143_vm1 = vcmask 1046528   ;;  %v2032_v2 = vmov 65535  }
   0x4   :  { %s36_s25 = sshll.u32 %s2022_s24, 4  ;;  %s2023_s26 = smov 512   ;;  %190 = vmatprep.mubr.bf16.mxu0 %v2024_v1  ;;  %263 = vmatprep.mubr.bf16.mxu1 %v2024_v1  ;;  %v144_v3 = vsel %vm142_vm0, 4294967295, %v2032_v2  ;;  %vm129_vm2 = vcmask 105472   ;;  %v73_v17 = vlaneseq  ;;  %s37_s25 = int_to_ptr.vmem [resolvable:$true] %s36_s25 }
   0x5   :  { %40 = sst [smem:[#allocation6]] %s2023_s26  ;;  %s2025_s27 = smov 4   ;;  %v145_v4 = vsel %vm143_vm1, %v144_v3, 0 }
   0x6   :  { %42 = sst [smem:[#allocation6 + $0x1]] %s2023_s26  ;;  %s2026_s28 = smov 64   ;;  %v2106_v18 = vshrl.u32 %v73_v17, 7 }
   0x7   :  { %44 = sst [smem:[#allocation6 + $0x2]] %s2025_s27  ;;  %s2027_s30 = smov 128  }
   0x8   :  { %46 = sst [smem:[#allocation6 + $0x3]] %s2026_s28  ;;  %s2028_s5 = smov 2   ;;  %v3709_v19 = vsub.s32 0, %v2106_v18  ;;  %v3707_v20 = vsub.s32 2, %v2106_v18  ;;  %v3708_v22 = vsub.s32 1, %v2106_v18  ;;  %v3706_v23 = vsub.s32 3, %v2106_v18 }
   0x9   :  { %s1731_s29 = sshll.u32 %s28_s23, 26  ;;  %48 = sst [smem:[#allocation6 + $0x4]] %s2027_s30 }
   0xa   :  { %s1732_s7 = sadd.s32 134217728, %s1731_s29  ;;  %50 = sst [smem:[#allocation6 + $0x5]] %s2028_s5 }
   0xb   :  { %s2029_s8 = smov 256   ;;  %54 = sst [smem:[#allocation6 + $0x7]] %s2026_s28 }
   0xc   :  { %52 = sst [smem:[#allocation6 + $0x6]] %s2029_s8  ;;  %s2030_s9 = smov [#allocation3]  }
   0xd   :  { %56 = sst [smem:[#allocation6 + $0x8]] %s2025_s27  ;;  %s2031_s10 = smov [#allocation5]  }
   0xe   :  { %58 = dma.general %s3701_s2, 16384, %s37_s25, %s2030_s9, %s2031_s10, [#allocation6], %s1732_s7, 0  }
   0xf   :  { %v1818_v5 = vld [vmem:[%s3700_s1 + $0x4] ss:$16 sps:$4 sm:$0x7f]   ;;  %v1820_v6 = vld [vmem:[%s3700_s1 + $0xc] ss:$16 sps:$4 sm:$0x7f]  }
  0x10   :  { %v150_v7 = vand.u32 %v1818_v5, %v145_v4  ;;  %v1822_v8 = vld [vmem:[%s3700_s1] ss:$16 sps:$4 sm:$0x7f]   ;;  %v1823_v9 = vld [vmem:[%s3700_s1 + $0x8] ss:$16 sps:$4 sm:$0x7f]   ;;  %v156_v10 = vand.u32 %v1820_v6, %v145_v4 }
  0x11   :  { %v147_v11 = vand.u32 %v1822_v8, %v145_v4  ;;  %v153_v12 = vand.u32 %v1823_v9, %v145_v4  ;;  %v1824_v13 = vld [vmem:[%s3699_s0] sm:$0xff]   ;;  %v1825_v14 = vld [vmem:[%s3699_s0 + $0x8] sm:$0xff]   ;;  %v1826_v15 = vld [vmem:[%s3699_s0 + $0x10] sm:$0xff]   ;;  %4065 = vst [vmem:[#allocation8_spill] sm:$0xff] %v2106_v18 }
  0x12   :  { %158 = vmatprep.subr.bf16.mxu0 %v150_v7  ;;  %231 = vmatprep.subr.bf16.mxu1 %v156_v10  ;;  %v1827_v16 = vld [vmem:[%s3699_s0 + $0x18] sm:$0xff]   ;;  %v71_v21 = vld [vmem:[%s3702_s3] sm:$0xf] }
  0x13   :  { %159 = vmatpush1.bf16.msra.mxu0 %v147_v11  ;;  %232 = vmatpush1.bf16.msra.mxu1 %v153_v12  ;;  %v2117_v24 = vrot.slane %v71_v21, %v3709_v19  ;;  %v2121_v25 = vrot.slane %v71_v21, %v3707_v20  ;;  %v2125_v26 = vrot.slane %v71_v21, %v3708_v22 }
  0x14   :  { %v2129_v27 = vrot.slane %v71_v21, %v3706_v23 }
  0x16   :  { %1741 = vmatmul.mubr.msk.bf16.vlgmr.msra.gmra.mrb[0].mxu0 %vm129_vm2, %v1824_v13  ;;  %1745 = vmatmul.mubr.msk.bf16.vlgmr.msra.gmra.mrb[0].mxu1 %vm129_vm2, %v1824_v13 }
  0x17   :  { %200 = vmatprep.mubr.bf16.mxu0 %v2024_v1  ;;  %273 = vmatprep.mubr.bf16.mxu1 %v2024_v1 }
  0x1e   :  { %1742 = vmatmul.mubr.msk.bf16.gmra.mrb[4].mxu0 %vm129_vm2, %v1825_v14  ;;  %1746 = vmatmul.mubr.msk.bf16.gmra.mrb[4].mxu1 %vm129_vm2, %v1825_v14 }
  0x1f   :  { %210 = vmatprep.mubr.bf16.mxu0 %v2024_v1  ;;  %283 = vmatprep.mubr.bf16.mxu1 %v2024_v1 }
  0x26   :  { %1743 = vmatmul.mubr.msk.bf16.gmra.mrb[8].mxu0 %vm129_vm2, %v1826_v15  ;;  %1747 = vmatmul.mubr.msk.bf16.gmra.mrb[8].mxu1 %vm129_vm2, %v1826_v15 }
  0x27   :  { %220 = vmatprep.mubr.bf16.mxu0 %v2024_v1  ;;  %293 = vmatprep.mubr.bf16.mxu1 %v2024_v1 }
  0x2e   :  { %1744 = vmatmul.mubr.msk.bf16.gmra.mrb[12].mxu0 %vm129_vm2, %v1827_v16  ;;  %1748 = vmatmul.mubr.msk.bf16.gmra.mrb[12].mxu1 %vm129_vm2, %v1827_v16 }
  0xe9   :  { %v192_v28 = vpop.f32.mrb[0].mxu0  ;;  %v265_v29 = vpop.f32.mrb[0].mxu1 }
  0xea   :  { %v193_v30 = vadd.f32 %v192_v28, %v2117_v24  ;;  %v266_v31 = vadd.f32 %v265_v29, %v2121_v25  ;;  %v194_v32 = vpop.f32.mrb[1].mxu0  ;;  %v267_v33 = vpop.f32.mrb[1].mxu1 }
  0xeb   :  { %v195_v34 = vadd.f32 %v194_v32, %v2125_v26  ;;  %v268_v35 = vadd.f32 %v267_v33, %v2129_v27  ;;  %v196_v36 = vpop.f32.mrb[2].mxu0  ;;  %v269_v37 = vpop.f32.mrb[2].mxu1 }
  0xec   :  { %v304_v38 = vpack.c.bf16 %v193_v30, %v193_v30  ;;  %v306_v39 = vpack.c.bf16 %v266_v31, %v266_v31  ;;  %v2136_v40 = vadd.f32 %v196_v36, %v2117_v24  ;;  %v2139_v41 = vadd.f32 %v269_v37, %v2121_v25  ;;  %v198_v42 = vpop.f32.mrb[3].mxu0  ;;  %v271_v43 = vpop.f32.mrb[3].mxu1 }
  0xed   :  { %v305_v44 = vpack.c.bf16 %v195_v34, %v195_v34  ;;  %v307_v45 = vpack.c.bf16 %v268_v35, %v268_v35  ;;  %v2142_v46 = vadd.f32 %v198_v42, %v2125_v26  ;;  %v2145_v47 = vadd.f32 %v271_v43, %v2129_v27 }
  0xee   :  { %4066 = vst [vmem:[#allocation9_spill] sm:$0xff] %v2136_v40  ;;  %4067 = vst [vmem:[#allocation10_spill] sm:$0xff] %v2139_v41  ;;  %1828 = vtanh.bf16 %v304_v38 }
  0xef   :  { %4068 = vst [vmem:[#allocation11_spill] sm:$0xff] %v2142_v46  ;;  %4069 = vst [vmem:[#allocation12_spill] sm:$0xff] %v2145_v47  ;;  %1830 = vtanh.bf16 %v306_v39 }
  0xf0   :  { %1832 = vtanh.bf16 %v305_v44 }
  0xf1   :  { %1834 = vtanh.bf16 %v307_v45  ;;  %v202_v48 = vpop.f32.mrb[4].mxu0  ;;  %v275_v49 = vpop.f32.mrb[4].mxu1 }
  0xf2   :  { %v2148_v50 = vadd.f32 %v202_v48, %v2117_v24  ;;  %v2151_v51 = vadd.f32 %v275_v49, %v2121_v25  ;;  %v204_v52 = vpop.f32.mrb[5].mxu0  ;;  %v277_v53 = vpop.f32.mrb[5].mxu1 }
  0xf3   :  { %v2154_v54 = vadd.f32 %v204_v52, %v2125_v26  ;;  %v2157_v55 = vadd.f32 %v277_v53, %v2129_v27  ;;  %v206_v56 = vpop.f32.mrb[6].mxu0  ;;  %v279_v57 = vpop.f32.mrb[6].mxu1 }
  0xf4   :  { %4070 = vst [vmem:[#allocation13_spill] sm:$0xff] %v2148_v50  ;;  %4071 = vst [vmem:[#allocation14_spill] sm:$0xff] %v2151_v51  ;;  %v2160_v58 = vadd.f32 %v206_v56, %v2117_v24  ;;  %v2163_v59 = vadd.f32 %v279_v57, %v2121_v25  ;;  %v208_v60 = vpop.f32.mrb[7].mxu0  ;;  %v281_v61 = vpop.f32.mrb[7].mxu1 }
  0xf5   :  { %4072 = vst [vmem:[#allocation15_spill] sm:$0xff] %v2154_v54  ;;  %4073 = vst [vmem:[#allocation16_spill] sm:$0xff] %v2157_v55  ;;  %v2166_v62 = vadd.f32 %v208_v60, %v2125_v26  ;;  %v2169_v63 = vadd.f32 %v281_v61, %v2129_v27 }
  0xf6   :  { %4074 = vst [vmem:[#allocation17_spill] sm:$0xff] %v2160_v58  ;;  %4075 = vst [vmem:[#allocation18_spill] sm:$0xff] %v2163_v59 }
  0xf7   :  { %4076 = vst [vmem:[#allocation19_spill] sm:$0xff] %v2166_v62  ;;  %4077 = vst [vmem:[#allocation20_spill] sm:$0xff] %v2169_v63 }
  0xf9   :  { %v2171_v0 = vpop.eup %1828  ;;  %v212_v1 = vpop.f32.mrb[8].mxu0 }
  0xfa   :  { %v285_v2 = vpop.f32.mrb[8].mxu1  ;;  %v2173_v3 = vpop.eup %1830  ;;  %v2176_v4 = vadd.f32 %v212_v1, %v2117_v24 }
  0xfb   :  { %v2179_v5 = vadd.f32 %v285_v2, %v2121_v25  ;;  %v214_v6 = vpop.f32.mrb[9].mxu0  ;;  %v287_v7 = vpop.f32.mrb[9].mxu1 }
  0xfc   :  { %4078 = vst [vmem:[#allocation21_spill] sm:$0xff] %v2176_v4  ;;  %v1833_v8 = vpop.eup %1832  ;;  %v2182_v9 = vadd.f32 %v214_v6, %v2125_v26  ;;  %v2185_v10 = vadd.f32 %v287_v7, %v2129_v27  ;;  %v216_v11 = vpop.f32.mrb[10].mxu0 }
  0xfd   :  { %4079 = vst [vmem:[#allocation22_spill] sm:$0xff] %v2179_v5  ;;  %v289_v12 = vpop.f32.mrb[10].mxu1  ;;  %v2187_v13 = vpop.eup %1834  ;;  %v2190_v14 = vadd.f32 %v216_v11, %v2117_v24 }
  0xfe   :  { %4080 = vst [vmem:[#allocation23_spill] sm:$0xff] %v2182_v9  ;;  %4081 = vst [vmem:[#allocation24_spill] sm:$0xff] %v2185_v10  ;;  %v2193_v15 = vadd.f32 %v289_v12, %v2121_v25  ;;  %v218_v16 = vpop.f32.mrb[11].mxu0  ;;  %v291_v17 = vpop.f32.mrb[11].mxu1 }
  0xff   :  { %4082 = vst [vmem:[#allocation25_spill] sm:$0xff] %v2190_v14  ;;  %v2196_v21 = vadd.f32 %v218_v16, %v2125_v26  ;;  %v2199_v28 = vadd.f32 %v291_v17, %v2129_v27 }
 0x100   :  { %4083 = vst [vmem:[#allocation26_spill] sm:$0xff] %v2193_v15 }
 0x101   :  { %4084 = vst [vmem:[#allocation27_spill] sm:$0xff] %v2196_v21  ;;  %4085 = vst [vmem:[#allocation28_spill] sm:$0xff] %v2199_v28  ;;  %v222_v29 = vpop.f32.mrb[12].mxu0  ;;  %v295_v30 = vpop.f32.mrb[12].mxu1 }
 0x102   :  { %v2202_v31 = vadd.f32 %v222_v29, %v2117_v24  ;;  %v2205_v32 = vadd.f32 %v295_v30, %v2121_v25  ;;  %v224_v33 = vpop.f32.mrb[13].mxu0  ;;  %v297_v34 = vpop.f32.mrb[13].mxu1 }
 0x103   :  { %v2208_v35 = vadd.f32 %v224_v33, %v2125_v26  ;;  %v2211_v36 = vadd.f32 %v297_v34, %v2129_v27  ;;  %v226_v37 = vpop.f32.mrb[14].mxu0  ;;  %v299_v38 = vpop.f32.mrb[14].mxu1 }
 0x104   :  { %4086 = vst [vmem:[#allocation29_spill] sm:$0xff] %v2202_v31  ;;  %4087 = vst [vmem:[#allocation30_spill] sm:$0xff] %v2205_v32  ;;  %v2214_v39 = vadd.f32 %v226_v37, %v2117_v24  ;;  %v2217_v42 = vadd.f32 %v299_v38, %v2121_v25  ;;  %v228_v43 = vpop.f32.mrb[15].mxu0  ;;  %v301_v44 = vpop.f32.mrb[15].mxu1 }
 0x105   :  { %4088 = vst [vmem:[#allocation31_spill] sm:$0xff] %v2208_v35  ;;  %4089 = vst [vmem:[#allocation32_spill] sm:$0xff] %v2211_v36  ;;  %v2220_v45 = vadd.f32 %v228_v43, %v2125_v26  ;;  %v2223_v48 = vadd.f32 %v301_v44, %v2129_v27 }
 0x106   :  { %4090 = vst [vmem:[#allocation33_spill] sm:$0xff] %v2214_v39  ;;  %4091 = vst [vmem:[#allocation34_spill] sm:$0xff] %v2217_v42 }
 0x107   :  { %4092 = vst [vmem:[#allocation35_spill] sm:$0xff] %v2220_v45  ;;  %4093 = vst [vmem:[#allocation36_spill] sm:$0xff] %v2223_v48 }
 0x108   :  { %2020 = dma.done.wait [#allocation3], 16384 }
 0x109   :  { %2021 = vsyncadd [#allocation3], 4294950912  ;;  %476 = vmatprep.mubr.bf16.mxu0 %v1833_v8  ;;  %558 = vmatprep.mubr.bf16.mxu1 %v1833_v8  ;;  %v2225_v49 = vld [vmem:[#allocation2 + $0x8] sm:$0xff]  ;;  %v2227_v52 = vld [vmem:[#allocation2 + $0x18] sm:$0xff]  ;;  %vm1719_vm3 = vcmask 7168  }
 0x10a   :  { %v2229_v24 = vld [vmem:[#allocation2] sm:$0xff]  ;;  %444 = vmatprep.subr.bf16.mxu0 %v2225_v49  ;;  %526 = vmatprep.subr.bf16.mxu1 %v2227_v52  ;;  %v2233_v25 = vld [vmem:[#allocation2 + $0x10] sm:$0xff]  ;;  %v2235_v26 = vld [vmem:[#allocation2 + $0x28] sm:$0xff] }
 0x10b   :  { %v2237_v27 = vld [vmem:[#allocation2 + $0x38] sm:$0xff]  ;;  %445 = vmatpush1.bf16.msra.mxu0 %v2229_v24  ;;  %527 = vmatpush1.bf16.msra.mxu1 %v2233_v25  ;;  %v2243_v53 = vld [vmem:[#allocation2 + $0x20] sm:$0xff]  ;;  %v2245_v56 = vld [vmem:[#allocation2 + $0x30] sm:$0xff] }
 0x10c   :  { %446 = vmatprep.subr.bf16.mxu0 %v2235_v26  ;;  %528 = vmatprep.subr.bf16.mxu1 %v2237_v27  ;;  %v2247_v57 = vld [vmem:[#allocation2 + $0x48] sm:$0xff]  ;;  %v2249_v60 = vld [vmem:[#allocation2 + $0x58] sm:$0xff]  ;;  %v2255_v61 = vld [vmem:[#allocation2 + $0x40] sm:$0xff] }
 0x10d   :  { %v2257_v1 = vld [vmem:[#allocation2 + $0x50] sm:$0xff]  ;;  %v2259_v2 = vld [vmem:[#allocation2 + $0x68] sm:$0xff]  ;;  %v2261_v6 = vld [vmem:[#allocation2 + $0x78] sm:$0xff] }
 0x10e   :  { %v2267_v7 = vld [vmem:[#allocation2 + $0x60] sm:$0xff]  ;;  %v2269_v8 = vld [vmem:[#allocation2 + $0x70] sm:$0xff]  ;;  %v2271_v11 = vld [vmem:[#allocation2 + $0x88] sm:$0xff] }
 0x10f   :  { %447 = vmatpush1.bf16.msra.mxu0 %v2243_v53  ;;  %529 = vmatpush1.bf16.msra.mxu1 %v2245_v56  ;;  %v2273_v12 = vld [vmem:[#allocation2 + $0x98] sm:$0xff]  ;;  %v2279_v16 = vld [vmem:[#allocation2 + $0x80] sm:$0xff]  ;;  %v2281_v17 = vld [vmem:[#allocation2 + $0x90] sm:$0xff] }
 0x110   :  { %448 = vmatprep.subr.bf16.mxu0 %v2247_v57  ;;  %530 = vmatprep.subr.bf16.mxu1 %v2249_v60  ;;  %v2283_v29 = vld [vmem:[#allocation2 + $0xa8] sm:$0xff]  ;;  %v2285_v30 = vld [vmem:[#allocation2 + $0xb8] sm:$0xff]  ;;  %v2291_v33 = vld [vmem:[#allocation2 + $0xa0] sm:$0xff] }
 0x111   :  { %v2293_v34 = vld [vmem:[#allocation2 + $0xb0] sm:$0xff]  ;;  %v2295_v37 = vld [vmem:[#allocation2 + $0xc8] sm:$0xff]  ;;  %v2297_v38 = vld [vmem:[#allocation2 + $0xd8] sm:$0xff] }
 0x112   :  { %v2303_v43 = vld [vmem:[#allocation2 + $0xc0] sm:$0xff]  ;;  %v2305_v44 = vld [vmem:[#allocation2 + $0xd0] sm:$0xff]  ;;  %v2307_v23 = vld [vmem:[#allocation2 + $0xe8] sm:$0xff] }
 0x113   :  { %449 = vmatpush1.bf16.msra.mxu0 %v2255_v61  ;;  %531 = vmatpush1.bf16.msra.mxu1 %v2257_v1  ;;  %v2309_v20 = vld [vmem:[#allocation2 + $0xf8] sm:$0xff]  ;;  %v2315_v22 = vld [vmem:[#allocation2 + $0xe0] sm:$0xff]  ;;  %v2317_v19 = vld [vmem:[#allocation2 + $0xf0] sm:$0xff] }
 0x114   :  { %450 = vmatprep.subr.bf16.mxu0 %v2259_v2  ;;  %532 = vmatprep.subr.bf16.mxu1 %v2261_v6  ;;  %v2319_v18 = vld [vmem:[#allocation2 + $0x108] sm:$0xff]  ;;  %v2321_v48 = vld [vmem:[#allocation2 + $0x118] sm:$0xff]  ;;  %v2327_v45 = vld [vmem:[#allocation2 + $0x100] sm:$0xff] }
 0x115   :  { %v2329_v42 = vld [vmem:[#allocation2 + $0x110] sm:$0xff]  ;;  %v2331_v39 = vld [vmem:[#allocation2 + $0x128] sm:$0xff]  ;;  %v2333_v32 = vld [vmem:[#allocation2 + $0x138] sm:$0xff] }
 0x116   :  { %4094 = vst [vmem:[#allocation37_spill] sm:$0xff] %v2329_v42  ;;  %4095 = vst [vmem:[#allocation38_spill] sm:$0xff] %v2331_v39  ;;  %v2339_v36 = vld [vmem:[#allocation2 + $0x120] sm:$0xff]  ;;  %v2341_v35 = vld [vmem:[#allocation2 + $0x130] sm:$0xff] }
 0x117   :  { %451 = vmatpush1.bf16.msra.mxu0 %v2267_v7  ;;  %533 = vmatpush1.bf16.msra.mxu1 %v2269_v8  ;;  %4096 = vst [vmem:[#allocation39_spill] sm:$0xff] %v2333_v32  ;;  %4097 = vst [vmem:[#allocation40_spill] sm:$0xff] %v2339_v36  ;;  %v2343_v31 = vld [vmem:[#allocation2 + $0x148] sm:$0xff]  ;;  %v2345_v15 = vld [vmem:[#allocation2 + $0x158] sm:$0xff] }
 0x118   :  { %452 = vmatprep.subr.bf16.mxu0 %v2271_v11  ;;  %534 = vmatprep.subr.bf16.mxu1 %v2273_v12  ;;  %4098 = vst [vmem:[#allocation41_spill] sm:$0xff] %v2341_v35  ;;  %4099 = vst [vmem:[#allocation42_spill] sm:$0xff] %v2343_v31  ;;  %v2351_v28 = vld [vmem:[#allocation2 + $0x140] sm:$0xff]  ;;  %v2353_v21 = vld [vmem:[#allocation2 + $0x150] sm:$0xff] }
 0x119   :  { %4100 = vst [vmem:[#allocation43_spill] sm:$0xff] %v2345_v15  ;;  %4101 = vst [vmem:[#allocation44_spill] sm:$0xff] %v2351_v28  ;;  %v2355_v14 = vld [vmem:[#allocation2 + $0x168] sm:$0xff]  ;;  %v2357_v5 = vld [vmem:[#allocation2 + $0x178] sm:$0xff] }
 0x11a   :  { %4102 = vst [vmem:[#allocation45_spill] sm:$0xff] %v2353_v21  ;;  %4103 = vst [vmem:[#allocation46_spill] sm:$0xff] %v2355_v14  ;;  %v2363_v10 = vld [vmem:[#allocation2 + $0x160] sm:$0xff]  ;;  %v2365_v9 = vld [vmem:[#allocation2 + $0x170] sm:$0xff] }
 0x11b   :  { %453 = vmatpush1.bf16.msra.mxu0 %v2279_v16  ;;  %535 = vmatpush1.bf16.msra.mxu1 %v2281_v17  ;;  %4104 = vst [vmem:[#allocation47_spill] sm:$0xff] %v2357_v5  ;;  %4105 = vst [vmem:[#allocation48_spill] sm:$0xff] %v2363_v10  ;;  %v2367_v4 = vld [vmem:[#allocation2 + $0x188] sm:$0xff]  ;;  %v2369_v59 = vld [vmem:[#allocation2 + $0x198] sm:$0xff] }
 0x11c   :  { %454 = vmatprep.subr.bf16.mxu0 %v2283_v29  ;;  %536 = vmatprep.subr.bf16.mxu1 %v2285_v30  ;;  %4106 = vst [vmem:[#allocation49_spill] sm:$0xff] %v2365_v9  ;;  %4107 = vst [vmem:[#allocation50_spill] sm:$0xff] %v2367_v4  ;;  %v2375_v63 = vld [vmem:[#allocation2 + $0x180] sm:$0xff]  ;;  %v2377_v62 = vld [vmem:[#allocation2 + $0x190] sm:$0xff] }
 0x11d   :  { %4108 = vst [vmem:[#allocation51_spill] sm:$0xff] %v2369_v59  ;;  %4109 = vst [vmem:[#allocation52_spill] sm:$0xff] %v2375_v63  ;;  %v2379_v58 = vld [vmem:[#allocation2 + $0x1a8] sm:$0xff]  ;;  %v2381_v51 = vld [vmem:[#allocation2 + $0x1b8] sm:$0xff] }
 0x11e   :  { %4110 = vst [vmem:[#allocation53_spill] sm:$0xff] %v2377_v62  ;;  %4111 = vst [vmem:[#allocation54_spill] sm:$0xff] %v2379_v58  ;;  %v2387_v55 = vld [vmem:[#allocation2 + $0x1a0] sm:$0xff]  ;;  %v2389_v54 = vld [vmem:[#allocation2 + $0x1b0] sm:$0xff] }
 0x11f   :  { %455 = vmatpush1.bf16.msra.mxu0 %v2291_v33  ;;  %537 = vmatpush1.bf16.msra.mxu1 %v2293_v34  ;;  %4112 = vst [vmem:[#allocation55_spill] sm:$0xff] %v2381_v51  ;;  %4113 = vst [vmem:[#allocation56_spill] sm:$0xff] %v2387_v55  ;;  %v2391_v50 = vld [vmem:[#allocation2 + $0x1c8] sm:$0xff]  ;;  %v2393_v41 = vld [vmem:[#allocation2 + $0x1d8] sm:$0xff] }
 0x120   :  { %456 = vmatprep.subr.bf16.mxu0 %v2295_v37  ;;  %538 = vmatprep.subr.bf16.mxu1 %v2297_v38  ;;  %4114 = vst [vmem:[#allocation57_spill] sm:$0xff] %v2389_v54  ;;  %4115 = vst [vmem:[#allocation58_spill] sm:$0xff] %v2391_v50  ;;  %v2399_v47 = vld [vmem:[#allocation2 + $0x1c0] sm:$0xff]  ;;  %v2401_v46 = vld [vmem:[#allocation2 + $0x1d0] sm:$0xff] }
 0x121   :  { %4116 = vst [vmem:[#allocation59_spill] sm:$0xff] %v2393_v41  ;;  %4117 = vst [vmem:[#allocation60_spill] sm:$0xff] %v2399_v47  ;;  %v2403_v40 = vld [vmem:[#allocation2 + $0x1e8] sm:$0xff] }
 0x122   :  { %4118 = vst [vmem:[#allocation61_spill] sm:$0xff] %v2401_v46  ;;  %4119 = vst [vmem:[#allocation62_spill] sm:$0xff] %v2403_v40 }
 0x123   :  { %457 = vmatpush1.bf16.msra.mxu0 %v2303_v43  ;;  %539 = vmatpush1.bf16.msra.mxu1 %v2305_v44 }
 0x124   :  { %458 = vmatprep.subr.bf16.mxu0 %v2307_v23  ;;  %540 = vmatprep.subr.bf16.mxu1 %v2309_v20 }
 0x127   :  { %459 = vmatpush1.bf16.msra.mxu0 %v2315_v22  ;;  %541 = vmatpush1.bf16.msra.mxu1 %v2317_v19 }
 0x128   :  { %460 = vmatprep.subr.bf16.mxu0 %v2319_v18  ;;  %542 = vmatprep.subr.bf16.mxu1 %v2321_v48 }
 0x12b   :  { %461 = vmatpush1.bf16.msra.mxu0 %v2327_v45  ;;  %543 = vmatpush1.bf16.msra.mxu1 %v2329_v42 }
 0x12c   :  { %462 = vmatprep.subr.bf16.mxu0 %v2331_v39  ;;  %544 = vmatprep.subr.bf16.mxu1 %v2333_v32 }
 0x12f   :  { %463 = vmatpush1.bf16.msra.mxu0 %v2339_v36  ;;  %545 = vmatpush1.bf16.msra.mxu1 %v2341_v35 }
 0x130   :  { %464 = vmatprep.subr.bf16.mxu0 %v2343_v31  ;;  %546 = vmatprep.subr.bf16.mxu1 %v2345_v15 }
 0x133   :  { %465 = vmatpush1.bf16.msra.mxu0 %v2351_v28  ;;  %547 = vmatpush1.bf16.msra.mxu1 %v2353_v21 }
 0x134   :  { %466 = vmatprep.subr.bf16.mxu0 %v2355_v14  ;;  %548 = vmatprep.subr.bf16.mxu1 %v2357_v5 }
 0x137   :  { %467 = vmatpush1.bf16.msra.mxu0 %v2363_v10  ;;  %549 = vmatpush1.bf16.msra.mxu1 %v2365_v9 }
 0x138   :  { %468 = vmatprep.subr.bf16.mxu0 %v2367_v4  ;;  %550 = vmatprep.subr.bf16.mxu1 %v2369_v59 }
 0x13b   :  { %469 = vmatpush1.bf16.msra.mxu0 %v2375_v63  ;;  %551 = vmatpush1.bf16.msra.mxu1 %v2377_v62 }
 0x13c   :  { %470 = vmatprep.subr.bf16.mxu0 %v2379_v58  ;;  %552 = vmatprep.subr.bf16.mxu1 %v2381_v51  ;;  %v2405_v51 = vld [vmem:[#allocation2 + $0x1f8] sm:$0xff] }
 0x13d   :  { %4120 = vst [vmem:[#allocation63_spill] sm:$0xff] %v2405_v51 }
 0x13f   :  { %471 = vmatpush1.bf16.msra.mxu0 %v2387_v55  ;;  %553 = vmatpush1.bf16.msra.mxu1 %v2389_v54  ;;  %v2411_v54 = vld [vmem:[#allocation2 + $0x1e0] sm:$0xff]  ;;  %v2417_v55 = vld [vmem:[#allocation2 + $0x218] sm:$0xff] }
 0x140   :  { %472 = vmatprep.subr.bf16.mxu0 %v2391_v50  ;;  %554 = vmatprep.subr.bf16.mxu1 %v2393_v41  ;;  %4121 = vst [vmem:[#allocation64_spill] sm:$0xff] %v2411_v54  ;;  %v2413_v50 = vld [vmem:[#allocation2 + $0x1f0] sm:$0xff]  ;;  %v2415_v41 = vld [vmem:[#allocation2 + $0x208] sm:$0xff]  ;;  %4124 = vst [vmem:[#allocation67_spill] sm:$0xff] %v2417_v55 }
 0x141   :  { %4122 = vst [vmem:[#allocation65_spill] sm:$0xff] %v2413_v50  ;;  %4123 = vst [vmem:[#allocation66_spill] sm:$0xff] %v2415_v41 }
 0x143   :  { %473 = vmatpush1.bf16.msra.mxu0 %v2399_v47  ;;  %555 = vmatpush1.bf16.msra.mxu1 %v2401_v46  ;;  %v2423_v46 = vld [vmem:[#allocation2 + $0x200] sm:$0xff]  ;;  %v2429_v47 = vld [vmem:[#allocation2 + $0x238] sm:$0xff] }
 0x144   :  { %474 = vmatprep.subr.bf16.mxu0 %v2403_v40  ;;  %556 = vmatprep.subr.bf16.mxu1 %v2405_v51  ;;  %v2425_v40 = vld [vmem:[#allocation2 + $0x210] sm:$0xff]  ;;  %v2427_v51 = vld [vmem:[#allocation2 + $0x228] sm:$0xff]  ;;  %4127 = vst [vmem:[#allocation70_spill] sm:$0xff] %v2429_v47 }
 0x145   :  { %4125 = vst [vmem:[#allocation68_spill] sm:$0xff] %v2425_v40  ;;  %4126 = vst [vmem:[#allocation69_spill] sm:$0xff] %v2427_v51 }
 0x147   :  { %475 = vmatpush1.bf16.msra.mxu0 %v2411_v54  ;;  %557 = vmatpush1.bf16.msra.mxu1 %v2413_v50  ;;  %v2441_v50 = vld [vmem:[#allocation2 + $0x248] sm:$0xff]  ;;  %v2443_v54 = vld [vmem:[#allocation2 + $0x258] sm:$0xff] }
 0x148   :  { %485 = vmatprep.subr.bf16.mxu0 %v2415_v41  ;;  %567 = vmatprep.subr.bf16.mxu1 %v2417_v55  ;;  %v2437_v55 = vld [vmem:[#allocation2 + $0x220] sm:$0xff]  ;;  %v2439_v41 = vld [vmem:[#allocation2 + $0x230] sm:$0xff]  ;;  %4129 = vst [vmem:[#allocation72_spill] sm:$0xff] %v2441_v50  ;;  %4130 = vst [vmem:[#allocation73_spill] sm:$0xff] %v2443_v54 }
 0x149   :  { %4128 = vst [vmem:[#allocation71_spill] sm:$0xff] %v2439_v41 }
 0x14a   :  { %477 = vmatmul.mubr.bf16.vlgmr.msra.gmra.mrb[16].mxu0 %v2171_v0  ;;  %559 = vmatmul.mubr.bf16.vlgmr.msra.gmra.mrb[16].mxu1 %v2171_v0  ;;  %v2451_v0 = vld [vmem:[#allocation2 + $0x240] sm:$0xff] }
 0x14b   :  { %486 = vmatpush1.bf16.msra.mxu0 %v2423_v46  ;;  %568 = vmatpush1.bf16.msra.mxu1 %v2425_v40  ;;  %4131 = vst [vmem:[#allocation74_spill] sm:$0xff] %v2451_v0  ;;  %v2457_v40 = vld [vmem:[#allocation2 + $0x278] sm:$0xff] }
 0x14c   :  { %487 = vmatprep.subr.bf16.mxu0 %v2427_v51  ;;  %569 = vmatprep.subr.bf16.mxu1 %v2429_v47  ;;  %v2453_v47 = vld [vmem:[#allocation2 + $0x250] sm:$0xff]  ;;  %v2455_v51 = vld [vmem:[#allocation2 + $0x268] sm:$0xff]  ;;  %4134 = vst [vmem:[#allocation77_spill] sm:$0xff] %v2457_v40 }
 0x14d   :  { %517 = vmatprep.mubr.bf16.mxu0 %v2187_v13  ;;  %599 = vmatprep.mubr.bf16.mxu1 %v2187_v13  ;;  %4132 = vst [vmem:[#allocation75_spill] sm:$0xff] %v2453_v47  ;;  %4133 = vst [vmem:[#allocation76_spill] sm:$0xff] %v2455_v51  ;;  %v2463_v13 = vld [vmem:[#allocation2 + $0x260] sm:$0xff] }
 0x14e   :  { %4135 = vst [vmem:[#allocation78_spill] sm:$0xff] %v2463_v13 }
 0x14f   :  { %488 = vmatpush1.bf16.msra.mxu0 %v2437_v55  ;;  %570 = vmatpush1.bf16.msra.mxu1 %v2439_v41  ;;  %v2469_v41 = vld [vmem:[#allocation2 + $0x298] sm:$0xff] }
 0x150   :  { %489 = vmatprep.subr.bf16.mxu0 %v2441_v50  ;;  %571 = vmatprep.subr.bf16.mxu1 %v2443_v54  ;;  %v2465_v50 = vld [vmem:[#allocation2 + $0x270] sm:$0xff]  ;;  %v2467_v54 = vld [vmem:[#allocation2 + $0x288] sm:$0xff]  ;;  %4138 = vst [vmem:[#allocation81_spill] sm:$0xff] %v2469_v41 }
 0x151   :  { %4136 = vst [vmem:[#allocation79_spill] sm:$0xff] %v2465_v50  ;;  %4137 = vst [vmem:[#allocation80_spill] sm:$0xff] %v2467_v54 }
 0x153   :  { %490 = vmatpush1.bf16.msra.mxu0 %v2451_v0  ;;  %572 = vmatpush1.bf16.msra.mxu1 %v2453_v47  ;;  %v2475_v47 = vld [vmem:[#allocation2 + $0x280] sm:$0xff]  ;;  %v2481_v0 = vld [vmem:[#allocation2 + $0x2b8] sm:$0xff] }
 0x154   :  { %491 = vmatprep.subr.bf16.mxu0 %v2455_v51  ;;  %573 = vmatprep.subr.bf16.mxu1 %v2457_v40  ;;  %4139 = vst [vmem:[#allocation82_spill] sm:$0xff] %v2475_v47  ;;  %v2477_v51 = vld [vmem:[#allocation2 + $0x290] sm:$0xff]  ;;  %v2479_v40 = vld [vmem:[#allocation2 + $0x2a8] sm:$0xff]  ;;  %4142 = vst [vmem:[#allocation85_spill] sm:$0xff] %v2481_v0 }
 0x155   :  { %4140 = vst [vmem:[#allocation83_spill] sm:$0xff] %v2477_v51  ;;  %4141 = vst [vmem:[#allocation84_spill] sm:$0xff] %v2479_v40 }
 0x157   :  { %492 = vmatpush1.bf16.msra.mxu0 %v2463_v13  ;;  %574 = vmatpush1.bf16.msra.mxu1 %v2465_v50  ;;  %v2487_v50 = vld [vmem:[#allocation2 + $0x2a0] sm:$0xff]  ;;  %v2493_v13 = vld [vmem:[#allocation2 + $0x2d8] sm:$0xff] }
 0x158   :  { %493 = vmatprep.subr.bf16.mxu0 %v2467_v54  ;;  %575 = vmatprep.subr.bf16.mxu1 %v2469_v41  ;;  %4143 = vst [vmem:[#allocation86_spill] sm:$0xff] %v2487_v50  ;;  %v2489_v54 = vld [vmem:[#allocation2 + $0x2b0] sm:$0xff]  ;;  %v2491_v41 = vld [vmem:[#allocation2 + $0x2c8] sm:$0xff]  ;;  %4146 = vst [vmem:[#allocation89_spill] sm:$0xff] %v2493_v13 }
 0x159   :  { %4144 = vst [vmem:[#allocation87_spill] sm:$0xff] %v2489_v54  ;;  %4145 = vst [vmem:[#allocation88_spill] sm:$0xff] %v2491_v41 }
 0x15b   :  { %494 = vmatpush1.bf16.msra.mxu0 %v2475_v47  ;;  %576 = vmatpush1.bf16.msra.mxu1 %v2477_v51  ;;  %v2499_v51 = vld [vmem:[#allocation2 + $0x2c0] sm:$0xff]  ;;  %v2505_v47 = vld [vmem:[#allocation2 + $0x2f8] sm:$0xff] }
 0x15c   :  { %495 = vmatprep.subr.bf16.mxu0 %v2479_v40  ;;  %577 = vmatprep.subr.bf16.mxu1 %v2481_v0  ;;  %4147 = vst [vmem:[#allocation90_spill] sm:$0xff] %v2499_v51  ;;  %v2501_v40 = vld [vmem:[#allocation2 + $0x2d0] sm:$0xff]  ;;  %v2503_v0 = vld [vmem:[#allocation2 + $0x2e8] sm:$0xff]  ;;  %4150 = vst [vmem:[#allocation93_spill] sm:$0xff] %v2505_v47 }
 0x15d   :  { %4148 = vst [vmem:[#allocation91_spill] sm:$0xff] %v2501_v40  ;;  %4149 = vst [vmem:[#allocation92_spill] sm:$0xff] %v2503_v0 }
 0x15f   :  { %496 = vmatpush1.bf16.msra.mxu0 %v2487_v50  ;;  %578 = vmatpush1.bf16.msra.mxu1 %v2489_v54  ;;  %v2511_v54 = vld [vmem:[#allocation2 + $0x2e0] sm:$0xff]  ;;  %v2517_v50 = vld [vmem:[#allocation2 + $0x318] sm:$0xff] }
 0x160   :  { %497 = vmatprep.subr.bf16.mxu0 %v2491_v41  ;;  %579 = vmatprep.subr.bf16.mxu1 %v2493_v13  ;;  %4151 = vst [vmem:[#allocation94_spill] sm:$0xff] %v2511_v54  ;;  %v2513_v41 = vld [vmem:[#allocation2 + $0x2f0] sm:$0xff]  ;;  %v2515_v13 = vld [vmem:[#allocation2 + $0x308] sm:$0xff]  ;;  %4154 = vst [vmem:[#allocation97_spill] sm:$0xff] %v2517_v50 }
 0x161   :  { %4152 = vst [vmem:[#allocation95_spill] sm:$0xff] %v2513_v41  ;;  %4153 = vst [vmem:[#allocation96_spill] sm:$0xff] %v2515_v13 }
 0x163   :  { %498 = vmatpush1.bf16.msra.mxu0 %v2499_v51  ;;  %580 = vmatpush1.bf16.msra.mxu1 %v2501_v40  ;;  %v2523_v40 = vld [vmem:[#allocation2 + $0x300] sm:$0xff]  ;;  %v2529_v51 = vld [vmem:[#allocation2 + $0x338] sm:$0xff] }
 0x164   :  { %499 = vmatprep.subr.bf16.mxu0 %v2503_v0  ;;  %581 = vmatprep.subr.bf16.mxu1 %v2505_v47  ;;  %4155 = vst [vmem:[#allocation98_spill] sm:$0xff] %v2523_v40  ;;  %v2525_v0 = vld [vmem:[#allocation2 + $0x310] sm:$0xff]  ;;  %v2527_v47 = vld [vmem:[#allocation2 + $0x328] sm:$0xff]  ;;  %4158 = vst [vmem:[#allocation101_spill] sm:$0xff] %v2529_v51 }
 0x165   :  { %4156 = vst [vmem:[#allocation99_spill] sm:$0xff] %v2525_v0  ;;  %4157 = vst [vmem:[#allocation100_spill] sm:$0xff] %v2527_v47 }
 0x167   :  { %500 = vmatpush1.bf16.msra.mxu0 %v2511_v54  ;;  %582 = vmatpush1.bf16.msra.mxu1 %v2513_v41  ;;  %v2535_v41 = vld [vmem:[#allocation2 + $0x320] sm:$0xff]  ;;  %v2541_v54 = vld [vmem:[#allocation2 + $0x358] sm:$0xff] }
 0x168   :  { %501 = vmatprep.subr.bf16.mxu0 %v2515_v13  ;;  %583 = vmatprep.subr.bf16.mxu1 %v2517_v50  ;;  %4159 = vst [vmem:[#allocation102_spill] sm:$0xff] %v2535_v41  ;;  %v2537_v13 = vld [vmem:[#allocation2 + $0x330] sm:$0xff]  ;;  %v2539_v50 = vld [vmem:[#allocation2 + $0x348] sm:$0xff]  ;;  %4162 = vst [vmem:[#allocation105_spill] sm:$0xff] %v2541_v54 }
 0x169   :  { %4160 = vst [vmem:[#allocation103_spill] sm:$0xff] %v2537_v13  ;;  %4161 = vst [vmem:[#allocation104_spill] sm:$0xff] %v2539_v50 }
 0x16b   :  { %502 = vmatpush1.bf16.msra.mxu0 %v2523_v40  ;;  %584 = vmatpush1.bf16.msra.mxu1 %v2525_v0  ;;  %v2547_v0 = vld [vmem:[#allocation2 + $0x340] sm:$0xff]  ;;  %v2553_v40 = vld [vmem:[#allocation2 + $0x378] sm:$0xff] }
 0x16c   :  { %503 = vmatprep.subr.bf16.mxu0 %v2527_v47  ;;  %585 = vmatprep.subr.bf16.mxu1 %v2529_v51  ;;  %4163 = vst [vmem:[#allocation106_spill] sm:$0xff] %v2547_v0  ;;  %v2549_v47 = vld [vmem:[#allocation2 + $0x350] sm:$0xff]  ;;  %v2551_v51 = vld [vmem:[#allocation2 + $0x368] sm:$0xff]  ;;  %4166 = vst [vmem:[#allocation109_spill] sm:$0xff] %v2553_v40 }
 0x16d   :  { %4164 = vst [vmem:[#allocation107_spill] sm:$0xff] %v2549_v47  ;;  %4165 = vst [vmem:[#allocation108_spill] sm:$0xff] %v2551_v51 }
 0x16f   :  { %504 = vmatpush1.bf16.msra.mxu0 %v2535_v41  ;;  %586 = vmatpush1.bf16.msra.mxu1 %v2537_v13  ;;  %v2559_v13 = vld [vmem:[#allocation2 + $0x360] sm:$0xff]  ;;  %v2565_v41 = vld [vmem:[#allocation2 + $0x398] sm:$0xff] }
 0x170   :  { %505 = vmatprep.subr.bf16.mxu0 %v2539_v50  ;;  %587 = vmatprep.subr.bf16.mxu1 %v2541_v54  ;;  %4167 = vst [vmem:[#allocation110_spill] sm:$0xff] %v2559_v13  ;;  %v2561_v50 = vld [vmem:[#allocation2 + $0x370] sm:$0xff]  ;;  %v2563_v54 = vld [vmem:[#allocation2 + $0x388] sm:$0xff]  ;;  %4170 = vst [vmem:[#allocation113_spill] sm:$0xff] %v2565_v41 }
 0x171   :  { %4168 = vst [vmem:[#allocation111_spill] sm:$0xff] %v2561_v50  ;;  %4169 = vst [vmem:[#allocation112_spill] sm:$0xff] %v2563_v54 }
 0x173   :  { %506 = vmatpush1.bf16.msra.mxu0 %v2547_v0  ;;  %588 = vmatpush1.bf16.msra.mxu1 %v2549_v47  ;;  %v2571_v47 = vld [vmem:[#allocation2 + $0x380] sm:$0xff]  ;;  %v2577_v0 = vld [vmem:[#allocation2 + $0x3b8] sm:$0xff] }
 0x174   :  { %507 = vmatprep.subr.bf16.mxu0 %v2551_v51  ;;  %589 = vmatprep.subr.bf16.mxu1 %v2553_v40  ;;  %4171 = vst [vmem:[#allocation114_spill] sm:$0xff] %v2571_v47  ;;  %v2573_v51 = vld [vmem:[#allocation2 + $0x390] sm:$0xff]  ;;  %v2575_v40 = vld [vmem:[#allocation2 + $0x3a8] sm:$0xff]  ;;  %4174 = vst [vmem:[#allocation117_spill] sm:$0xff] %v2577_v0 }
 0x175   :  { %4172 = vst [vmem:[#allocation115_spill] sm:$0xff] %v2573_v51  ;;  %4173 = vst [vmem:[#allocation116_spill] sm:$0xff] %v2575_v40 }
 0x177   :  { %508 = vmatpush1.bf16.msra.mxu0 %v2559_v13  ;;  %590 = vmatpush1.bf16.msra.mxu1 %v2561_v50  ;;  %v2583_v50 = vld [vmem:[#allocation2 + $0x3a0] sm:$0xff]  ;;  %v2589_v13 = vld [vmem:[#allocation2 + $0x3d8] sm:$0xff] }
 0x178   :  { %509 = vmatprep.subr.bf16.mxu0 %v2563_v54  ;;  %591 = vmatprep.subr.bf16.mxu1 %v2565_v41  ;;  %v2585_v54 = vld [vmem:[#allocation2 + $0x3b0] sm:$0xff]  ;;  %v2587_v41 = vld [vmem:[#allocation2 + $0x3c8] sm:$0xff] }
 0x179   :  { %4175 = vst [vmem:[#allocation118_spill] sm:$0xff] %v2585_v54  ;;  %4176 = vst [vmem:[#allocation119_spill] sm:$0xff] %v2587_v41 }
 0x17b   :  { %510 = vmatpush1.bf16.msra.mxu0 %v2571_v47  ;;  %592 = vmatpush1.bf16.msra.mxu1 %v2573_v51  ;;  %v2595_v51 = vld [vmem:[#allocation2 + $0x3c0] sm:$0xff]  ;;  %v2601_v47 = vld [vmem:[#allocation2 + $0x3f8] sm:$0xff] }
 0x17c   :  { %511 = vmatprep.subr.bf16.mxu0 %v2575_v40  ;;  %593 = vmatprep.subr.bf16.mxu1 %v2577_v0  ;;  %v2597_v40 = vld [vmem:[#allocation2 + $0x3d0] sm:$0xff]  ;;  %v2599_v0 = vld [vmem:[#allocation2 + $0x3e8] sm:$0xff] }
 0x17f   :  { %512 = vmatpush1.bf16.msra.mxu0 %v2583_v50  ;;  %594 = vmatpush1.bf16.msra.mxu1 %v2585_v54  ;;  %v2607_v54 = vld [vmem:[#allocation2 + $0x3e0] sm:$0xff] }
 0x180   :  { %513 = vmatprep.subr.bf16.mxu0 %v2587_v41  ;;  %595 = vmatprep.subr.bf16.mxu1 %v2589_v13  ;;  %v2609_v41 = vld [vmem:[#allocation2 + $0x3f0] sm:$0xff] }
 0x183   :  { %514 = vmatpush1.bf16.msra.mxu0 %v2595_v51  ;;  %596 = vmatpush1.bf16.msra.mxu1 %v2597_v40 }
 0x184   :  { %515 = vmatprep.subr.bf16.mxu0 %v2599_v0  ;;  %597 = vmatprep.subr.bf16.mxu1 %v2601_v47 }
 0x187   :  { %516 = vmatpush1.bf16.msra.mxu0 %v2607_v54  ;;  %598 = vmatpush1.bf16.msra.mxu1 %v2609_v41 }
 0x188   :  { %620 = vmatprep.subr.bf16.mxu0 %v2225_v49  ;;  %702 = vmatprep.subr.bf16.mxu1 %v2227_v52 }
 0x18a   :  { %518 = vmatmul.mubr.bf16.vlgmr.msra.gmra.mrb[16].mxu0 %v2173_v3  ;;  %600 = vmatmul.mubr.bf16.vlgmr.msra.gmra.mrb[16].mxu1 %v2173_v3  ;;  %v4177_v3 = vld [vmem:[#allocation55_spill] sm:$0xff] }
 0x18b   :  { %621 = vmatpush1.bf16.msra.mxu0 %v2229_v24  ;;  %703 = vmatpush1.bf16.msra.mxu1 %v2233_v25 }
 0x18c   :  { %622 = vmatprep.subr.bf16.mxu0 %v2235_v26  ;;  %704 = vmatprep.subr.bf16.mxu1 %v2237_v27 }
 0x18f   :  { %623 = vmatpush1.bf16.msra.mxu0 %v2243_v53  ;;  %705 = vmatpush1.bf16.msra.mxu1 %v2245_v56 }
 0x190   :  { %624 = vmatprep.subr.bf16.mxu0 %v2247_v57  ;;  %706 = vmatprep.subr.bf16.mxu1 %v2249_v60 }
 0x193   :  { %625 = vmatpush1.bf16.msra.mxu0 %v2255_v61  ;;  %707 = vmatpush1.bf16.msra.mxu1 %v2257_v1 }
 0x194   :  { %626 = vmatprep.subr.bf16.mxu0 %v2259_v2  ;;  %708 = vmatprep.subr.bf16.mxu1 %v2261_v6 }
 0x197   :  { %627 = vmatpush1.bf16.msra.mxu0 %v2267_v7  ;;  %709 = vmatpush1.bf16.msra.mxu1 %v2269_v8 }
 0x198   :  { %628 = vmatprep.subr.bf16.mxu0 %v2271_v11  ;;  %710 = vmatprep.subr.bf16.mxu1 %v2273_v12 }
 0x19b   :  { %629 = vmatpush1.bf16.msra.mxu0 %v2279_v16  ;;  %711 = vmatpush1.bf16.msra.mxu1 %v2281_v17 }
 0x19c   :  { %630 = vmatprep.subr.bf16.mxu0 %v2283_v29  ;;  %712 = vmatprep.subr.bf16.mxu1 %v2285_v30 }
 0x19f   :  { %631 = vmatpush1.bf16.msra.mxu0 %v2291_v33  ;;  %713 = vmatpush1.bf16.msra.mxu1 %v2293_v34 }
 0x1a0   :  { %632 = vmatprep.subr.bf16.mxu0 %v2295_v37  ;;  %714 = vmatprep.subr.bf16.mxu1 %v2297_v38 }
 0x1a3   :  { %633 = vmatpush1.bf16.msra.mxu0 %v2303_v43  ;;  %715 = vmatpush1.bf16.msra.mxu1 %v2305_v44 }
 0x1a4   :  { %634 = vmatprep.subr.bf16.mxu0 %v2307_v23  ;;  %716 = vmatprep.subr.bf16.mxu1 %v2309_v20 }
 0x1a7   :  { %635 = vmatpush1.bf16.msra.mxu0 %v2315_v22  ;;  %717 = vmatpush1.bf16.msra.mxu1 %v2317_v19 }
 0x1a8   :  { %636 = vmatprep.subr.bf16.mxu0 %v2319_v18  ;;  %718 = vmatprep.subr.bf16.mxu1 %v2321_v48 }
 0x1ab   :  { %637 = vmatpush1.bf16.msra.mxu0 %v2327_v45  ;;  %719 = vmatpush1.bf16.msra.mxu1 %v2329_v42 }
 0x1ac   :  { %638 = vmatprep.subr.bf16.mxu0 %v2331_v39  ;;  %720 = vmatprep.subr.bf16.mxu1 %v2333_v32 }
 0x1af   :  { %639 = vmatpush1.bf16.msra.mxu0 %v2339_v36  ;;  %721 = vmatpush1.bf16.msra.mxu1 %v2341_v35 }
 0x1b0   :  { %640 = vmatprep.subr.bf16.mxu0 %v2343_v31  ;;  %722 = vmatprep.subr.bf16.mxu1 %v2345_v15 }
 0x1b3   :  { %641 = vmatpush1.bf16.msra.mxu0 %v2351_v28  ;;  %723 = vmatpush1.bf16.msra.mxu1 %v2353_v21  ;;  %v4178_v21 = vld [vmem:[#allocation56_spill] sm:$0xff] }
 0x1b4   :  { %642 = vmatprep.subr.bf16.mxu0 %v2355_v14  ;;  %724 = vmatprep.subr.bf16.mxu1 %v2357_v5  ;;  %v4179_v14 = vld [vmem:[#allocation57_spill] sm:$0xff]  ;;  %v4180_v5 = vld [vmem:[#allocation58_spill] sm:$0xff] }
 0x1b7   :  { %643 = vmatpush1.bf16.msra.mxu0 %v2363_v10  ;;  %725 = vmatpush1.bf16.msra.mxu1 %v2365_v9  ;;  %v4181_v10 = vld [vmem:[#allocation59_spill] sm:$0xff]  ;;  %v4182_v9 = vld [vmem:[#allocation60_spill] sm:$0xff] }
 0x1b8   :  { %644 = vmatprep.subr.bf16.mxu0 %v2367_v4  ;;  %726 = vmatprep.subr.bf16.mxu1 %v2369_v59  ;;  %v4183_v4 = vld [vmem:[#allocation61_spill] sm:$0xff]  ;;  %v4184_v59 = vld [vmem:[#allocation62_spill] sm:$0xff] }
 0x1bb   :  { %645 = vmatpush1.bf16.msra.mxu0 %v2375_v63  ;;  %727 = vmatpush1.bf16.msra.mxu1 %v2377_v62  ;;  %v4185_v63 = vld [vmem:[#allocation63_spill] sm:$0xff]  ;;  %v4186_v62 = vld [vmem:[#allocation64_spill] sm:$0xff] }
 0x1bc   :  { %646 = vmatprep.subr.bf16.mxu0 %v2379_v58  ;;  %728 = vmatprep.subr.bf16.mxu1 %v4177_v3  ;;  %v4187_v58 = vld [vmem:[#allocation65_spill] sm:$0xff]  ;;  %v4188_v3 = vld [vmem:[#allocation66_spill] sm:$0xff] }
 0x1bf   :  { %647 = vmatpush1.bf16.msra.mxu0 %v4178_v21  ;;  %729 = vmatpush1.bf16.msra.mxu1 %v4179_v14  ;;  %v4189_v21 = vld [vmem:[#allocation67_spill] sm:$0xff] }
 0x1c0   :  { %648 = vmatprep.subr.bf16.mxu0 %v4180_v5  ;;  %730 = vmatprep.subr.bf16.mxu1 %v4181_v10  ;;  %v4190_v10 = vld [vmem:[#allocation9_spill] sm:$0xff] }
 0x1c3   :  { %649 = vmatpush1.bf16.msra.mxu0 %v4182_v9  ;;  %731 = vmatpush1.bf16.msra.mxu1 %v4183_v4  ;;  %v4191_v4 = vld [vmem:[#allocation11_spill] sm:$0xff] }
 0x1c4   :  { %650 = vmatprep.subr.bf16.mxu0 %v4184_v59  ;;  %732 = vmatprep.subr.bf16.mxu1 %v4185_v63  ;;  %v4192_v59 = vld [vmem:[#allocation12_spill] sm:$0xff] }
 0x1c7   :  { %651 = vmatpush1.bf16.msra.mxu0 %v4186_v62  ;;  %733 = vmatpush1.bf16.msra.mxu1 %v4187_v58 }
 0x1c8   :  { %661 = vmatprep.subr.bf16.mxu0 %v4188_v3  ;;  %743 = vmatprep.subr.bf16.mxu1 %v4189_v21 }
 0x25d   :  { %v519_v14 = vpop.f32.mrb[16].mxu0  ;;  %v2681_v5 = vpop.f32.mrb[16].mxu1 }
 0x25e   :  { %v608_v28 = vadd.f32 %v519_v14, %v4190_v10  ;;  %v521_v9 = vpop.f32.mrb[17].mxu0  ;;  %v603_v15 = vpop.f32.mrb[17].mxu1  ;;  %v4199_v14 = vld [vmem:[#allocation74_spill] sm:$0xff] }
 0x25f   :  { %v609_v31 = vadd.f32 %v521_v9, %v4191_v4  ;;  %v611_v35 = vadd.f32 %v603_v15, %v4192_v59  ;;  %v523_v63 = vpop.f32.mrb[18].mxu0  ;;  %v605_v36 = vpop.f32.mrb[18].mxu1  ;;  %v4193_v59 = vld [vmem:[#allocation68_spill] sm:$0xff]  ;;  %v4198_v9 = vld [vmem:[#allocation73_spill] sm:$0xff]  ;;  %v4200_v15 = vld [vmem:[#allocation75_spill] sm:$0xff] }
 0x260   :  { %v524_v62 = vpop.f32.mrb[19].mxu0  ;;  %v606_v32 = vpop.f32.mrb[19].mxu1  ;;  %v612_v58 = vpack.c.bf16 %v608_v28, %v608_v28  ;;  %v4195_v63 = vld [vmem:[#allocation70_spill] sm:$0xff]  ;;  %v4197_v4 = vld [vmem:[#allocation72_spill] sm:$0xff]  ;;  %v4202_v28 = vld [vmem:[#allocation77_spill] sm:$0xff] }
 0x261   :  { %v613_v39 = vpack.c.bf16 %v609_v31, %v609_v31  ;;  %v615_v3 = vpack.c.bf16 %v611_v35, %v611_v35  ;;  %v4194_v62 = vld [vmem:[#allocation69_spill] sm:$0xff]  ;;  %v4203_v31 = vld [vmem:[#allocation78_spill] sm:$0xff]  ;;  %v4204_v32 = vld [vmem:[#allocation79_spill] sm:$0xff] }
 0x262   :  { %v4205_v35 = vld [vmem:[#allocation80_spill] sm:$0xff]  ;;  %v4206_v36 = vld [vmem:[#allocation81_spill] sm:$0xff] }
 0x263   :  { %1836 = vtanh.bf16 %v613_v39  ;;  %v4207_v39 = vld [vmem:[#allocation82_spill] sm:$0xff] }
 0x264   :  { %1838 = vtanh.bf16 %v612_v58  ;;  %v4196_v58 = vld [vmem:[#allocation71_spill] sm:$0xff] }
 0x265   :  { %1840 = vtanh.bf16 %v615_v3  ;;  %v4209_v3 = vld [vmem:[#allocation84_spill] sm:$0xff] }
 0x26e   :  { %v1837_v21 = vpop.eup %1836 }
 0x26f   :  { %v1839_v42 = vpop.eup %1838  ;;  %652 = vmatprep.mubr.bf16.mxu0 %v1837_v21  ;;  %734 = vmatprep.mubr.bf16.mxu1 %v1837_v21  ;;  %v4201_v21 = vld [vmem:[#allocation76_spill] sm:$0xff] }
 0x270   :  { %653 = vmatmul.mubr.bf16.vlgmr.msra.gmra.mrb[20].mxu0 %v1839_v42  ;;  %735 = vmatmul.mubr.bf16.vlgmr.msra.gmra.mrb[20].mxu1 %v1839_v42  ;;  %v1841_v10 = vpop.eup %1840  ;;  %v4208_v42 = vld [vmem:[#allocation83_spill] sm:$0xff] }
 0x271   :  { %662 = vmatpush1.bf16.msra.mxu0 %v2423_v46  ;;  %744 = vmatpush1.bf16.msra.mxu1 %v4193_v59 }
 0x272   :  { %693 = vmatprep.mubr.bf16.mxu0 %v1841_v10  ;;  %775 = vmatprep.mubr.bf16.mxu1 %v1841_v10  ;;  %v4210_v10 = vld [vmem:[#allocation85_spill] sm:$0xff] }
 0x273   :  { %663 = vmatprep.subr.bf16.mxu0 %v4194_v62  ;;  %745 = vmatprep.subr.bf16.mxu1 %v4195_v63 }
 0x275   :  { %664 = vmatpush1.bf16.msra.mxu0 %v2437_v55  ;;  %746 = vmatpush1.bf16.msra.mxu1 %v4196_v58 }
 0x276   :  { %665 = vmatprep.subr.bf16.mxu0 %v4197_v4  ;;  %747 = vmatprep.subr.bf16.mxu1 %v4198_v9 }
 0x279   :  { %666 = vmatpush1.bf16.msra.mxu0 %v4199_v14  ;;  %748 = vmatpush1.bf16.msra.mxu1 %v4200_v15  ;;  %v4211_v15 = vld [vmem:[#allocation86_spill] sm:$0xff] }
 0x27a   :  { %667 = vmatprep.subr.bf16.mxu0 %v4201_v21  ;;  %749 = vmatprep.subr.bf16.mxu1 %v4202_v28  ;;  %v4212_v21 = vld [vmem:[#allocation87_spill] sm:$0xff]  ;;  %v4213_v28 = vld [vmem:[#allocation88_spill] sm:$0xff]  ;;  %v4240_v14 = vld [vmem:[#allocation114_spill] sm:$0xff] }
 0x27d   :  { %668 = vmatpush1.bf16.msra.mxu0 %v4203_v31  ;;  %750 = vmatpush1.bf16.msra.mxu1 %v4204_v32  ;;  %v4214_v31 = vld [vmem:[#allocation89_spill] sm:$0xff]  ;;  %v4215_v32 = vld [vmem:[#allocation90_spill] sm:$0xff] }
 0x27e   :  { %669 = vmatprep.subr.bf16.mxu0 %v4205_v35  ;;  %751 = vmatprep.subr.bf16.mxu1 %v4206_v36  ;;  %v4216_v35 = vld [vmem:[#allocation91_spill] sm:$0xff]  ;;  %v4217_v36 = vld [vmem:[#allocation92_spill] sm:$0xff] }
 0x281   :  { %670 = vmatpush1.bf16.msra.mxu0 %v4207_v39  ;;  %752 = vmatpush1.bf16.msra.mxu1 %v4208_v42  ;;  %v4218_v39 = vld [vmem:[#allocation93_spill] sm:$0xff]  ;;  %v4219_v42 = vld [vmem:[#allocation94_spill] sm:$0xff] }
 0x282   :  { %671 = vmatprep.subr.bf16.mxu0 %v4209_v3  ;;  %753 = vmatprep.subr.bf16.mxu1 %v4210_v10  ;;  %v4220_v3 = vld [vmem:[#allocation95_spill] sm:$0xff]  ;;  %v4221_v10 = vld [vmem:[#allocation96_spill] sm:$0xff] }
 0x285   :  { %672 = vmatpush1.bf16.msra.mxu0 %v4211_v15  ;;  %754 = vmatpush1.bf16.msra.mxu1 %v4212_v21  ;;  %v4222_v15 = vld [vmem:[#allocation97_spill] sm:$0xff]  ;;  %v4223_v21 = vld [vmem:[#allocation98_spill] sm:$0xff] }
 0x286   :  { %673 = vmatprep.subr.bf16.mxu0 %v4213_v28  ;;  %755 = vmatprep.subr.bf16.mxu1 %v4214_v31  ;;  %v4224_v28 = vld [vmem:[#allocation99_spill] sm:$0xff]  ;;  %v4225_v31 = vld [vmem:[#allocation100_spill] sm:$0xff] }
 0x289   :  { %674 = vmatpush1.bf16.msra.mxu0 %v4215_v32  ;;  %756 = vmatpush1.bf16.msra.mxu1 %v4216_v35  ;;  %v4226_v32 = vld [vmem:[#allocation101_spill] sm:$0xff]  ;;  %v4227_v35 = vld [vmem:[#allocation102_spill] sm:$0xff] }
 0x28a   :  { %675 = vmatprep.subr.bf16.mxu0 %v4217_v36  ;;  %757 = vmatprep.subr.bf16.mxu1 %v4218_v39  ;;  %v4228_v36 = vld [vmem:[#allocation103_spill] sm:$0xff]  ;;  %v4229_v39 = vld [vmem:[#allocation104_spill] sm:$0xff] }
 0x28d   :  { %676 = vmatpush1.bf16.msra.mxu0 %v4219_v42  ;;  %758 = vmatpush1.bf16.msra.mxu1 %v4220_v3  ;;  %v4230_v42 = vld [vmem:[#allocation105_spill] sm:$0xff]  ;;  %v4231_v3 = vld [vmem:[#allocation106_spill] sm:$0xff] }
 0x28e   :  { %677 = vmatprep.subr.bf16.mxu0 %v4221_v10  ;;  %759 = vmatprep.subr.bf16.mxu1 %v4222_v15  ;;  %v4232_v10 = vld [vmem:[#allocation107_spill] sm:$0xff]  ;;  %v4233_v15 = vld [vmem:[#allocation108_spill] sm:$0xff] }
 0x291   :  { %678 = vmatpush1.bf16.msra.mxu0 %v4223_v21  ;;  %760 = vmatpush1.bf16.msra.mxu1 %v4224_v28  ;;  %v4234_v21 = vld [vmem:[#allocation109_spill] sm:$0xff]  ;;  %v4235_v28 = vld [vmem:[#allocation10_spill] sm:$0xff] }
 0x292   :  { %679 = vmatprep.subr.bf16.mxu0 %v4225_v31  ;;  %761 = vmatprep.subr.bf16.mxu1 %v4226_v32  ;;  %v610_v31 = vadd.f32 %v2681_v5, %v4235_v28  ;;  %v4236_v32 = vld [vmem:[#allocation110_spill] sm:$0xff]  ;;  %v4245_v28 = vld [vmem:[#allocation119_spill] sm:$0xff] }
 0x293   :  { %v4244_v5 = vld [vmem:[#allocation118_spill] sm:$0xff] }
 0x295   :  { %680 = vmatpush1.bf16.msra.mxu0 %v4227_v35  ;;  %762 = vmatpush1.bf16.msra.mxu1 %v4228_v36  ;;  %v4237_v35 = vld [vmem:[#allocation111_spill] sm:$0xff]  ;;  %v4238_v36 = vld [vmem:[#allocation112_spill] sm:$0xff] }
 0x296   :  { %681 = vmatprep.subr.bf16.mxu0 %v4229_v39  ;;  %763 = vmatprep.subr.bf16.mxu1 %v4230_v42  ;;  %v4239_v39 = vld [vmem:[#allocation113_spill] sm:$0xff]  ;;  %v614_v42 = vpack.c.bf16 %v610_v31, %v610_v31 }
 0x298   :  { %1842 = vtanh.bf16 %v614_v42 }
 0x299   :  { %682 = vmatpush1.bf16.msra.mxu0 %v4231_v3  ;;  %764 = vmatpush1.bf16.msra.mxu1 %v4232_v10  ;;  %v4241_v3 = vld [vmem:[#allocation115_spill] sm:$0xff]  ;;  %v4242_v10 = vld [vmem:[#allocation116_spill] sm:$0xff] }
 0x29a   :  { %683 = vmatprep.subr.bf16.mxu0 %v4233_v15  ;;  %765 = vmatprep.subr.bf16.mxu1 %v4234_v21  ;;  %v4243_v15 = vld [vmem:[#allocation117_spill] sm:$0xff] }
 0x29d   :  { %684 = vmatpush1.bf16.msra.mxu0 %v4236_v32  ;;  %766 = vmatpush1.bf16.msra.mxu1 %v4237_v35 }
 0x29e   :  { %685 = vmatprep.subr.bf16.mxu0 %v4238_v36  ;;  %767 = vmatprep.subr.bf16.mxu1 %v4239_v39 }
 0x2a1   :  { %686 = vmatpush1.bf16.msra.mxu0 %v4240_v14  ;;  %768 = vmatpush1.bf16.msra.mxu1 %v4241_v3 }
 0x2a2   :  { %687 = vmatprep.subr.bf16.mxu0 %v4242_v10  ;;  %769 = vmatprep.subr.bf16.mxu1 %v4243_v15 }
 0x2a3   :  { %v1843_v31 = vpop.eup %1842 }
 0x2a5   :  { %688 = vmatpush1.bf16.msra.mxu0 %v2583_v50  ;;  %770 = vmatpush1.bf16.msra.mxu1 %v4244_v5 }
 0x2a6   :  { %689 = vmatprep.subr.bf16.mxu0 %v4245_v28  ;;  %771 = vmatprep.subr.bf16.mxu1 %v2589_v13 }
 0x2a9   :  { %690 = vmatpush1.bf16.msra.mxu0 %v2595_v51  ;;  %772 = vmatpush1.bf16.msra.mxu1 %v2597_v40 }
 0x2aa   :  { %691 = vmatprep.subr.bf16.mxu0 %v2599_v0  ;;  %773 = vmatprep.subr.bf16.mxu1 %v2601_v47 }
 0x2ad   :  { %692 = vmatpush1.bf16.msra.mxu0 %v2607_v54  ;;  %774 = vmatpush1.bf16.msra.mxu1 %v2609_v41 }
 0x2ae   :  { %796 = vmatprep.subr.bf16.mxu0 %v2225_v49  ;;  %878 = vmatprep.subr.bf16.mxu1 %v2227_v52  ;;  %v4246_v49 = vld [vmem:[#allocation37_spill] sm:$0xff]  ;;  %v4247_v52 = vld [vmem:[#allocation38_spill] sm:$0xff] }
 0x2b0   :  { %694 = vmatmul.mubr.bf16.vlgmr.msra.gmra.mrb[20].mxu0 %v1843_v31  ;;  %776 = vmatmul.mubr.bf16.vlgmr.msra.gmra.mrb[20].mxu1 %v1843_v31 }
 0x2b1   :  { %797 = vmatpush1.bf16.msra.mxu0 %v2229_v24  ;;  %879 = vmatpush1.bf16.msra.mxu1 %v2233_v25  ;;  %v4248_v24 = vld [vmem:[#allocation39_spill] sm:$0xff]  ;;  %v4249_v25 = vld [vmem:[#allocation40_spill] sm:$0xff] }
 0x2b2   :  { %798 = vmatprep.subr.bf16.mxu0 %v2235_v26  ;;  %880 = vmatprep.subr.bf16.mxu1 %v2237_v27  ;;  %v4257_v26 = vld [vmem:[#allocation48_spill] sm:$0xff]  ;;  %v4258_v27 = vld [vmem:[#allocation49_spill] sm:$0xff] }
 0x2b5   :  { %799 = vmatpush1.bf16.msra.mxu0 %v2243_v53  ;;  %881 = vmatpush1.bf16.msra.mxu1 %v2245_v56  ;;  %v4259_v53 = vld [vmem:[#allocation50_spill] sm:$0xff]  ;;  %v4260_v56 = vld [vmem:[#allocation51_spill] sm:$0xff] }
 0x2b6   :  { %800 = vmatprep.subr.bf16.mxu0 %v2247_v57  ;;  %882 = vmatprep.subr.bf16.mxu1 %v2249_v60  ;;  %v4261_v57 = vld [vmem:[#allocation52_spill] sm:$0xff]  ;;  %v4262_v60 = vld [vmem:[#allocation53_spill] sm:$0xff] }
 0x2b9   :  { %801 = vmatpush1.bf16.msra.mxu0 %v2255_v61  ;;  %883 = vmatpush1.bf16.msra.mxu1 %v2257_v1  ;;  %v4263_v61 = vld [vmem:[#allocation54_spill] sm:$0xff]  ;;  %v4264_v1 = vld [vmem:[#allocation55_spill] sm:$0xff] }
 0x2ba   :  { %802 = vmatprep.subr.bf16.mxu0 %v2259_v2  ;;  %884 = vmatprep.subr.bf16.mxu1 %v2261_v6  ;;  %v4265_v2 = vld [vmem:[#allocation56_spill] sm:$0xff]  ;;  %v4266_v6 = vld [vmem:[#allocation57_spill] sm:$0xff] }
 0x2bd   :  { %803 = vmatpush1.bf16.msra.mxu0 %v2267_v7  ;;  %885 = vmatpush1.bf16.msra.mxu1 %v2269_v8  ;;  %v4267_v7 = vld [vmem:[#allocation58_spill] sm:$0xff]  ;;  %v4268_v8 = vld [vmem:[#allocation59_spill] sm:$0xff] }
 0x2be   :  { %804 = vmatprep.subr.bf16.mxu0 %v2271_v11  ;;  %886 = vmatprep.subr.bf16.mxu1 %v2273_v12  ;;  %v4269_v11 = vld [vmem:[#allocation60_spill] sm:$0xff]  ;;  %v4270_v12 = vld [vmem:[#allocation61_spill] sm:$0xff] }
 0x2c1   :  { %805 = vmatpush1.bf16.msra.mxu0 %v2279_v16  ;;  %887 = vmatpush1.bf16.msra.mxu1 %v2281_v17  ;;  %v4271_v16 = vld [vmem:[#allocation62_spill] sm:$0xff]  ;;  %v4272_v17 = vld [vmem:[#allocation63_spill] sm:$0xff] }
 0x2c2   :  { %806 = vmatprep.subr.bf16.mxu0 %v2283_v29  ;;  %888 = vmatprep.subr.bf16.mxu1 %v2285_v30  ;;  %v4273_v29 = vld [vmem:[#allocation64_spill] sm:$0xff]  ;;  %v4274_v30 = vld [vmem:[#allocation65_spill] sm:$0xff] }
 0x2c5   :  { %807 = vmatpush1.bf16.msra.mxu0 %v2291_v33  ;;  %889 = vmatpush1.bf16.msra.mxu1 %v2293_v34  ;;  %v4275_v33 = vld [vmem:[#allocation66_spill] sm:$0xff]  ;;  %v4276_v34 = vld [vmem:[#allocation67_spill] sm:$0xff] }
 0x2c6   :  { %808 = vmatprep.subr.bf16.mxu0 %v2295_v37  ;;  %890 = vmatprep.subr.bf16.mxu1 %v2297_v38 }
 0x2c9   :  { %809 = vmatpush1.bf16.msra.mxu0 %v2303_v43  ;;  %891 = vmatpush1.bf16.msra.mxu1 %v2305_v44  ;;  %v4277_v43 = vld [vmem:[#allocation13_spill] sm:$0xff] }
 0x2ca   :  { %810 = vmatprep.subr.bf16.mxu0 %v2307_v23  ;;  %892 = vmatprep.subr.bf16.mxu1 %v2309_v20  ;;  %v4250_v23 = vld [vmem:[#allocation41_spill] sm:$0xff]  ;;  %v4251_v20 = vld [vmem:[#allocation42_spill] sm:$0xff] }
 0x2cd   :  { %811 = vmatpush1.bf16.msra.mxu0 %v2315_v22  ;;  %893 = vmatpush1.bf16.msra.mxu1 %v2317_v19  ;;  %v4252_v22 = vld [vmem:[#allocation43_spill] sm:$0xff]  ;;  %v4253_v19 = vld [vmem:[#allocation44_spill] sm:$0xff] }
 0x2ce   :  { %812 = vmatprep.subr.bf16.mxu0 %v2319_v18  ;;  %894 = vmatprep.subr.bf16.mxu1 %v2321_v48  ;;  %v4254_v18 = vld [vmem:[#allocation45_spill] sm:$0xff]  ;;  %v4255_v48 = vld [vmem:[#allocation46_spill] sm:$0xff] }
 0x2d1   :  { %813 = vmatpush1.bf16.msra.mxu0 %v2327_v45  ;;  %895 = vmatpush1.bf16.msra.mxu1 %v4246_v49  ;;  %v4256_v45 = vld [vmem:[#allocation47_spill] sm:$0xff] }
 0x2d2   :  { %814 = vmatprep.subr.bf16.mxu0 %v4247_v52  ;;  %896 = vmatprep.subr.bf16.mxu1 %v4248_v24  ;;  %v4278_v49 = vld [vmem:[#allocation15_spill] sm:$0xff]  ;;  %v4279_v24 = vld [vmem:[#allocation16_spill] sm:$0xff] }
 0x2d5   :  { %815 = vmatpush1.bf16.msra.mxu0 %v4249_v25  ;;  %897 = vmatpush1.bf16.msra.mxu1 %v4250_v23 }
 0x2d6   :  { %816 = vmatprep.subr.bf16.mxu0 %v4251_v20  ;;  %898 = vmatprep.subr.bf16.mxu1 %v4252_v22 }
 0x2d9   :  { %817 = vmatpush1.bf16.msra.mxu0 %v4253_v19  ;;  %899 = vmatpush1.bf16.msra.mxu1 %v4254_v18 }
 0x2da   :  { %818 = vmatprep.subr.bf16.mxu0 %v4255_v48  ;;  %900 = vmatprep.subr.bf16.mxu1 %v4256_v45 }
 0x2dd   :  { %819 = vmatpush1.bf16.msra.mxu0 %v4257_v26  ;;  %901 = vmatpush1.bf16.msra.mxu1 %v4258_v27 }
 0x2de   :  { %820 = vmatprep.subr.bf16.mxu0 %v4259_v53  ;;  %902 = vmatprep.subr.bf16.mxu1 %v4260_v56  ;;  %v4280_v56 = vld [vmem:[#allocation74_spill] sm:$0xff] }
 0x2e1   :  { %821 = vmatpush1.bf16.msra.mxu0 %v4261_v57  ;;  %903 = vmatpush1.bf16.msra.mxu1 %v4262_v60  ;;  %v4281_v57 = vld [vmem:[#allocation75_spill] sm:$0xff]  ;;  %v4284_v60 = vld [vmem:[#allocation78_spill] sm:$0xff] }
 0x2e2   :  { %822 = vmatprep.subr.bf16.mxu0 %v4263_v61  ;;  %904 = vmatprep.subr.bf16.mxu1 %v4264_v1  ;;  %v4291_v61 = vld [vmem:[#allocation85_spill] sm:$0xff]  ;;  %v4292_v1 = vld [vmem:[#allocation86_spill] sm:$0xff] }
 0x2e5   :  { %823 = vmatpush1.bf16.msra.mxu0 %v4265_v2  ;;  %905 = vmatpush1.bf16.msra.mxu1 %v4266_v6  ;;  %v4293_v2 = vld [vmem:[#allocation87_spill] sm:$0xff]  ;;  %v4294_v6 = vld [vmem:[#allocation88_spill] sm:$0xff] }
 0x2e6   :  { %824 = vmatprep.subr.bf16.mxu0 %v4267_v7  ;;  %906 = vmatprep.subr.bf16.mxu1 %v4268_v8  ;;  %v4295_v7 = vld [vmem:[#allocation89_spill] sm:$0xff]  ;;  %v4296_v8 = vld [vmem:[#allocation90_spill] sm:$0xff] }
 0x2e9   :  { %825 = vmatpush1.bf16.msra.mxu0 %v4269_v11  ;;  %907 = vmatpush1.bf16.msra.mxu1 %v4270_v12  ;;  %v4297_v11 = vld [vmem:[#allocation91_spill] sm:$0xff]  ;;  %v4298_v12 = vld [vmem:[#allocation92_spill] sm:$0xff] }
 0x2ea   :  { %826 = vmatprep.subr.bf16.mxu0 %v4271_v16  ;;  %908 = vmatprep.subr.bf16.mxu1 %v4272_v17  ;;  %v4299_v16 = vld [vmem:[#allocation93_spill] sm:$0xff]  ;;  %v4300_v17 = vld [vmem:[#allocation94_spill] sm:$0xff] }
 0x2ed   :  { %827 = vmatpush1.bf16.msra.mxu0 %v4273_v29  ;;  %909 = vmatpush1.bf16.msra.mxu1 %v4274_v30  ;;  %v4301_v29 = vld [vmem:[#allocation95_spill] sm:$0xff]  ;;  %v4302_v30 = vld [vmem:[#allocation96_spill] sm:$0xff] }
 0x2ee   :  { %837 = vmatprep.subr.bf16.mxu0 %v4275_v33  ;;  %919 = vmatprep.subr.bf16.mxu1 %v4276_v34  ;;  %v4303_v33 = vld [vmem:[#allocation97_spill] sm:$0xff]  ;;  %v4304_v34 = vld [vmem:[#allocation98_spill] sm:$0xff] }
 0x383   :  { %v695_v37 = vpop.f32.mrb[20].mxu0  ;;  %v2816_v38 = vpop.f32.mrb[20].mxu1 }
 0x384   :  { %v784_v44 = vadd.f32 %v695_v37, %v4277_v43  ;;  %v697_v42 = vpop.f32.mrb[21].mxu0  ;;  %v779_v31 = vpop.f32.mrb[21].mxu1  ;;  %v4305_v37 = vld [vmem:[#allocation99_spill] sm:$0xff]  ;;  %v4306_v43 = vld [vmem:[#allocation100_spill] sm:$0xff] }
 0x385   :  { %v785_v52 = vadd.f32 %v697_v42, %v4278_v49  ;;  %v787_v25 = vadd.f32 %v779_v31, %v4279_v24  ;;  %v699_v23 = vpop.f32.mrb[22].mxu0  ;;  %v781_v20 = vpop.f32.mrb[22].mxu1  ;;  %v4308_v42 = vld [vmem:[#allocation102_spill] sm:$0xff]  ;;  %v4309_v31 = vld [vmem:[#allocation103_spill] sm:$0xff]  ;;  %v4310_v49 = vld [vmem:[#allocation104_spill] sm:$0xff] }
 0x386   :  { %v700_v22 = vpop.f32.mrb[23].mxu0  ;;  %v782_v19 = vpop.f32.mrb[23].mxu1  ;;  %v788_v18 = vpack.c.bf16 %v784_v44, %v784_v44  ;;  %v4307_v44 = vld [vmem:[#allocation101_spill] sm:$0xff]  ;;  %v4312_v24 = vld [vmem:[#allocation106_spill] sm:$0xff]  ;;  %v4314_v23 = vld [vmem:[#allocation108_spill] sm:$0xff] }
 0x387   :  { %v789_v48 = vpack.c.bf16 %v785_v52, %v785_v52  ;;  %v791_v45 = vpack.c.bf16 %v787_v25, %v787_v25  ;;  %v4311_v52 = vld [vmem:[#allocation105_spill] sm:$0xff]  ;;  %v4313_v25 = vld [vmem:[#allocation107_spill] sm:$0xff]  ;;  %v4315_v20 = vld [vmem:[#allocation14_spill] sm:$0xff] }
 0x388   :  { %v786_v22 = vadd.f32 %v2816_v38, %v4315_v20  ;;  %v2885_v38 = vld [vmem:[#allocation2 + $0x8] sm:$0xff]  ;;  %v2963_v20 = vld [vmem:[#allocation2 + $0xc0] sm:$0xff] }
 0x389   :  { %1844 = vtanh.bf16 %v789_v48  ;;  %4333 = vst [vmem:[#allocation116_spill] sm:$0xff] %v2963_v20 }
 0x38a   :  { %1846 = vtanh.bf16 %v788_v18  ;;  %v790_v19 = vpack.c.bf16 %v786_v22, %v786_v22  ;;  %v2888_v18 = vld [vmem:[#allocation2 + $0x18] sm:$0xff]  ;;  %v2966_v22 = vld [vmem:[#allocation2 + $0xd0] sm:$0xff] }
 0x38b   :  { %1848 = vtanh.bf16 %v791_v45  ;;  %v2891_v45 = vld [vmem:[#allocation2] sm:$0xff]  ;;  %4334 = vst [vmem:[#allocation117_spill] sm:$0xff] %v2966_v22 }
 0x38c   :  { %1850 = vtanh.bf16 %v790_v19  ;;  %v2969_v19 = vld [vmem:[#allocation2 + $0xe8] sm:$0xff] }
 0x38d   :  { %4335 = vst [vmem:[#allocation118_spill] sm:$0xff] %v2969_v19 }
 0x394   :  { %v1845_v26 = vpop.eup %1844 }
 0x395   :  { %v1847_v27 = vpop.eup %1846  ;;  %828 = vmatprep.mubr.bf16.mxu0 %v1845_v26  ;;  %910 = vmatprep.mubr.bf16.mxu1 %v1845_v26  ;;  %v2894_v26 = vld [vmem:[#allocation2 + $0x10] sm:$0xff] }
 0x396   :  { %829 = vmatmul.mubr.bf16.vlgmr.msra.gmra.mrb[24].mxu0 %v1847_v27  ;;  %911 = vmatmul.mubr.bf16.vlgmr.msra.gmra.mrb[24].mxu1 %v1847_v27  ;;  %v1849_v53 = vpop.eup %1848  ;;  %v2897_v27 = vld [vmem:[#allocation2 + $0x28] sm:$0xff] }
 0x397   :  { %838 = vmatpush1.bf16.msra.mxu0 %v2423_v46  ;;  %920 = vmatpush1.bf16.msra.mxu1 %v4193_v59  ;;  %v4282_v46 = vld [vmem:[#allocation76_spill] sm:$0xff]  ;;  %v4283_v59 = vld [vmem:[#allocation77_spill] sm:$0xff]  ;;  %v1851_v48 = vpop.eup %1850 }
 0x398   :  { %869 = vmatprep.mubr.bf16.mxu0 %v1849_v53  ;;  %951 = vmatprep.mubr.bf16.mxu1 %v1849_v53  ;;  %v2900_v53 = vld [vmem:[#allocation2 + $0x38] sm:$0xff] }
 0x399   :  { %839 = vmatprep.subr.bf16.mxu0 %v4194_v62  ;;  %921 = vmatprep.subr.bf16.mxu1 %v4195_v63  ;;  %v4285_v62 = vld [vmem:[#allocation79_spill] sm:$0xff]  ;;  %v4286_v63 = vld [vmem:[#allocation80_spill] sm:$0xff] }
 0x39b   :  { %840 = vmatpush1.bf16.msra.mxu0 %v2437_v55  ;;  %922 = vmatpush1.bf16.msra.mxu1 %v4196_v58  ;;  %v4287_v55 = vld [vmem:[#allocation81_spill] sm:$0xff]  ;;  %v4288_v58 = vld [vmem:[#allocation82_spill] sm:$0xff] }
 0x39c   :  { %841 = vmatprep.subr.bf16.mxu0 %v4197_v4  ;;  %923 = vmatprep.subr.bf16.mxu1 %v4198_v9  ;;  %v4289_v4 = vld [vmem:[#allocation83_spill] sm:$0xff]  ;;  %v4290_v9 = vld [vmem:[#allocation84_spill] sm:$0xff] }
 0x39f   :  { %842 = vmatpush1.bf16.msra.mxu0 %v4280_v56  ;;  %924 = vmatpush1.bf16.msra.mxu1 %v4281_v57  ;;  %v2903_v56 = vld [vmem:[#allocation2 + $0x20] sm:$0xff]  ;;  %v2906_v57 = vld [vmem:[#allocation2 + $0x30] sm:$0xff] }
 0x3a0   :  { %843 = vmatprep.subr.bf16.mxu0 %v4282_v46  ;;  %925 = vmatprep.subr.bf16.mxu1 %v4283_v59  ;;  %v2909_v46 = vld [vmem:[#allocation2 + $0x48] sm:$0xff]  ;;  %v2912_v59 = vld [vmem:[#allocation2 + $0x58] sm:$0xff] }
 0x3a1   :  { %4316 = vst [vmem:[#allocation9_spill] sm:$0xff] %v2912_v59 }
 0x3a3   :  { %844 = vmatpush1.bf16.msra.mxu0 %v4284_v60  ;;  %926 = vmatpush1.bf16.msra.mxu1 %v4285_v62  ;;  %v2915_v60 = vld [vmem:[#allocation2 + $0x40] sm:$0xff]  ;;  %v2918_v62 = vld [vmem:[#allocation2 + $0x50] sm:$0xff] }
 0x3a4   :  { %845 = vmatprep.subr.bf16.mxu0 %v4286_v63  ;;  %927 = vmatprep.subr.bf16.mxu1 %v4287_v55  ;;  %4317 = vst [vmem:[#allocation11_spill] sm:$0xff] %v2915_v60  ;;  %4318 = vst [vmem:[#allocation12_spill] sm:$0xff] %v2918_v62  ;;  %v2921_v63 = vld [vmem:[#allocation2 + $0x68] sm:$0xff]  ;;  %v2924_v55 = vld [vmem:[#allocation2 + $0x78] sm:$0xff] }
 0x3a5   :  { %4319 = vst [vmem:[#allocation68_spill] sm:$0xff] %v2921_v63  ;;  %4320 = vst [vmem:[#allocation69_spill] sm:$0xff] %v2924_v55 }
 0x3a7   :  { %846 = vmatpush1.bf16.msra.mxu0 %v4288_v58  ;;  %928 = vmatpush1.bf16.msra.mxu1 %v4289_v4  ;;  %v2927_v58 = vld [vmem:[#allocation2 + $0x60] sm:$0xff]  ;;  %v2930_v4 = vld [vmem:[#allocation2 + $0x70] sm:$0xff] }
 0x3a8   :  { %847 = vmatprep.subr.bf16.mxu0 %v4290_v9  ;;  %929 = vmatprep.subr.bf16.mxu1 %v4291_v61  ;;  %4321 = vst [vmem:[#allocation70_spill] sm:$0xff] %v2927_v58  ;;  %4322 = vst [vmem:[#allocation71_spill] sm:$0xff] %v2930_v4  ;;  %v2933_v9 = vld [vmem:[#allocation2 + $0x88] sm:$0xff]  ;;  %v2936_v61 = vld [vmem:[#allocation2 + $0x98] sm:$0xff] }
 0x3a9   :  { %4323 = vst [vmem:[#allocation72_spill] sm:$0xff] %v2933_v9  ;;  %4324 = vst [vmem:[#allocation73_spill] sm:$0xff] %v2936_v61 }
 0x3ab   :  { %848 = vmatpush1.bf16.msra.mxu0 %v4292_v1  ;;  %930 = vmatpush1.bf16.msra.mxu1 %v4293_v2  ;;  %v2939_v1 = vld [vmem:[#allocation2 + $0x80] sm:$0xff]  ;;  %v2942_v2 = vld [vmem:[#allocation2 + $0x90] sm:$0xff] }
 0x3ac   :  { %849 = vmatprep.subr.bf16.mxu0 %v4294_v6  ;;  %931 = vmatprep.subr.bf16.mxu1 %v4295_v7  ;;  %4325 = vst [vmem:[#allocation109_spill] sm:$0xff] %v2939_v1  ;;  %4326 = vst [vmem:[#allocation10_spill] sm:$0xff] %v2942_v2  ;;  %v2945_v6 = vld [vmem:[#allocation2 + $0xa8] sm:$0xff]  ;;  %v2948_v7 = vld [vmem:[#allocation2 + $0xb8] sm:$0xff] }
 0x3ad   :  { %4327 = vst [vmem:[#allocation110_spill] sm:$0xff] %v2945_v6  ;;  %4328 = vst [vmem:[#allocation111_spill] sm:$0xff] %v2948_v7 }
 0x3af   :  { %850 = vmatpush1.bf16.msra.mxu0 %v4296_v8  ;;  %932 = vmatpush1.bf16.msra.mxu1 %v4297_v11  ;;  %v2951_v8 = vld [vmem:[#allocation2 + $0xa0] sm:$0xff]  ;;  %v2954_v11 = vld [vmem:[#allocation2 + $0xb0] sm:$0xff] }
 0x3b0   :  { %851 = vmatprep.subr.bf16.mxu0 %v4298_v12  ;;  %933 = vmatprep.subr.bf16.mxu1 %v4299_v16  ;;  %4329 = vst [vmem:[#allocation112_spill] sm:$0xff] %v2951_v8  ;;  %4330 = vst [vmem:[#allocation113_spill] sm:$0xff] %v2954_v11  ;;  %v2957_v12 = vld [vmem:[#allocation2 + $0xc8] sm:$0xff]  ;;  %v2960_v16 = vld [vmem:[#allocation2 + $0xd8] sm:$0xff] }
 0x3b1   :  { %4331 = vst [vmem:[#allocation114_spill] sm:$0xff] %v2957_v12  ;;  %4332 = vst [vmem:[#allocation115_spill] sm:$0xff] %v2960_v16 }
 0x3b3   :  { %852 = vmatpush1.bf16.msra.mxu0 %v4300_v17  ;;  %934 = vmatpush1.bf16.msra.mxu1 %v4301_v29 }
 0x3b4   :  { %853 = vmatprep.subr.bf16.mxu0 %v4302_v30  ;;  %935 = vmatprep.subr.bf16.mxu1 %v4303_v33 }
 0x3b7   :  { %854 = vmatpush1.bf16.msra.mxu0 %v4304_v34  ;;  %936 = vmatpush1.bf16.msra.mxu1 %v4305_v37 }
 0x3b8   :  { %855 = vmatprep.subr.bf16.mxu0 %v4306_v43  ;;  %937 = vmatprep.subr.bf16.mxu1 %v4307_v44 }
 0x3bb   :  { %856 = vmatpush1.bf16.msra.mxu0 %v4308_v42  ;;  %938 = vmatpush1.bf16.msra.mxu1 %v4309_v31 }
 0x3bc   :  { %857 = vmatprep.subr.bf16.mxu0 %v4310_v49  ;;  %939 = vmatprep.subr.bf16.mxu1 %v4311_v52 }
 0x3bf   :  { %858 = vmatpush1.bf16.msra.mxu0 %v4312_v24  ;;  %940 = vmatpush1.bf16.msra.mxu1 %v4313_v25 }
 0x3c0   :  { %859 = vmatprep.subr.bf16.mxu0 %v4314_v23  ;;  %941 = vmatprep.subr.bf16.mxu1 %v4234_v21 }
 0x3c3   :  { %860 = vmatpush1.bf16.msra.mxu0 %v4236_v32  ;;  %942 = vmatpush1.bf16.msra.mxu1 %v4237_v35 }
 0x3c4   :  { %861 = vmatprep.subr.bf16.mxu0 %v4238_v36  ;;  %943 = vmatprep.subr.bf16.mxu1 %v4239_v39 }
 0x3c7   :  { %862 = vmatpush1.bf16.msra.mxu0 %v4240_v14  ;;  %944 = vmatpush1.bf16.msra.mxu1 %v4241_v3 }
 0x3c8   :  { %863 = vmatprep.subr.bf16.mxu0 %v4242_v10  ;;  %945 = vmatprep.subr.bf16.mxu1 %v4243_v15 }
 0x3cb   :  { %864 = vmatpush1.bf16.msra.mxu0 %v2583_v50  ;;  %946 = vmatpush1.bf16.msra.mxu1 %v4244_v5 }
 0x3cc   :  { %865 = vmatprep.subr.bf16.mxu0 %v4245_v28  ;;  %947 = vmatprep.subr.bf16.mxu1 %v2589_v13 }
 0x3cf   :  { %866 = vmatpush1.bf16.msra.mxu0 %v2595_v51  ;;  %948 = vmatpush1.bf16.msra.mxu1 %v2597_v40 }
 0x3d0   :  { %867 = vmatprep.subr.bf16.mxu0 %v2599_v0  ;;  %949 = vmatprep.subr.bf16.mxu1 %v2601_v47 }
 0x3d3   :  { %868 = vmatpush1.bf16.msra.mxu0 %v2607_v54  ;;  %950 = vmatpush1.bf16.msra.mxu1 %v2609_v41 }
 0x3d4   :  { %972 = vmatprep.subr.bf16.mxu0 %v2885_v38  ;;  %1054 = vmatprep.subr.bf16.mxu1 %v2888_v18 }
 0x3d6   :  { %870 = vmatmul.mubr.bf16.vlgmr.msra.gmra.mrb[24].mxu0 %v1851_v48  ;;  %952 = vmatmul.mubr.bf16.vlgmr.msra.gmra.mrb[24].mxu1 %v1851_v48  ;;  %v2972_v48 = vld [vmem:[#allocation2 + $0xf8] sm:$0xff] }
 0x3d7   :  { %973 = vmatpush1.bf16.msra.mxu0 %v2891_v45  ;;  %1055 = vmatpush1.bf16.msra.mxu1 %v2894_v26  ;;  %4336 = vst [vmem:[#allocation119_spill] sm:$0xff] %v2972_v48 }
 0x3d8   :  { %974 = vmatprep.subr.bf16.mxu0 %v2897_v27  ;;  %1056 = vmatprep.subr.bf16.mxu1 %v2900_v53 }
 0x3db   :  { %975 = vmatpush1.bf16.msra.mxu0 %v2903_v56  ;;  %1057 = vmatpush1.bf16.msra.mxu1 %v2906_v57 }
 0x3dc   :  { %976 = vmatprep.subr.bf16.mxu0 %v2909_v46  ;;  %1058 = vmatprep.subr.bf16.mxu1 %v2912_v59 }
 0x3df   :  { %977 = vmatpush1.bf16.msra.mxu0 %v2915_v60  ;;  %1059 = vmatpush1.bf16.msra.mxu1 %v2918_v62 }
 0x3e0   :  { %978 = vmatprep.subr.bf16.mxu0 %v2921_v63  ;;  %1060 = vmatprep.subr.bf16.mxu1 %v2924_v55 }
 0x3e3   :  { %979 = vmatpush1.bf16.msra.mxu0 %v2927_v58  ;;  %1061 = vmatpush1.bf16.msra.mxu1 %v2930_v4 }
 0x3e4   :  { %980 = vmatprep.subr.bf16.mxu0 %v2933_v9  ;;  %1062 = vmatprep.subr.bf16.mxu1 %v2936_v61 }
 0x3e7   :  { %981 = vmatpush1.bf16.msra.mxu0 %v2939_v1  ;;  %1063 = vmatpush1.bf16.msra.mxu1 %v2942_v2  ;;  %v4375_v1 = vld [vmem:[#allocation20_spill] sm:$0xff] }
 0x3e8   :  { %982 = vmatprep.subr.bf16.mxu0 %v2945_v6  ;;  %1064 = vmatprep.subr.bf16.mxu1 %v2948_v7 }
 0x3eb   :  { %983 = vmatpush1.bf16.msra.mxu0 %v2951_v8  ;;  %1065 = vmatpush1.bf16.msra.mxu1 %v2954_v11 }
 0x3ec   :  { %984 = vmatprep.subr.bf16.mxu0 %v2957_v12  ;;  %1066 = vmatprep.subr.bf16.mxu1 %v2960_v16  ;;  %v2975_v12 = vld [vmem:[#allocation2 + $0xe0] sm:$0xff]  ;;  %v2978_v16 = vld [vmem:[#allocation2 + $0xf0] sm:$0xff] }
 0x3ed   :  { %4337 = vst [vmem:[#allocation37_spill] sm:$0xff] %v2975_v12  ;;  %4338 = vst [vmem:[#allocation38_spill] sm:$0xff] %v2978_v16 }
 0x3ef   :  { %985 = vmatpush1.bf16.msra.mxu0 %v2963_v20  ;;  %1067 = vmatpush1.bf16.msra.mxu1 %v2966_v22  ;;  %v2981_v20 = vld [vmem:[#allocation2 + $0x108] sm:$0xff]  ;;  %v2984_v22 = vld [vmem:[#allocation2 + $0x118] sm:$0xff] }
 0x3f0   :  { %986 = vmatprep.subr.bf16.mxu0 %v2969_v19  ;;  %1068 = vmatprep.subr.bf16.mxu1 %v2972_v48  ;;  %4339 = vst [vmem:[#allocation39_spill] sm:$0xff] %v2981_v20  ;;  %4340 = vst [vmem:[#allocation40_spill] sm:$0xff] %v2984_v22  ;;  %v2987_v19 = vld [vmem:[#allocation2 + $0x100] sm:$0xff]  ;;  %v2990_v48 = vld [vmem:[#allocation2 + $0x110] sm:$0xff] }
 0x3f1   :  { %4341 = vst [vmem:[#allocation41_spill] sm:$0xff] %v2987_v19  ;;  %4342 = vst [vmem:[#allocation42_spill] sm:$0xff] %v2990_v48 }
 0x3f3   :  { %987 = vmatpush1.bf16.msra.mxu0 %v2975_v12  ;;  %1069 = vmatpush1.bf16.msra.mxu1 %v2978_v16  ;;  %v2993_v12 = vld [vmem:[#allocation2 + $0x128] sm:$0xff]  ;;  %v2996_v16 = vld [vmem:[#allocation2 + $0x138] sm:$0xff] }
 0x3f4   :  { %988 = vmatprep.subr.bf16.mxu0 %v2981_v20  ;;  %1070 = vmatprep.subr.bf16.mxu1 %v2984_v22  ;;  %4343 = vst [vmem:[#allocation43_spill] sm:$0xff] %v2993_v12  ;;  %4344 = vst [vmem:[#allocation44_spill] sm:$0xff] %v2996_v16  ;;  %v2999_v20 = vld [vmem:[#allocation2 + $0x120] sm:$0xff]  ;;  %v3002_v22 = vld [vmem:[#allocation2 + $0x130] sm:$0xff] }
 0x3f5   :  { %4345 = vst [vmem:[#allocation45_spill] sm:$0xff] %v2999_v20  ;;  %4346 = vst [vmem:[#allocation46_spill] sm:$0xff] %v3002_v22 }
 0x3f7   :  { %989 = vmatpush1.bf16.msra.mxu0 %v2987_v19  ;;  %1071 = vmatpush1.bf16.msra.mxu1 %v2990_v48  ;;  %v3005_v19 = vld [vmem:[#allocation2 + $0x148] sm:$0xff]  ;;  %v3008_v48 = vld [vmem:[#allocation2 + $0x158] sm:$0xff] }
 0x3f8   :  { %990 = vmatprep.subr.bf16.mxu0 %v2993_v12  ;;  %1072 = vmatprep.subr.bf16.mxu1 %v2996_v16  ;;  %4347 = vst [vmem:[#allocation47_spill] sm:$0xff] %v3005_v19  ;;  %4348 = vst [vmem:[#allocation48_spill] sm:$0xff] %v3008_v48  ;;  %v3011_v12 = vld [vmem:[#allocation2 + $0x140] sm:$0xff]  ;;  %v3014_v16 = vld [vmem:[#allocation2 + $0x150] sm:$0xff] }
 0x3f9   :  { %4349 = vst [vmem:[#allocation49_spill] sm:$0xff] %v3011_v12  ;;  %4350 = vst [vmem:[#allocation50_spill] sm:$0xff] %v3014_v16 }
 0x3fb   :  { %991 = vmatpush1.bf16.msra.mxu0 %v2999_v20  ;;  %1073 = vmatpush1.bf16.msra.mxu1 %v3002_v22  ;;  %v3017_v20 = vld [vmem:[#allocation2 + $0x168] sm:$0xff]  ;;  %v3020_v22 = vld [vmem:[#allocation2 + $0x178] sm:$0xff] }
 0x3fc   :  { %992 = vmatprep.subr.bf16.mxu0 %v3005_v19  ;;  %1074 = vmatprep.subr.bf16.mxu1 %v3008_v48  ;;  %4351 = vst [vmem:[#allocation51_spill] sm:$0xff] %v3017_v20  ;;  %4352 = vst [vmem:[#allocation52_spill] sm:$0xff] %v3020_v22  ;;  %v3023_v19 = vld [vmem:[#allocation2 + $0x160] sm:$0xff]  ;;  %v3026_v48 = vld [vmem:[#allocation2 + $0x170] sm:$0xff] }
 0x3fd   :  { %4353 = vst [vmem:[#allocation53_spill] sm:$0xff] %v3023_v19  ;;  %4354 = vst [vmem:[#allocation54_spill] sm:$0xff] %v3026_v48 }
 0x3ff   :  { %993 = vmatpush1.bf16.msra.mxu0 %v3011_v12  ;;  %1075 = vmatpush1.bf16.msra.mxu1 %v3014_v16  ;;  %v3029_v12 = vld [vmem:[#allocation2 + $0x188] sm:$0xff]  ;;  %v3032_v16 = vld [vmem:[#allocation2 + $0x198] sm:$0xff] }
 0x400   :  { %994 = vmatprep.subr.bf16.mxu0 %v3017_v20  ;;  %1076 = vmatprep.subr.bf16.mxu1 %v3020_v22  ;;  %4355 = vst [vmem:[#allocation55_spill] sm:$0xff] %v3029_v12  ;;  %4356 = vst [vmem:[#allocation56_spill] sm:$0xff] %v3032_v16  ;;  %v3035_v20 = vld [vmem:[#allocation2 + $0x180] sm:$0xff]  ;;  %v3038_v22 = vld [vmem:[#allocation2 + $0x190] sm:$0xff] }
 0x401   :  { %4357 = vst [vmem:[#allocation57_spill] sm:$0xff] %v3035_v20  ;;  %4358 = vst [vmem:[#allocation58_spill] sm:$0xff] %v3038_v22 }
 0x403   :  { %995 = vmatpush1.bf16.msra.mxu0 %v3023_v19  ;;  %1077 = vmatpush1.bf16.msra.mxu1 %v3026_v48  ;;  %v3041_v19 = vld [vmem:[#allocation2 + $0x1a8] sm:$0xff]  ;;  %v3044_v48 = vld [vmem:[#allocation2 + $0x1b8] sm:$0xff] }
 0x404   :  { %996 = vmatprep.subr.bf16.mxu0 %v3029_v12  ;;  %1078 = vmatprep.subr.bf16.mxu1 %v3032_v16  ;;  %4359 = vst [vmem:[#allocation59_spill] sm:$0xff] %v3041_v19  ;;  %4360 = vst [vmem:[#allocation60_spill] sm:$0xff] %v3044_v48  ;;  %v3047_v12 = vld [vmem:[#allocation2 + $0x1a0] sm:$0xff]  ;;  %v3050_v16 = vld [vmem:[#allocation2 + $0x1b0] sm:$0xff] }
 0x405   :  { %4361 = vst [vmem:[#allocation61_spill] sm:$0xff] %v3047_v12  ;;  %4362 = vst [vmem:[#allocation62_spill] sm:$0xff] %v3050_v16 }
 0x407   :  { %997 = vmatpush1.bf16.msra.mxu0 %v3035_v20  ;;  %1079 = vmatpush1.bf16.msra.mxu1 %v3038_v22  ;;  %v3053_v20 = vld [vmem:[#allocation2 + $0x1c8] sm:$0xff]  ;;  %v3056_v22 = vld [vmem:[#allocation2 + $0x1d8] sm:$0xff] }
 0x408   :  { %998 = vmatprep.subr.bf16.mxu0 %v3041_v19  ;;  %1080 = vmatprep.subr.bf16.mxu1 %v3044_v48  ;;  %4363 = vst [vmem:[#allocation63_spill] sm:$0xff] %v3053_v20  ;;  %4364 = vst [vmem:[#allocation64_spill] sm:$0xff] %v3056_v22  ;;  %v3059_v19 = vld [vmem:[#allocation2 + $0x1c0] sm:$0xff]  ;;  %v3062_v48 = vld [vmem:[#allocation2 + $0x1d0] sm:$0xff] }
 0x409   :  { %4365 = vst [vmem:[#allocation65_spill] sm:$0xff] %v3059_v19  ;;  %4366 = vst [vmem:[#allocation66_spill] sm:$0xff] %v3062_v48 }
 0x40b   :  { %999 = vmatpush1.bf16.msra.mxu0 %v3047_v12  ;;  %1081 = vmatpush1.bf16.msra.mxu1 %v3050_v16  ;;  %v3065_v12 = vld [vmem:[#allocation2 + $0x1e8] sm:$0xff]  ;;  %v3068_v16 = vld [vmem:[#allocation2 + $0x1f8] sm:$0xff] }
 0x40c   :  { %1000 = vmatprep.subr.bf16.mxu0 %v3053_v20  ;;  %1082 = vmatprep.subr.bf16.mxu1 %v3056_v22  ;;  %4367 = vst [vmem:[#allocation67_spill] sm:$0xff] %v3065_v12  ;;  %4368 = vst [vmem:[#allocation13_spill] sm:$0xff] %v3068_v16  ;;  %v3071_v20 = vld [vmem:[#allocation2 + $0x1e0] sm:$0xff]  ;;  %v3074_v22 = vld [vmem:[#allocation2 + $0x1f0] sm:$0xff] }
 0x40d   :  { %4369 = vst [vmem:[#allocation15_spill] sm:$0xff] %v3071_v20  ;;  %4370 = vst [vmem:[#allocation16_spill] sm:$0xff] %v3074_v22 }
 0x40f   :  { %1001 = vmatpush1.bf16.msra.mxu0 %v3059_v19  ;;  %1083 = vmatpush1.bf16.msra.mxu1 %v3062_v48  ;;  %v3077_v19 = vld [vmem:[#allocation2 + $0x208] sm:$0xff]  ;;  %v3080_v48 = vld [vmem:[#allocation2 + $0x218] sm:$0xff] }
 0x410   :  { %1002 = vmatprep.subr.bf16.mxu0 %v3065_v12  ;;  %1084 = vmatprep.subr.bf16.mxu1 %v3068_v16  ;;  %4371 = vst [vmem:[#allocation74_spill] sm:$0xff] %v3077_v19  ;;  %4372 = vst [vmem:[#allocation75_spill] sm:$0xff] %v3080_v48  ;;  %v4373_v16 = vld [vmem:[#allocation17_spill] sm:$0xff] }
 0x413   :  { %1003 = vmatpush1.bf16.msra.mxu0 %v3071_v20  ;;  %1085 = vmatpush1.bf16.msra.mxu1 %v3074_v22  ;;  %v4374_v20 = vld [vmem:[#allocation19_spill] sm:$0xff] }
 0x414   :  { %1013 = vmatprep.subr.bf16.mxu0 %v3077_v19  ;;  %1095 = vmatprep.subr.bf16.mxu1 %v3080_v48 }
 0x4a9   :  { %v871_v12 = vpop.f32.mrb[24].mxu0  ;;  %v3083_v11 = vpop.f32.mrb[24].mxu1 }
 0x4aa   :  { %v960_v8 = vadd.f32 %v871_v12, %v4373_v16  ;;  %v873_v7 = vpop.f32.mrb[25].mxu0  ;;  %v955_v6 = vpop.f32.mrb[25].mxu1  ;;  %v3124_v16 = vld [vmem:[#allocation2 + $0x260] sm:$0xff] }
 0x4ab   :  { %v961_v2 = vadd.f32 %v873_v7, %v4374_v20  ;;  %v963_v61 = vadd.f32 %v955_v6, %v4375_v1  ;;  %v875_v22 = vpop.f32.mrb[26].mxu0  ;;  %v957_v9 = vpop.f32.mrb[26].mxu1  ;;  %v3088_v7 = vld [vmem:[#allocation2 + $0x200] sm:$0xff]  ;;  %v3118_v6 = vld [vmem:[#allocation2 + $0x268] sm:$0xff]  ;;  %4376 = vst [vmem:[#allocation76_spill] sm:$0xff] %v3124_v16  ;;  %v3127_v20 = vld [vmem:[#allocation2 + $0x270] sm:$0xff] }
 0x4ac   :  { %v876_v4 = vpop.f32.mrb[27].mxu0  ;;  %v958_v58 = vpop.f32.mrb[27].mxu1  ;;  %v964_v19 = vpack.c.bf16 %v960_v8, %v960_v8  ;;  %v3091_v9 = vld [vmem:[#allocation2 + $0x210] sm:$0xff]  ;;  %v3112_v1 = vld [vmem:[#allocation2 + $0x240] sm:$0xff]  ;;  %v3121_v8 = vld [vmem:[#allocation2 + $0x278] sm:$0xff]  ;;  %4377 = vst [vmem:[#allocation77_spill] sm:$0xff] %v3127_v20 }
 0x4ad   :  { %v965_v55 = vpack.c.bf16 %v961_v2, %v961_v2  ;;  %v967_v63 = vpack.c.bf16 %v963_v61, %v963_v61  ;;  %v3103_v58 = vld [vmem:[#allocation2 + $0x230] sm:$0xff]  ;;  %v3106_v4 = vld [vmem:[#allocation2 + $0x248] sm:$0xff]  ;;  %v3109_v61 = vld [vmem:[#allocation2 + $0x258] sm:$0xff] }
 0x4ae   :  { %v3115_v2 = vld [vmem:[#allocation2 + $0x250] sm:$0xff]  ;;  %v3130_v22 = vld [vmem:[#allocation2 + $0x288] sm:$0xff] }
 0x4af   :  { %1852 = vtanh.bf16 %v965_v55  ;;  %v3094_v55 = vld [vmem:[#allocation2 + $0x228] sm:$0xff]  ;;  %4378 = vst [vmem:[#allocation78_spill] sm:$0xff] %v3130_v22 }
 0x4b0   :  { %1854 = vtanh.bf16 %v964_v19  ;;  %v3133_v19 = vld [vmem:[#allocation2 + $0x298] sm:$0xff] }
 0x4b1   :  { %1856 = vtanh.bf16 %v967_v63  ;;  %v3097_v63 = vld [vmem:[#allocation2 + $0x238] sm:$0xff]  ;;  %4379 = vst [vmem:[#allocation79_spill] sm:$0xff] %v3133_v19 }
 0x4ba   :  { %v1853_v48 = vpop.eup %1852 }
 0x4bb   :  { %v1855_v62 = vpop.eup %1854  ;;  %1004 = vmatprep.mubr.bf16.mxu0 %v1853_v48  ;;  %1086 = vmatprep.mubr.bf16.mxu1 %v1853_v48  ;;  %v3136_v48 = vld [vmem:[#allocation2 + $0x280] sm:$0xff] }
 0x4bc   :  { %1005 = vmatmul.mubr.bf16.vlgmr.msra.gmra.mrb[28].mxu0 %v1855_v62  ;;  %1087 = vmatmul.mubr.bf16.vlgmr.msra.gmra.mrb[28].mxu1 %v1855_v62  ;;  %v1857_v12 = vpop.eup %1856  ;;  %v3100_v62 = vld [vmem:[#allocation2 + $0x220] sm:$0xff]  ;;  %4380 = vst [vmem:[#allocation80_spill] sm:$0xff] %v3136_v48 }
 0x4bd   :  { %1014 = vmatpush1.bf16.msra.mxu0 %v3088_v7  ;;  %1096 = vmatpush1.bf16.msra.mxu1 %v3091_v9 }
 0x4be   :  { %1045 = vmatprep.mubr.bf16.mxu0 %v1857_v12  ;;  %1127 = vmatprep.mubr.bf16.mxu1 %v1857_v12  ;;  %v3139_v12 = vld [vmem:[#allocation2 + $0x290] sm:$0xff] }
 0x4bf   :  { %1015 = vmatprep.subr.bf16.mxu0 %v3094_v55  ;;  %1097 = vmatprep.subr.bf16.mxu1 %v3097_v63  ;;  %4381 = vst [vmem:[#allocation81_spill] sm:$0xff] %v3139_v12 }
 0x4c1   :  { %1016 = vmatpush1.bf16.msra.mxu0 %v3100_v62  ;;  %1098 = vmatpush1.bf16.msra.mxu1 %v3103_v58 }
 0x4c2   :  { %1017 = vmatprep.subr.bf16.mxu0 %v3106_v4  ;;  %1099 = vmatprep.subr.bf16.mxu1 %v3109_v61 }
 0x4c5   :  { %1018 = vmatpush1.bf16.msra.mxu0 %v3112_v1  ;;  %1100 = vmatpush1.bf16.msra.mxu1 %v3115_v2 }
 0x4c6   :  { %1019 = vmatprep.subr.bf16.mxu0 %v3118_v6  ;;  %1101 = vmatprep.subr.bf16.mxu1 %v3121_v8 }
 0x4c9   :  { %1020 = vmatpush1.bf16.msra.mxu0 %v3124_v16  ;;  %1102 = vmatpush1.bf16.msra.mxu1 %v3127_v20  ;;  %v3142_v16 = vld [vmem:[#allocation2 + $0x2a8] sm:$0xff]  ;;  %v3145_v20 = vld [vmem:[#allocation2 + $0x2b8] sm:$0xff] }
 0x4ca   :  { %1021 = vmatprep.subr.bf16.mxu0 %v3130_v22  ;;  %1103 = vmatprep.subr.bf16.mxu1 %v3133_v19  ;;  %4382 = vst [vmem:[#allocation82_spill] sm:$0xff] %v3142_v16  ;;  %4383 = vst [vmem:[#allocation83_spill] sm:$0xff] %v3145_v20  ;;  %v3148_v22 = vld [vmem:[#allocation2 + $0x2a0] sm:$0xff]  ;;  %v3151_v19 = vld [vmem:[#allocation2 + $0x2b0] sm:$0xff] }
 0x4cb   :  { %4384 = vst [vmem:[#allocation84_spill] sm:$0xff] %v3148_v22  ;;  %4385 = vst [vmem:[#allocation85_spill] sm:$0xff] %v3151_v19 }
 0x4cd   :  { %1022 = vmatpush1.bf16.msra.mxu0 %v3136_v48  ;;  %1104 = vmatpush1.bf16.msra.mxu1 %v3139_v12  ;;  %v3154_v48 = vld [vmem:[#allocation2 + $0x2c8] sm:$0xff]  ;;  %v3157_v12 = vld [vmem:[#allocation2 + $0x2d8] sm:$0xff] }
 0x4ce   :  { %1023 = vmatprep.subr.bf16.mxu0 %v3142_v16  ;;  %1105 = vmatprep.subr.bf16.mxu1 %v3145_v20  ;;  %v3160_v16 = vld [vmem:[#allocation2 + $0x2c0] sm:$0xff]  ;;  %v3163_v20 = vld [vmem:[#allocation2 + $0x2d0] sm:$0xff] }
 0x4d1   :  { %1024 = vmatpush1.bf16.msra.mxu0 %v3148_v22  ;;  %1106 = vmatpush1.bf16.msra.mxu1 %v3151_v19  ;;  %v3166_v22 = vld [vmem:[#allocation2 + $0x2e8] sm:$0xff]  ;;  %v3169_v19 = vld [vmem:[#allocation2 + $0x2f8] sm:$0xff] }
 0x4d2   :  { %1025 = vmatprep.subr.bf16.mxu0 %v3154_v48  ;;  %1107 = vmatprep.subr.bf16.mxu1 %v3157_v12 }
 0x4d5   :  { %1026 = vmatpush1.bf16.msra.mxu0 %v3160_v16  ;;  %1108 = vmatpush1.bf16.msra.mxu1 %v3163_v20 }
 0x4d6   :  { %1027 = vmatprep.subr.bf16.mxu0 %v3166_v22  ;;  %1109 = vmatprep.subr.bf16.mxu1 %v3169_v19 }
 0x4d9   :  { %1028 = vmatpush1.bf16.msra.mxu0 %v4300_v17  ;;  %1110 = vmatpush1.bf16.msra.mxu1 %v4301_v29  ;;  %v4386_v17 = vld [vmem:[#allocation18_spill] sm:$0xff] }
 0x4da   :  { %1029 = vmatprep.subr.bf16.mxu0 %v4302_v30  ;;  %1111 = vmatprep.subr.bf16.mxu1 %v4303_v33  ;;  %v962_v29 = vadd.f32 %v3083_v11, %v4386_v17  ;;  %v4405_v33 = vld [vmem:[#allocation119_spill] sm:$0xff]  ;;  %v4417_v11 = vld [vmem:[#allocation48_spill] sm:$0xff]  ;;  %v4418_v17 = vld [vmem:[#allocation49_spill] sm:$0xff] }
 0x4dc   :  { %v966_v30 = vpack.c.bf16 %v962_v29, %v962_v29  ;;  %v4419_v29 = vld [vmem:[#allocation50_spill] sm:$0xff] }
 0x4dd   :  { %1030 = vmatpush1.bf16.msra.mxu0 %v4304_v34  ;;  %1112 = vmatpush1.bf16.msra.mxu1 %v4305_v37  ;;  %v4406_v34 = vld [vmem:[#allocation37_spill] sm:$0xff]  ;;  %v4407_v37 = vld [vmem:[#allocation38_spill] sm:$0xff] }
 0x4de   :  { %1031 = vmatprep.subr.bf16.mxu0 %v4306_v43  ;;  %1113 = vmatprep.subr.bf16.mxu1 %v4307_v44  ;;  %1858 = vtanh.bf16 %v966_v30  ;;  %v4408_v43 = vld [vmem:[#allocation39_spill] sm:$0xff]  ;;  %v4409_v44 = vld [vmem:[#allocation40_spill] sm:$0xff] }
 0x4df   :  { %v4420_v30 = vld [vmem:[#allocation51_spill] sm:$0xff] }
 0x4e1   :  { %1032 = vmatpush1.bf16.msra.mxu0 %v4308_v42  ;;  %1114 = vmatpush1.bf16.msra.mxu1 %v4309_v31  ;;  %v4410_v42 = vld [vmem:[#allocation41_spill] sm:$0xff]  ;;  %v4411_v31 = vld [vmem:[#allocation42_spill] sm:$0xff] }
 0x4e2   :  { %1033 = vmatprep.subr.bf16.mxu0 %v4310_v49  ;;  %1115 = vmatprep.subr.bf16.mxu1 %v4311_v52  ;;  %v4412_v49 = vld [vmem:[#allocation43_spill] sm:$0xff]  ;;  %v4413_v52 = vld [vmem:[#allocation44_spill] sm:$0xff] }
 0x4e5   :  { %1034 = vmatpush1.bf16.msra.mxu0 %v4312_v24  ;;  %1116 = vmatpush1.bf16.msra.mxu1 %v4313_v25  ;;  %v4414_v24 = vld [vmem:[#allocation45_spill] sm:$0xff]  ;;  %v4415_v25 = vld [vmem:[#allocation46_spill] sm:$0xff] }
 0x4e6   :  { %1035 = vmatprep.subr.bf16.mxu0 %v4314_v23  ;;  %1117 = vmatprep.subr.bf16.mxu1 %v4234_v21  ;;  %v4396_v21 = vld [vmem:[#allocation110_spill] sm:$0xff]  ;;  %v4416_v23 = vld [vmem:[#allocation47_spill] sm:$0xff] }
 0x4e9   :  { %1036 = vmatpush1.bf16.msra.mxu0 %v4236_v32  ;;  %1118 = vmatpush1.bf16.msra.mxu1 %v4237_v35  ;;  %v4397_v32 = vld [vmem:[#allocation111_spill] sm:$0xff]  ;;  %v4398_v35 = vld [vmem:[#allocation112_spill] sm:$0xff] }
 0x4ea   :  { %1037 = vmatprep.subr.bf16.mxu0 %v4238_v36  ;;  %1119 = vmatprep.subr.bf16.mxu1 %v4239_v39  ;;  %v4399_v36 = vld [vmem:[#allocation113_spill] sm:$0xff]  ;;  %v4400_v39 = vld [vmem:[#allocation114_spill] sm:$0xff] }
 0x4ed   :  { %1038 = vmatpush1.bf16.msra.mxu0 %v4240_v14  ;;  %1120 = vmatpush1.bf16.msra.mxu1 %v4241_v3  ;;  %v4394_v14 = vld [vmem:[#allocation109_spill] sm:$0xff]  ;;  %v4401_v3 = vld [vmem:[#allocation115_spill] sm:$0xff] }
 0x4ee   :  { %1039 = vmatprep.subr.bf16.mxu0 %v4242_v10  ;;  %1121 = vmatprep.subr.bf16.mxu1 %v4243_v15  ;;  %v4395_v15 = vld [vmem:[#allocation10_spill] sm:$0xff]  ;;  %v4402_v10 = vld [vmem:[#allocation116_spill] sm:$0xff] }
 0x4f1   :  { %1040 = vmatpush1.bf16.msra.mxu0 %v2583_v50  ;;  %1122 = vmatpush1.bf16.msra.mxu1 %v4244_v5  ;;  %v1859_v50 = vpop.eup %1858  ;;  %v4403_v5 = vld [vmem:[#allocation117_spill] sm:$0xff] }
 0x4f2   :  { %1041 = vmatprep.subr.bf16.mxu0 %v4245_v28  ;;  %1123 = vmatprep.subr.bf16.mxu1 %v2589_v13  ;;  %v4393_v13 = vld [vmem:[#allocation73_spill] sm:$0xff]  ;;  %v4404_v28 = vld [vmem:[#allocation118_spill] sm:$0xff] }
 0x4f5   :  { %1042 = vmatpush1.bf16.msra.mxu0 %v2595_v51  ;;  %1124 = vmatpush1.bf16.msra.mxu1 %v2597_v40  ;;  %v4387_v40 = vld [vmem:[#allocation12_spill] sm:$0xff]  ;;  %v4390_v51 = vld [vmem:[#allocation70_spill] sm:$0xff] }
 0x4f6   :  { %1043 = vmatprep.subr.bf16.mxu0 %v2599_v0  ;;  %1125 = vmatprep.subr.bf16.mxu1 %v2601_v47  ;;  %v4389_v47 = vld [vmem:[#allocation69_spill] sm:$0xff]  ;;  %v4392_v0 = vld [vmem:[#allocation72_spill] sm:$0xff] }
 0x4f9   :  { %1044 = vmatpush1.bf16.msra.mxu0 %v2607_v54  ;;  %1126 = vmatpush1.bf16.msra.mxu1 %v2609_v41  ;;  %v4388_v41 = vld [vmem:[#allocation68_spill] sm:$0xff]  ;;  %v4391_v54 = vld [vmem:[#allocation71_spill] sm:$0xff] }
 0x4fa   :  { %1148 = vmatprep.subr.bf16.mxu0 %v2885_v38  ;;  %1230 = vmatprep.subr.bf16.mxu1 %v2888_v18 }
 0x4fc   :  { %1046 = vmatmul.mubr.bf16.vlgmr.msra.gmra.mrb[28].mxu0 %v1859_v50  ;;  %1128 = vmatmul.mubr.bf16.vlgmr.msra.gmra.mrb[28].mxu1 %v1859_v50  ;;  %v4421_v50 = vld [vmem:[#allocation52_spill] sm:$0xff] }
 0x4fd   :  { %1149 = vmatpush1.bf16.msra.mxu0 %v2891_v45  ;;  %1231 = vmatpush1.bf16.msra.mxu1 %v2894_v26 }
 0x4fe   :  { %1150 = vmatprep.subr.bf16.mxu0 %v2897_v27  ;;  %1232 = vmatprep.subr.bf16.mxu1 %v2900_v53 }
 0x501   :  { %1151 = vmatpush1.bf16.msra.mxu0 %v2903_v56  ;;  %1233 = vmatpush1.bf16.msra.mxu1 %v2906_v57 }
 0x502   :  { %1152 = vmatprep.subr.bf16.mxu0 %v2909_v46  ;;  %1234 = vmatprep.subr.bf16.mxu1 %v2912_v59 }
 0x505   :  { %1153 = vmatpush1.bf16.msra.mxu0 %v2915_v60  ;;  %1235 = vmatpush1.bf16.msra.mxu1 %v4387_v40 }
 0x506   :  { %1154 = vmatprep.subr.bf16.mxu0 %v4388_v41  ;;  %1236 = vmatprep.subr.bf16.mxu1 %v4389_v47 }
 0x509   :  { %1155 = vmatpush1.bf16.msra.mxu0 %v4390_v51  ;;  %1237 = vmatpush1.bf16.msra.mxu1 %v4391_v54 }
 0x50a   :  { %1156 = vmatprep.subr.bf16.mxu0 %v4392_v0  ;;  %1238 = vmatprep.subr.bf16.mxu1 %v4393_v13 }
 0x50d   :  { %1157 = vmatpush1.bf16.msra.mxu0 %v4394_v14  ;;  %1239 = vmatpush1.bf16.msra.mxu1 %v4395_v15 }
 0x50e   :  { %1158 = vmatprep.subr.bf16.mxu0 %v4396_v21  ;;  %1240 = vmatprep.subr.bf16.mxu1 %v4397_v32 }
 0x511   :  { %1159 = vmatpush1.bf16.msra.mxu0 %v4398_v35  ;;  %1241 = vmatpush1.bf16.msra.mxu1 %v4399_v36 }
 0x512   :  { %1160 = vmatprep.subr.bf16.mxu0 %v4400_v39  ;;  %1242 = vmatprep.subr.bf16.mxu1 %v4401_v3 }
 0x515   :  { %1161 = vmatpush1.bf16.msra.mxu0 %v4402_v10  ;;  %1243 = vmatpush1.bf16.msra.mxu1 %v4403_v5 }
 0x516   :  { %1162 = vmatprep.subr.bf16.mxu0 %v4404_v28  ;;  %1244 = vmatprep.subr.bf16.mxu1 %v4405_v33 }
 0x519   :  { %1163 = vmatpush1.bf16.msra.mxu0 %v4406_v34  ;;  %1245 = vmatpush1.bf16.msra.mxu1 %v4407_v37 }
 0x51a   :  { %1164 = vmatprep.subr.bf16.mxu0 %v4408_v43  ;;  %1246 = vmatprep.subr.bf16.mxu1 %v4409_v44 }
 0x51d   :  { %1165 = vmatpush1.bf16.msra.mxu0 %v4410_v42  ;;  %1247 = vmatpush1.bf16.msra.mxu1 %v4411_v31  ;;  %v4422_v31 = vld [vmem:[#allocation53_spill] sm:$0xff] }
 0x51e   :  { %1166 = vmatprep.subr.bf16.mxu0 %v4412_v49  ;;  %1248 = vmatprep.subr.bf16.mxu1 %v4413_v52  ;;  %v4423_v49 = vld [vmem:[#allocation54_spill] sm:$0xff]  ;;  %v4424_v52 = vld [vmem:[#allocation55_spill] sm:$0xff] }
 0x521   :  { %1167 = vmatpush1.bf16.msra.mxu0 %v4414_v24  ;;  %1249 = vmatpush1.bf16.msra.mxu1 %v4415_v25  ;;  %v4425_v24 = vld [vmem:[#allocation56_spill] sm:$0xff]  ;;  %v4426_v25 = vld [vmem:[#allocation57_spill] sm:$0xff] }
 0x522   :  { %1168 = vmatprep.subr.bf16.mxu0 %v4416_v23  ;;  %1250 = vmatprep.subr.bf16.mxu1 %v4417_v11  ;;  %v4427_v23 = vld [vmem:[#allocation58_spill] sm:$0xff]  ;;  %v4428_v11 = vld [vmem:[#allocation59_spill] sm:$0xff] }
 0x525   :  { %1169 = vmatpush1.bf16.msra.mxu0 %v4418_v17  ;;  %1251 = vmatpush1.bf16.msra.mxu1 %v4419_v29  ;;  %v4429_v17 = vld [vmem:[#allocation60_spill] sm:$0xff]  ;;  %v4430_v29 = vld [vmem:[#allocation61_spill] sm:$0xff] }
 0x526   :  { %1170 = vmatprep.subr.bf16.mxu0 %v4420_v30  ;;  %1252 = vmatprep.subr.bf16.mxu1 %v4421_v50  ;;  %v4431_v30 = vld [vmem:[#allocation62_spill] sm:$0xff]  ;;  %v4432_v50 = vld [vmem:[#allocation63_spill] sm:$0xff] }
 0x529   :  { %1171 = vmatpush1.bf16.msra.mxu0 %v4422_v31  ;;  %1253 = vmatpush1.bf16.msra.mxu1 %v4423_v49  ;;  %v4433_v31 = vld [vmem:[#allocation64_spill] sm:$0xff]  ;;  %v4434_v49 = vld [vmem:[#allocation65_spill] sm:$0xff] }
 0x52a   :  { %1172 = vmatprep.subr.bf16.mxu0 %v4424_v52  ;;  %1254 = vmatprep.subr.bf16.mxu1 %v4425_v24  ;;  %v4435_v52 = vld [vmem:[#allocation66_spill] sm:$0xff]  ;;  %v4436_v24 = vld [vmem:[#allocation67_spill] sm:$0xff] }
 0x52d   :  { %1173 = vmatpush1.bf16.msra.mxu0 %v4426_v25  ;;  %1255 = vmatpush1.bf16.msra.mxu1 %v4427_v23  ;;  %v4437_v25 = vld [vmem:[#allocation13_spill] sm:$0xff]  ;;  %v4438_v23 = vld [vmem:[#allocation15_spill] sm:$0xff] }
 0x52e   :  { %1174 = vmatprep.subr.bf16.mxu0 %v4428_v11  ;;  %1256 = vmatprep.subr.bf16.mxu1 %v4429_v17  ;;  %v4439_v11 = vld [vmem:[#allocation16_spill] sm:$0xff]  ;;  %v4440_v17 = vld [vmem:[#allocation74_spill] sm:$0xff] }
 0x531   :  { %1175 = vmatpush1.bf16.msra.mxu0 %v4430_v29  ;;  %1257 = vmatpush1.bf16.msra.mxu1 %v4431_v30  ;;  %v4441_v29 = vld [vmem:[#allocation75_spill] sm:$0xff] }
 0x532   :  { %1176 = vmatprep.subr.bf16.mxu0 %v4432_v50  ;;  %1258 = vmatprep.subr.bf16.mxu1 %v4433_v31  ;;  %v4442_v31 = vld [vmem:[#allocation21_spill] sm:$0xff] }
 0x535   :  { %1177 = vmatpush1.bf16.msra.mxu0 %v4434_v49  ;;  %1259 = vmatpush1.bf16.msra.mxu1 %v4435_v52  ;;  %v4443_v52 = vld [vmem:[#allocation23_spill] sm:$0xff] }
 0x536   :  { %1178 = vmatprep.subr.bf16.mxu0 %v4436_v24  ;;  %1260 = vmatprep.subr.bf16.mxu1 %v4437_v25  ;;  %v4444_v24 = vld [vmem:[#allocation24_spill] sm:$0xff] }
 0x539   :  { %1179 = vmatpush1.bf16.msra.mxu0 %v4438_v23  ;;  %1261 = vmatpush1.bf16.msra.mxu1 %v4439_v11 }
 0x53a   :  { %1189 = vmatprep.subr.bf16.mxu0 %v4440_v17  ;;  %1271 = vmatprep.subr.bf16.mxu1 %v4441_v29 }
 0x5cf   :  { %v1047_v30 = vpop.f32.mrb[28].mxu0  ;;  %v3274_v50 = vpop.f32.mrb[28].mxu1 }
 0x5d0   :  { %v1136_v42 = vadd.f32 %v1047_v30, %v4442_v31  ;;  %v1049_v49 = vpop.f32.mrb[29].mxu0  ;;  %v1131_v44 = vpop.f32.mrb[29].mxu1  ;;  %v3325_v30 = vld [vmem:[#allocation2 + $0x328] sm:$0xff] }
 0x5d1   :  { %v1137_v43 = vadd.f32 %v1049_v49, %v4443_v52  ;;  %v1139_v37 = vadd.f32 %v1131_v44, %v4444_v24  ;;  %v1051_v25 = vpop.f32.mrb[30].mxu0  ;;  %v1133_v34 = vpop.f32.mrb[30].mxu1  ;;  %v4451_v44 = vld [vmem:[#allocation82_spill] sm:$0xff]  ;;  %v4453_v49 = vld [vmem:[#allocation84_spill] sm:$0xff]  ;;  %v4454_v52 = vld [vmem:[#allocation85_spill] sm:$0xff]  ;;  %4461 = vst [vmem:[#allocation92_spill] sm:$0xff] %v3325_v30 }
 0x5d2   :  { %v1052_v23 = vpop.f32.mrb[31].mxu0  ;;  %v1134_v33 = vpop.f32.mrb[31].mxu1  ;;  %v1140_v11 = vpack.c.bf16 %v1136_v42, %v1136_v42  ;;  %v4448_v34 = vld [vmem:[#allocation79_spill] sm:$0xff]  ;;  %v3310_v25 = vld [vmem:[#allocation2 + $0x2f0] sm:$0xff] }
 0x5d3   :  { %v1141_v28 = vpack.c.bf16 %v1137_v43, %v1137_v43  ;;  %v1143_v17 = vpack.c.bf16 %v1139_v37, %v1139_v37  ;;  %v4447_v33 = vld [vmem:[#allocation78_spill] sm:$0xff]  ;;  %v4449_v37 = vld [vmem:[#allocation80_spill] sm:$0xff]  ;;  %v4450_v43 = vld [vmem:[#allocation81_spill] sm:$0xff]  ;;  %4456 = vst [vmem:[#allocation87_spill] sm:$0xff] %v3310_v25 }
 0x5d4   :  { %v4452_v42 = vld [vmem:[#allocation83_spill] sm:$0xff]  ;;  %v3313_v23 = vld [vmem:[#allocation2 + $0x308] sm:$0xff] }
 0x5d5   :  { %1860 = vtanh.bf16 %v1141_v28  ;;  %v4446_v28 = vld [vmem:[#allocation77_spill] sm:$0xff]  ;;  %v3307_v24 = vld [vmem:[#allocation2 + $0x2e0] sm:$0xff]  ;;  %4457 = vst [vmem:[#allocation88_spill] sm:$0xff] %v3313_v23 }
 0x5d6   :  { %1862 = vtanh.bf16 %v1140_v11  ;;  %4455 = vst [vmem:[#allocation86_spill] sm:$0xff] %v3307_v24  ;;  %v3316_v11 = vld [vmem:[#allocation2 + $0x318] sm:$0xff] }
 0x5d7   :  { %1864 = vtanh.bf16 %v1143_v17  ;;  %4458 = vst [vmem:[#allocation89_spill] sm:$0xff] %v3316_v11  ;;  %v3319_v17 = vld [vmem:[#allocation2 + $0x300] sm:$0xff] }
 0x5d8   :  { %4459 = vst [vmem:[#allocation90_spill] sm:$0xff] %v3319_v17 }
 0x5e0   :  { %v1861_v29 = vpop.eup %1860 }
 0x5e1   :  { %v1863_v5 = vpop.eup %1862  ;;  %1180 = vmatprep.mubr.bf16.mxu0 %v1861_v29  ;;  %1262 = vmatprep.mubr.bf16.mxu1 %v1861_v29  ;;  %v3322_v29 = vld [vmem:[#allocation2 + $0x310] sm:$0xff] }
 0x5e2   :  { %1181 = vmatmul.mubr.bf16.vlgmr.msra.gmra.mrb[32].mxu0 %v1863_v5  ;;  %1263 = vmatmul.mubr.bf16.vlgmr.msra.gmra.mrb[32].mxu1 %v1863_v5  ;;  %v1865_v31 = vpop.eup %1864  ;;  %v4445_v5 = vld [vmem:[#allocation76_spill] sm:$0xff]  ;;  %4460 = vst [vmem:[#allocation91_spill] sm:$0xff] %v3322_v29 }
 0x5e3   :  { %1190 = vmatpush1.bf16.msra.mxu0 %v3088_v7  ;;  %1272 = vmatpush1.bf16.msra.mxu1 %v3091_v9 }
 0x5e4   :  { %1221 = vmatprep.mubr.bf16.mxu0 %v1865_v31  ;;  %1303 = vmatprep.mubr.bf16.mxu1 %v1865_v31  ;;  %v3328_v31 = vld [vmem:[#allocation2 + $0x338] sm:$0xff] }
 0x5e5   :  { %1191 = vmatprep.subr.bf16.mxu0 %v3094_v55  ;;  %1273 = vmatprep.subr.bf16.mxu1 %v3097_v63  ;;  %4462 = vst [vmem:[#allocation93_spill] sm:$0xff] %v3328_v31 }
 0x5e7   :  { %1192 = vmatpush1.bf16.msra.mxu0 %v3100_v62  ;;  %1274 = vmatpush1.bf16.msra.mxu1 %v3103_v58 }
 0x5e8   :  { %1193 = vmatprep.subr.bf16.mxu0 %v3106_v4  ;;  %1275 = vmatprep.subr.bf16.mxu1 %v3109_v61 }
 0x5eb   :  { %1194 = vmatpush1.bf16.msra.mxu0 %v3112_v1  ;;  %1276 = vmatpush1.bf16.msra.mxu1 %v3115_v2 }
 0x5ec   :  { %1195 = vmatprep.subr.bf16.mxu0 %v3118_v6  ;;  %1277 = vmatprep.subr.bf16.mxu1 %v3121_v8 }
 0x5ef   :  { %1196 = vmatpush1.bf16.msra.mxu0 %v4445_v5  ;;  %1278 = vmatpush1.bf16.msra.mxu1 %v4446_v28 }
 0x5f0   :  { %1197 = vmatprep.subr.bf16.mxu0 %v4447_v33  ;;  %1279 = vmatprep.subr.bf16.mxu1 %v4448_v34 }
 0x5f3   :  { %1198 = vmatpush1.bf16.msra.mxu0 %v4449_v37  ;;  %1280 = vmatpush1.bf16.msra.mxu1 %v4450_v43 }
 0x5f4   :  { %1199 = vmatprep.subr.bf16.mxu0 %v4451_v44  ;;  %1281 = vmatprep.subr.bf16.mxu1 %v4452_v42 }
 0x5f7   :  { %1200 = vmatpush1.bf16.msra.mxu0 %v4453_v49  ;;  %1282 = vmatpush1.bf16.msra.mxu1 %v4454_v52 }
 0x5f8   :  { %1201 = vmatprep.subr.bf16.mxu0 %v3154_v48  ;;  %1283 = vmatprep.subr.bf16.mxu1 %v3157_v12 }
 0x5fb   :  { %1202 = vmatpush1.bf16.msra.mxu0 %v3160_v16  ;;  %1284 = vmatpush1.bf16.msra.mxu1 %v3163_v20 }
 0x5fc   :  { %1203 = vmatprep.subr.bf16.mxu0 %v3166_v22  ;;  %1285 = vmatprep.subr.bf16.mxu1 %v3169_v19 }
 0x5ff   :  { %1204 = vmatpush1.bf16.msra.mxu0 %v3307_v24  ;;  %1286 = vmatpush1.bf16.msra.mxu1 %v3310_v25  ;;  %v3369_v24 = vld [vmem:[#allocation2 + $0x380] sm:$0xff] }
 0x600   :  { %1205 = vmatprep.subr.bf16.mxu0 %v3313_v23  ;;  %1287 = vmatprep.subr.bf16.mxu1 %v3316_v11  ;;  %v3331_v23 = vld [vmem:[#allocation2 + $0x320] sm:$0xff]  ;;  %v3334_v11 = vld [vmem:[#allocation2 + $0x330] sm:$0xff]  ;;  %4474 = vst [vmem:[#allocation104_spill] sm:$0xff] %v3369_v24 }
 0x601   :  { %4463 = vst [vmem:[#allocation94_spill] sm:$0xff] %v3331_v23  ;;  %4464 = vst [vmem:[#allocation95_spill] sm:$0xff] %v3334_v11 }
 0x603   :  { %1206 = vmatpush1.bf16.msra.mxu0 %v3319_v17  ;;  %1288 = vmatpush1.bf16.msra.mxu1 %v3322_v29  ;;  %v3337_v17 = vld [vmem:[#allocation2 + $0x348] sm:$0xff]  ;;  %v3340_v29 = vld [vmem:[#allocation2 + $0x358] sm:$0xff] }
 0x604   :  { %1207 = vmatprep.subr.bf16.mxu0 %v3325_v30  ;;  %1289 = vmatprep.subr.bf16.mxu1 %v3328_v31  ;;  %4465 = vst [vmem:[#allocation96_spill] sm:$0xff] %v3337_v17  ;;  %4466 = vst [vmem:[#allocation97_spill] sm:$0xff] %v3340_v29  ;;  %v3343_v30 = vld [vmem:[#allocation2 + $0x340] sm:$0xff]  ;;  %v3346_v31 = vld [vmem:[#allocation2 + $0x350] sm:$0xff] }
 0x605   :  { %4467 = vst [vmem:[#allocation98_spill] sm:$0xff] %v3343_v30  ;;  %4468 = vst [vmem:[#allocation99_spill] sm:$0xff] %v3346_v31 }
 0x607   :  { %1208 = vmatpush1.bf16.msra.mxu0 %v3331_v23  ;;  %1290 = vmatpush1.bf16.msra.mxu1 %v3334_v11  ;;  %v3349_v23 = vld [vmem:[#allocation2 + $0x368] sm:$0xff]  ;;  %v3352_v11 = vld [vmem:[#allocation2 + $0x378] sm:$0xff] }
 0x608   :  { %1209 = vmatprep.subr.bf16.mxu0 %v3337_v17  ;;  %1291 = vmatprep.subr.bf16.mxu1 %v3340_v29  ;;  %4469 = vst [vmem:[#allocation100_spill] sm:$0xff] %v3349_v23  ;;  %4470 = vst [vmem:[#allocation101_spill] sm:$0xff] %v3352_v11  ;;  %v4471_v17 = vld [vmem:[#allocation22_spill] sm:$0xff]  ;;  %v3357_v29 = vld [vmem:[#allocation2 + $0x360] sm:$0xff] }
 0x609   :  { %v1138_v25 = vadd.f32 %v3274_v50, %v4471_v17  ;;  %v3372_v50 = vld [vmem:[#allocation2 + $0x390] sm:$0xff]  ;;  %v3375_v17 = vld [vmem:[#allocation2 + $0x3a8] sm:$0xff] }
 0x60a   :  { %4475 = vst [vmem:[#allocation105_spill] sm:$0xff] %v3372_v50  ;;  %4476 = vst [vmem:[#allocation106_spill] sm:$0xff] %v3375_v17 }
 0x60b   :  { %1210 = vmatpush1.bf16.msra.mxu0 %v3343_v30  ;;  %1292 = vmatpush1.bf16.msra.mxu1 %v3346_v31  ;;  %v3360_v30 = vld [vmem:[#allocation2 + $0x370] sm:$0xff]  ;;  %v3363_v31 = vld [vmem:[#allocation2 + $0x388] sm:$0xff] }
 0x60c   :  { %1211 = vmatprep.subr.bf16.mxu0 %v3349_v23  ;;  %1293 = vmatprep.subr.bf16.mxu1 %v3352_v11  ;;  %4472 = vst [vmem:[#allocation102_spill] sm:$0xff] %v3360_v30  ;;  %4473 = vst [vmem:[#allocation103_spill] sm:$0xff] %v3363_v31  ;;  %v3366_v23 = vld [vmem:[#allocation2 + $0x398] sm:$0xff]  ;;  %v1142_v11 = vpack.c.bf16 %v1138_v25, %v1138_v25  ;;  %v3384_v25 = vld [vmem:[#allocation2 + $0x3b0] sm:$0xff] }
 0x60d   :  { %4478 = vst [vmem:[#allocation108_spill] sm:$0xff] %v3384_v25 }
 0x60e   :  { %1866 = vtanh.bf16 %v1142_v11  ;;  %v3396_v11 = vld [vmem:[#allocation2 + $0x3d0] sm:$0xff] }
 0x60f   :  { %1212 = vmatpush1.bf16.msra.mxu0 %v3357_v29  ;;  %1294 = vmatpush1.bf16.msra.mxu1 %v3360_v30  ;;  %v3378_v30 = vld [vmem:[#allocation2 + $0x3b8] sm:$0xff]  ;;  %4482 = vst [vmem:[#allocation20_spill] sm:$0xff] %v3396_v11 }
 0x610   :  { %1213 = vmatprep.subr.bf16.mxu0 %v3363_v31  ;;  %1295 = vmatprep.subr.bf16.mxu1 %v3366_v23  ;;  %v3381_v31 = vld [vmem:[#allocation2 + $0x3a0] sm:$0xff] }
 0x611   :  { %4477 = vst [vmem:[#allocation107_spill] sm:$0xff] %v3381_v31 }
 0x613   :  { %1214 = vmatpush1.bf16.msra.mxu0 %v3369_v24  ;;  %1296 = vmatpush1.bf16.msra.mxu1 %v3372_v50  ;;  %v3387_v24 = vld [vmem:[#allocation2 + $0x3c8] sm:$0xff]  ;;  %v3390_v50 = vld [vmem:[#allocation2 + $0x3d8] sm:$0xff] }
 0x614   :  { %1215 = vmatprep.subr.bf16.mxu0 %v3375_v17  ;;  %1297 = vmatprep.subr.bf16.mxu1 %v3378_v30  ;;  %4479 = vst [vmem:[#allocation14_spill] sm:$0xff] %v3387_v24  ;;  %4480 = vst [vmem:[#allocation17_spill] sm:$0xff] %v3390_v50  ;;  %v3393_v17 = vld [vmem:[#allocation2 + $0x3c0] sm:$0xff] }
 0x615   :  { %4481 = vst [vmem:[#allocation19_spill] sm:$0xff] %v3393_v17 }
 0x617   :  { %1216 = vmatpush1.bf16.msra.mxu0 %v3381_v31  ;;  %1298 = vmatpush1.bf16.msra.mxu1 %v3384_v25  ;;  %v3399_v31 = vld [vmem:[#allocation2 + $0x3e8] sm:$0xff]  ;;  %v3402_v25 = vld [vmem:[#allocation2 + $0x3f8] sm:$0xff] }
 0x618   :  { %1217 = vmatprep.subr.bf16.mxu0 %v3387_v24  ;;  %1299 = vmatprep.subr.bf16.mxu1 %v3390_v50  ;;  %4483 = vst [vmem:[#allocation18_spill] sm:$0xff] %v3399_v31  ;;  %4484 = vst [vmem:[#allocation21_spill] sm:$0xff] %v3402_v25  ;;  %v3405_v24 = vld [vmem:[#allocation2 + $0x3e0] sm:$0xff]  ;;  %v3408_v50 = vld [vmem:[#allocation2 + $0x3f0] sm:$0xff] }
 0x619   :  { %4485 = vst [vmem:[#allocation23_spill] sm:$0xff] %v3405_v24  ;;  %4486 = vst [vmem:[#allocation24_spill] sm:$0xff] %v3408_v50 }
 0x61b   :  { %1218 = vmatpush1.bf16.msra.mxu0 %v3393_v17  ;;  %1300 = vmatpush1.bf16.msra.mxu1 %v3396_v11  ;;  %v1867_v11 = vpop.eup %1866 }
 0x61c   :  { %1219 = vmatprep.subr.bf16.mxu0 %v3399_v31  ;;  %1301 = vmatprep.subr.bf16.mxu1 %v3402_v25 }
 0x61f   :  { %1220 = vmatpush1.bf16.msra.mxu0 %v3405_v24  ;;  %1302 = vmatpush1.bf16.msra.mxu1 %v3408_v50 }
 0x620   :  { %1324 = vmatprep.subr.bf16.mxu0 %v2885_v38  ;;  %1406 = vmatprep.subr.bf16.mxu1 %v2888_v18 }
 0x622   :  { %1222 = vmatmul.mubr.bf16.vlgmr.msra.gmra.mrb[32].mxu0 %v1867_v11  ;;  %1304 = vmatmul.mubr.bf16.vlgmr.msra.gmra.mrb[32].mxu1 %v1867_v11  ;;  %v4487_v11 = vld [vmem:[#allocation117_spill] sm:$0xff] }
 0x623   :  { %1325 = vmatpush1.bf16.msra.mxu0 %v2891_v45  ;;  %1407 = vmatpush1.bf16.msra.mxu1 %v2894_v26 }
 0x624   :  { %1326 = vmatprep.subr.bf16.mxu0 %v2897_v27  ;;  %1408 = vmatprep.subr.bf16.mxu1 %v2900_v53 }
 0x627   :  { %1327 = vmatpush1.bf16.msra.mxu0 %v2903_v56  ;;  %1409 = vmatpush1.bf16.msra.mxu1 %v2906_v57 }
 0x628   :  { %1328 = vmatprep.subr.bf16.mxu0 %v2909_v46  ;;  %1410 = vmatprep.subr.bf16.mxu1 %v2912_v59 }
 0x62b   :  { %1329 = vmatpush1.bf16.msra.mxu0 %v2915_v60  ;;  %1411 = vmatpush1.bf16.msra.mxu1 %v4387_v40 }
 0x62c   :  { %1330 = vmatprep.subr.bf16.mxu0 %v4388_v41  ;;  %1412 = vmatprep.subr.bf16.mxu1 %v4389_v47 }
 0x62f   :  { %1331 = vmatpush1.bf16.msra.mxu0 %v4390_v51  ;;  %1413 = vmatpush1.bf16.msra.mxu1 %v4391_v54 }
 0x630   :  { %1332 = vmatprep.subr.bf16.mxu0 %v4392_v0  ;;  %1414 = vmatprep.subr.bf16.mxu1 %v4393_v13  ;;  %v4488_v13 = vld [vmem:[#allocation118_spill] sm:$0xff] }
 0x633   :  { %1333 = vmatpush1.bf16.msra.mxu0 %v4394_v14  ;;  %1415 = vmatpush1.bf16.msra.mxu1 %v4395_v15  ;;  %v4489_v14 = vld [vmem:[#allocation119_spill] sm:$0xff]  ;;  %v4490_v15 = vld [vmem:[#allocation37_spill] sm:$0xff] }
 0x634   :  { %1334 = vmatprep.subr.bf16.mxu0 %v4396_v21  ;;  %1416 = vmatprep.subr.bf16.mxu1 %v4397_v32  ;;  %v4491_v21 = vld [vmem:[#allocation38_spill] sm:$0xff]  ;;  %v4492_v32 = vld [vmem:[#allocation39_spill] sm:$0xff] }
 0x637   :  { %1335 = vmatpush1.bf16.msra.mxu0 %v4398_v35  ;;  %1417 = vmatpush1.bf16.msra.mxu1 %v4399_v36  ;;  %v4493_v35 = vld [vmem:[#allocation40_spill] sm:$0xff]  ;;  %v4494_v36 = vld [vmem:[#allocation41_spill] sm:$0xff] }
 0x638   :  { %1336 = vmatprep.subr.bf16.mxu0 %v4400_v39  ;;  %1418 = vmatprep.subr.bf16.mxu1 %v4401_v3  ;;  %v4495_v39 = vld [vmem:[#allocation42_spill] sm:$0xff]  ;;  %v4496_v3 = vld [vmem:[#allocation43_spill] sm:$0xff] }
 0x63b   :  { %1337 = vmatpush1.bf16.msra.mxu0 %v4402_v10  ;;  %1419 = vmatpush1.bf16.msra.mxu1 %v4487_v11  ;;  %v4497_v10 = vld [vmem:[#allocation44_spill] sm:$0xff]  ;;  %v4498_v11 = vld [vmem:[#allocation45_spill] sm:$0xff] }
 0x63c   :  { %1338 = vmatprep.subr.bf16.mxu0 %v4488_v13  ;;  %1420 = vmatprep.subr.bf16.mxu1 %v4489_v14  ;;  %v4499_v13 = vld [vmem:[#allocation46_spill] sm:$0xff]  ;;  %v4500_v14 = vld [vmem:[#allocation47_spill] sm:$0xff] }
 0x63f   :  { %1339 = vmatpush1.bf16.msra.mxu0 %v4490_v15  ;;  %1421 = vmatpush1.bf16.msra.mxu1 %v4491_v21  ;;  %v4501_v15 = vld [vmem:[#allocation48_spill] sm:$0xff]  ;;  %v4502_v21 = vld [vmem:[#allocation49_spill] sm:$0xff] }
 0x640   :  { %1340 = vmatprep.subr.bf16.mxu0 %v4492_v32  ;;  %1422 = vmatprep.subr.bf16.mxu1 %v4493_v35  ;;  %v4503_v32 = vld [vmem:[#allocation50_spill] sm:$0xff]  ;;  %v4504_v35 = vld [vmem:[#allocation51_spill] sm:$0xff] }
 0x643   :  { %1341 = vmatpush1.bf16.msra.mxu0 %v4494_v36  ;;  %1423 = vmatpush1.bf16.msra.mxu1 %v4495_v39  ;;  %v4505_v36 = vld [vmem:[#allocation52_spill] sm:$0xff]  ;;  %v4506_v39 = vld [vmem:[#allocation53_spill] sm:$0xff] }
 0x644   :  { %1342 = vmatprep.subr.bf16.mxu0 %v4496_v3  ;;  %1424 = vmatprep.subr.bf16.mxu1 %v4497_v10  ;;  %v4507_v3 = vld [vmem:[#allocation54_spill] sm:$0xff]  ;;  %v4508_v10 = vld [vmem:[#allocation55_spill] sm:$0xff] }
 0x647   :  { %1343 = vmatpush1.bf16.msra.mxu0 %v4498_v11  ;;  %1425 = vmatpush1.bf16.msra.mxu1 %v4499_v13  ;;  %v4509_v11 = vld [vmem:[#allocation56_spill] sm:$0xff]  ;;  %v4510_v13 = vld [vmem:[#allocation57_spill] sm:$0xff] }
 0x648   :  { %1344 = vmatprep.subr.bf16.mxu0 %v4500_v14  ;;  %1426 = vmatprep.subr.bf16.mxu1 %v4501_v15  ;;  %v4511_v14 = vld [vmem:[#allocation58_spill] sm:$0xff]  ;;  %v4512_v15 = vld [vmem:[#allocation59_spill] sm:$0xff] }
 0x64b   :  { %1345 = vmatpush1.bf16.msra.mxu0 %v4502_v21  ;;  %1427 = vmatpush1.bf16.msra.mxu1 %v4503_v32  ;;  %v4513_v21 = vld [vmem:[#allocation60_spill] sm:$0xff]  ;;  %v4514_v32 = vld [vmem:[#allocation61_spill] sm:$0xff] }
 0x64c   :  { %1346 = vmatprep.subr.bf16.mxu0 %v4504_v35  ;;  %1428 = vmatprep.subr.bf16.mxu1 %v4505_v36  ;;  %v4515_v35 = vld [vmem:[#allocation62_spill] sm:$0xff]  ;;  %v4516_v36 = vld [vmem:[#allocation63_spill] sm:$0xff] }
 0x64f   :  { %1347 = vmatpush1.bf16.msra.mxu0 %v4506_v39  ;;  %1429 = vmatpush1.bf16.msra.mxu1 %v4507_v3  ;;  %v4517_v39 = vld [vmem:[#allocation64_spill] sm:$0xff]  ;;  %v4518_v3 = vld [vmem:[#allocation65_spill] sm:$0xff] }
 0x650   :  { %1348 = vmatprep.subr.bf16.mxu0 %v4508_v10  ;;  %1430 = vmatprep.subr.bf16.mxu1 %v4509_v11  ;;  %v4519_v10 = vld [vmem:[#allocation66_spill] sm:$0xff]  ;;  %v4520_v11 = vld [vmem:[#allocation67_spill] sm:$0xff] }
 0x653   :  { %1349 = vmatpush1.bf16.msra.mxu0 %v4510_v13  ;;  %1431 = vmatpush1.bf16.msra.mxu1 %v4511_v14  ;;  %v4521_v13 = vld [vmem:[#allocation13_spill] sm:$0xff]  ;;  %v4522_v14 = vld [vmem:[#allocation15_spill] sm:$0xff] }
 0x654   :  { %1350 = vmatprep.subr.bf16.mxu0 %v4512_v15  ;;  %1432 = vmatprep.subr.bf16.mxu1 %v4513_v21  ;;  %v4523_v15 = vld [vmem:[#allocation16_spill] sm:$0xff]  ;;  %v4524_v21 = vld [vmem:[#allocation74_spill] sm:$0xff] }
 0x657   :  { %1351 = vmatpush1.bf16.msra.mxu0 %v4514_v32  ;;  %1433 = vmatpush1.bf16.msra.mxu1 %v4515_v35  ;;  %v4525_v32 = vld [vmem:[#allocation75_spill] sm:$0xff] }
 0x658   :  { %1352 = vmatprep.subr.bf16.mxu0 %v4516_v36  ;;  %1434 = vmatprep.subr.bf16.mxu1 %v4517_v39  ;;  %v4526_v39 = vld [vmem:[#allocation25_spill] sm:$0xff] }
 0x65b   :  { %1353 = vmatpush1.bf16.msra.mxu0 %v4518_v3  ;;  %1435 = vmatpush1.bf16.msra.mxu1 %v4519_v10  ;;  %v4527_v10 = vld [vmem:[#allocation27_spill] sm:$0xff] }
 0x65c   :  { %1354 = vmatprep.subr.bf16.mxu0 %v4520_v11  ;;  %1436 = vmatprep.subr.bf16.mxu1 %v4521_v13  ;;  %v4528_v11 = vld [vmem:[#allocation28_spill] sm:$0xff] }
 0x65f   :  { %1355 = vmatpush1.bf16.msra.mxu0 %v4522_v14  ;;  %1437 = vmatpush1.bf16.msra.mxu1 %v4523_v15 }
 0x660   :  { %1365 = vmatprep.subr.bf16.mxu0 %v4524_v21  ;;  %1447 = vmatprep.subr.bf16.mxu1 %v4525_v32 }
 0x6f5   :  { %v1223_v35 = vpop.f32.mrb[32].mxu0  ;;  %v3477_v36 = vpop.f32.mrb[32].mxu1 }
 0x6f6   :  { %v1312_v0 = vadd.f32 %v1223_v35, %v4526_v39  ;;  %v1225_v3 = vpop.f32.mrb[33].mxu0  ;;  %v1307_v54 = vpop.f32.mrb[33].mxu1  ;;  %v4542_v39 = vld [vmem:[#allocation99_spill] sm:$0xff] }
 0x6f7   :  { %v1313_v51 = vadd.f32 %v1225_v3, %v4527_v10  ;;  %v1315_v47 = vadd.f32 %v1307_v54, %v4528_v11  ;;  %v1227_v13 = vpop.f32.mrb[34].mxu0  ;;  %v1309_v41 = vpop.f32.mrb[34].mxu1  ;;  %v4535_v54 = vld [vmem:[#allocation92_spill] sm:$0xff]  ;;  %v4544_v10 = vld [vmem:[#allocation101_spill] sm:$0xff]  ;;  %v4545_v11 = vld [vmem:[#allocation26_spill] sm:$0xff] }
 0x6f8   :  { %v1228_v14 = vpop.f32.mrb[35].mxu0  ;;  %v1310_v40 = vpop.f32.mrb[35].mxu1  ;;  %v1316_v15 = vpack.c.bf16 %v1312_v0, %v1312_v0  ;;  %v4532_v41 = vld [vmem:[#allocation89_spill] sm:$0xff]  ;;  %v4537_v13 = vld [vmem:[#allocation94_spill] sm:$0xff]  ;;  %v4543_v3 = vld [vmem:[#allocation100_spill] sm:$0xff] }
 0x6f9   :  { %v1317_v60 = vpack.c.bf16 %v1313_v51, %v1313_v51  ;;  %v1319_v21 = vpack.c.bf16 %v1315_v47, %v1315_v47  ;;  %v4531_v40 = vld [vmem:[#allocation88_spill] sm:$0xff]  ;;  %v4533_v47 = vld [vmem:[#allocation90_spill] sm:$0xff]  ;;  %v4534_v51 = vld [vmem:[#allocation91_spill] sm:$0xff] }
 0x6fa   :  { %v4536_v0 = vld [vmem:[#allocation93_spill] sm:$0xff]  ;;  %v4538_v14 = vld [vmem:[#allocation95_spill] sm:$0xff] }
 0x6fb   :  { %1868 = vtanh.bf16 %v1317_v60  ;;  %v4530_v60 = vld [vmem:[#allocation87_spill] sm:$0xff] }
 0x6fc   :  { %1870 = vtanh.bf16 %v1316_v15  ;;  %v4539_v15 = vld [vmem:[#allocation96_spill] sm:$0xff] }
 0x6fd   :  { %1872 = vtanh.bf16 %v1319_v21  ;;  %v4540_v21 = vld [vmem:[#allocation97_spill] sm:$0xff] }
 0x706   :  { %v1869_v32 = vpop.eup %1868 }
 0x707   :  { %v1871_v59 = vpop.eup %1870  ;;  %1356 = vmatprep.mubr.bf16.mxu0 %v1869_v32  ;;  %1438 = vmatprep.mubr.bf16.mxu1 %v1869_v32  ;;  %v4541_v32 = vld [vmem:[#allocation98_spill] sm:$0xff] }
 0x708   :  { %1357 = vmatmul.mubr.bf16.vlgmr.msra.gmra.mrb[36].mxu0 %v1871_v59  ;;  %1439 = vmatmul.mubr.bf16.vlgmr.msra.gmra.mrb[36].mxu1 %v1871_v59  ;;  %v1873_v35 = vpop.eup %1872  ;;  %v4529_v59 = vld [vmem:[#allocation86_spill] sm:$0xff] }
 0x709   :  { %1366 = vmatpush1.bf16.msra.mxu0 %v3088_v7  ;;  %1448 = vmatpush1.bf16.msra.mxu1 %v3091_v9 }
 0x70a   :  { %1397 = vmatprep.mubr.bf16.mxu0 %v1873_v35  ;;  %1479 = vmatprep.mubr.bf16.mxu1 %v1873_v35  ;;  %v1314_v35 = vadd.f32 %v3477_v36, %v4545_v11  ;;  %v4552_v36 = vld [vmem:[#allocation108_spill] sm:$0xff]  ;;  %v4553_v11 = vld [vmem:[#allocation14_spill] sm:$0xff] }
 0x70b   :  { %1367 = vmatprep.subr.bf16.mxu0 %v3094_v55  ;;  %1449 = vmatprep.subr.bf16.mxu1 %v3097_v63 }
 0x70d   :  { %1368 = vmatpush1.bf16.msra.mxu0 %v3100_v62  ;;  %1450 = vmatpush1.bf16.msra.mxu1 %v3103_v58 }
 0x70e   :  { %1369 = vmatprep.subr.bf16.mxu0 %v3106_v4  ;;  %1451 = vmatprep.subr.bf16.mxu1 %v3109_v61 }
 0x711   :  { %1370 = vmatpush1.bf16.msra.mxu0 %v3112_v1  ;;  %1452 = vmatpush1.bf16.msra.mxu1 %v3115_v2 }
 0x712   :  { %1371 = vmatprep.subr.bf16.mxu0 %v3118_v6  ;;  %1453 = vmatprep.subr.bf16.mxu1 %v3121_v8 }
 0x715   :  { %1372 = vmatpush1.bf16.msra.mxu0 %v4445_v5  ;;  %1454 = vmatpush1.bf16.msra.mxu1 %v4446_v28 }
 0x716   :  { %1373 = vmatprep.subr.bf16.mxu0 %v4447_v33  ;;  %1455 = vmatprep.subr.bf16.mxu1 %v4448_v34 }
 0x719   :  { %1374 = vmatpush1.bf16.msra.mxu0 %v4449_v37  ;;  %1456 = vmatpush1.bf16.msra.mxu1 %v4450_v43 }
 0x71a   :  { %1375 = vmatprep.subr.bf16.mxu0 %v4451_v44  ;;  %1457 = vmatprep.subr.bf16.mxu1 %v4452_v42 }
 0x71d   :  { %1376 = vmatpush1.bf16.msra.mxu0 %v4453_v49  ;;  %1458 = vmatpush1.bf16.msra.mxu1 %v4454_v52 }
 0x71e   :  { %1377 = vmatprep.subr.bf16.mxu0 %v3154_v48  ;;  %1459 = vmatprep.subr.bf16.mxu1 %v3157_v12 }
 0x721   :  { %1378 = vmatpush1.bf16.msra.mxu0 %v3160_v16  ;;  %1460 = vmatpush1.bf16.msra.mxu1 %v3163_v20 }
 0x722   :  { %1379 = vmatprep.subr.bf16.mxu0 %v3166_v22  ;;  %1461 = vmatprep.subr.bf16.mxu1 %v3169_v19 }
 0x725   :  { %1380 = vmatpush1.bf16.msra.mxu0 %v4529_v59  ;;  %1462 = vmatpush1.bf16.msra.mxu1 %v4530_v60 }
 0x726   :  { %1381 = vmatprep.subr.bf16.mxu0 %v4531_v40  ;;  %1463 = vmatprep.subr.bf16.mxu1 %v4532_v41 }
 0x729   :  { %1382 = vmatpush1.bf16.msra.mxu0 %v4533_v47  ;;  %1464 = vmatpush1.bf16.msra.mxu1 %v4534_v51 }
 0x72a   :  { %1383 = vmatprep.subr.bf16.mxu0 %v4535_v54  ;;  %1465 = vmatprep.subr.bf16.mxu1 %v4536_v0 }
 0x72d   :  { %1384 = vmatpush1.bf16.msra.mxu0 %v4537_v13  ;;  %1466 = vmatpush1.bf16.msra.mxu1 %v4538_v14  ;;  %v4546_v13 = vld [vmem:[#allocation102_spill] sm:$0xff]  ;;  %v4547_v14 = vld [vmem:[#allocation103_spill] sm:$0xff] }
 0x72e   :  { %1385 = vmatprep.subr.bf16.mxu0 %v4539_v15  ;;  %1467 = vmatprep.subr.bf16.mxu1 %v4540_v21  ;;  %v1318_v21 = vpack.c.bf16 %v1314_v35, %v1314_v35  ;;  %v4548_v15 = vld [vmem:[#allocation104_spill] sm:$0xff] }
 0x72f   :  { %v4555_v35 = vld [vmem:[#allocation20_spill] sm:$0xff] }
 0x730   :  { %1874 = vtanh.bf16 %v1318_v21 }
 0x731   :  { %1386 = vmatpush1.bf16.msra.mxu0 %v4541_v32  ;;  %1468 = vmatpush1.bf16.msra.mxu1 %v4542_v39  ;;  %v4549_v32 = vld [vmem:[#allocation105_spill] sm:$0xff]  ;;  %v4550_v39 = vld [vmem:[#allocation106_spill] sm:$0xff] }
 0x732   :  { %1387 = vmatprep.subr.bf16.mxu0 %v4543_v3  ;;  %1469 = vmatprep.subr.bf16.mxu1 %v4544_v10  ;;  %v4551_v10 = vld [vmem:[#allocation107_spill] sm:$0xff] }
 0x735   :  { %1388 = vmatpush1.bf16.msra.mxu0 %v3357_v29  ;;  %1470 = vmatpush1.bf16.msra.mxu1 %v4546_v13  ;;  %v4554_v13 = vld [vmem:[#allocation17_spill] sm:$0xff] }
 0x736   :  { %1389 = vmatprep.subr.bf16.mxu0 %v4547_v14  ;;  %1471 = vmatprep.subr.bf16.mxu1 %v3366_v23 }
 0x739   :  { %1390 = vmatpush1.bf16.msra.mxu0 %v4548_v15  ;;  %1472 = vmatpush1.bf16.msra.mxu1 %v4549_v32 }
 0x73a   :  { %1391 = vmatprep.subr.bf16.mxu0 %v4550_v39  ;;  %1473 = vmatprep.subr.bf16.mxu1 %v3378_v30 }
 0x73b   :  { %v1875_v21 = vpop.eup %1874 }
 0x73d   :  { %1392 = vmatpush1.bf16.msra.mxu0 %v4551_v10  ;;  %1474 = vmatpush1.bf16.msra.mxu1 %v4552_v36 }
 0x73e   :  { %1393 = vmatprep.subr.bf16.mxu0 %v4553_v11  ;;  %1475 = vmatprep.subr.bf16.mxu1 %v4554_v13 }
 0x741   :  { %1394 = vmatpush1.bf16.msra.mxu0 %v3393_v17  ;;  %1476 = vmatpush1.bf16.msra.mxu1 %v4555_v35 }
 0x742   :  { %1395 = vmatprep.subr.bf16.mxu0 %v3399_v31  ;;  %1477 = vmatprep.subr.bf16.mxu1 %v3402_v25 }
 0x745   :  { %1396 = vmatpush1.bf16.msra.mxu0 %v3405_v24  ;;  %1478 = vmatpush1.bf16.msra.mxu1 %v3408_v50  ;;  %v4558_v50 = vld [vmem:[#allocation12_spill] sm:$0xff] }
 0x746   :  { %1500 = vmatprep.subr.bf16.mxu0 %v2885_v38  ;;  %1582 = vmatprep.subr.bf16.mxu1 %v2888_v18  ;;  %v4556_v38 = vld [vmem:[#allocation9_spill] sm:$0xff]  ;;  %v4557_v18 = vld [vmem:[#allocation11_spill] sm:$0xff] }
 0x748   :  { %1398 = vmatmul.mubr.bf16.vlgmr.msra.gmra.mrb[36].mxu0 %v1875_v21  ;;  %1480 = vmatmul.mubr.bf16.vlgmr.msra.gmra.mrb[36].mxu1 %v1875_v21  ;;  %v4559_v21 = vld [vmem:[#allocation68_spill] sm:$0xff] }
 0x749   :  { %1501 = vmatpush1.bf16.msra.mxu0 %v2891_v45  ;;  %1583 = vmatpush1.bf16.msra.mxu1 %v2894_v26  ;;  %v4560_v45 = vld [vmem:[#allocation69_spill] sm:$0xff]  ;;  %v4561_v26 = vld [vmem:[#allocation70_spill] sm:$0xff] }
 0x74a   :  { %1502 = vmatprep.subr.bf16.mxu0 %v2897_v27  ;;  %1584 = vmatprep.subr.bf16.mxu1 %v2900_v53  ;;  %v4562_v27 = vld [vmem:[#allocation71_spill] sm:$0xff]  ;;  %v4563_v53 = vld [vmem:[#allocation72_spill] sm:$0xff] }
 0x74d   :  { %1503 = vmatpush1.bf16.msra.mxu0 %v2903_v56  ;;  %1585 = vmatpush1.bf16.msra.mxu1 %v2906_v57  ;;  %v4564_v56 = vld [vmem:[#allocation73_spill] sm:$0xff] }
 0x74e   :  { %1504 = vmatprep.subr.bf16.mxu0 %v2909_v46  ;;  %1586 = vmatprep.subr.bf16.mxu1 %v4556_v38  ;;  %v4565_v57 = vld [vmem:[#allocation109_spill] sm:$0xff]  ;;  %v4566_v46 = vld [vmem:[#allocation10_spill] sm:$0xff] }
 0x74f   :  { %v4567_v38 = vld [vmem:[#allocation110_spill] sm:$0xff] }
 0x751   :  { %1505 = vmatpush1.bf16.msra.mxu0 %v4557_v18  ;;  %1587 = vmatpush1.bf16.msra.mxu1 %v4558_v50  ;;  %v4568_v18 = vld [vmem:[#allocation111_spill] sm:$0xff]  ;;  %v4569_v50 = vld [vmem:[#allocation112_spill] sm:$0xff] }
 0x752   :  { %1506 = vmatprep.subr.bf16.mxu0 %v4559_v21  ;;  %1588 = vmatprep.subr.bf16.mxu1 %v4560_v45  ;;  %v4570_v21 = vld [vmem:[#allocation113_spill] sm:$0xff]  ;;  %v4571_v45 = vld [vmem:[#allocation114_spill] sm:$0xff] }
 0x755   :  { %1507 = vmatpush1.bf16.msra.mxu0 %v4561_v26  ;;  %1589 = vmatpush1.bf16.msra.mxu1 %v4562_v27  ;;  %v4572_v26 = vld [vmem:[#allocation115_spill] sm:$0xff]  ;;  %v4573_v27 = vld [vmem:[#allocation116_spill] sm:$0xff] }
 0x756   :  { %1508 = vmatprep.subr.bf16.mxu0 %v4563_v53  ;;  %1590 = vmatprep.subr.bf16.mxu1 %v4564_v56  ;;  %v4574_v53 = vld [vmem:[#allocation117_spill] sm:$0xff]  ;;  %v4575_v56 = vld [vmem:[#allocation118_spill] sm:$0xff] }
 0x759   :  { %1509 = vmatpush1.bf16.msra.mxu0 %v4565_v57  ;;  %1591 = vmatpush1.bf16.msra.mxu1 %v4566_v46  ;;  %v4576_v57 = vld [vmem:[#allocation119_spill] sm:$0xff]  ;;  %v4577_v46 = vld [vmem:[#allocation37_spill] sm:$0xff] }
 0x75a   :  { %1510 = vmatprep.subr.bf16.mxu0 %v4567_v38  ;;  %1592 = vmatprep.subr.bf16.mxu1 %v4568_v18  ;;  %v4578_v38 = vld [vmem:[#allocation38_spill] sm:$0xff]  ;;  %v4579_v18 = vld [vmem:[#allocation39_spill] sm:$0xff] }
 0x75d   :  { %1511 = vmatpush1.bf16.msra.mxu0 %v4569_v50  ;;  %1593 = vmatpush1.bf16.msra.mxu1 %v4570_v21  ;;  %v4580_v50 = vld [vmem:[#allocation40_spill] sm:$0xff]  ;;  %v4581_v21 = vld [vmem:[#allocation41_spill] sm:$0xff] }
 0x75e   :  { %1512 = vmatprep.subr.bf16.mxu0 %v4571_v45  ;;  %1594 = vmatprep.subr.bf16.mxu1 %v4572_v26  ;;  %v4582_v45 = vld [vmem:[#allocation42_spill] sm:$0xff]  ;;  %v4583_v26 = vld [vmem:[#allocation43_spill] sm:$0xff] }
 0x761   :  { %1513 = vmatpush1.bf16.msra.mxu0 %v4573_v27  ;;  %1595 = vmatpush1.bf16.msra.mxu1 %v4574_v53  ;;  %v4584_v27 = vld [vmem:[#allocation44_spill] sm:$0xff]  ;;  %v4585_v53 = vld [vmem:[#allocation45_spill] sm:$0xff] }
 0x762   :  { %1514 = vmatprep.subr.bf16.mxu0 %v4575_v56  ;;  %1596 = vmatprep.subr.bf16.mxu1 %v4576_v57  ;;  %v4586_v56 = vld [vmem:[#allocation46_spill] sm:$0xff]  ;;  %v4587_v57 = vld [vmem:[#allocation47_spill] sm:$0xff] }
 0x765   :  { %1515 = vmatpush1.bf16.msra.mxu0 %v4577_v46  ;;  %1597 = vmatpush1.bf16.msra.mxu1 %v4578_v38  ;;  %v4588_v46 = vld [vmem:[#allocation48_spill] sm:$0xff]  ;;  %v4589_v38 = vld [vmem:[#allocation49_spill] sm:$0xff] }
 0x766   :  { %1516 = vmatprep.subr.bf16.mxu0 %v4579_v18  ;;  %1598 = vmatprep.subr.bf16.mxu1 %v4580_v50  ;;  %v4590_v18 = vld [vmem:[#allocation50_spill] sm:$0xff]  ;;  %v4591_v50 = vld [vmem:[#allocation51_spill] sm:$0xff] }
 0x769   :  { %1517 = vmatpush1.bf16.msra.mxu0 %v4581_v21  ;;  %1599 = vmatpush1.bf16.msra.mxu1 %v4582_v45  ;;  %v4592_v21 = vld [vmem:[#allocation52_spill] sm:$0xff]  ;;  %v4593_v45 = vld [vmem:[#allocation53_spill] sm:$0xff] }
 0x76a   :  { %1518 = vmatprep.subr.bf16.mxu0 %v4583_v26  ;;  %1600 = vmatprep.subr.bf16.mxu1 %v4584_v27  ;;  %v4594_v26 = vld [vmem:[#allocation54_spill] sm:$0xff]  ;;  %v4595_v27 = vld [vmem:[#allocation55_spill] sm:$0xff] }
 0x76d   :  { %1519 = vmatpush1.bf16.msra.mxu0 %v4585_v53  ;;  %1601 = vmatpush1.bf16.msra.mxu1 %v4586_v56  ;;  %v4596_v53 = vld [vmem:[#allocation56_spill] sm:$0xff]  ;;  %v4597_v56 = vld [vmem:[#allocation57_spill] sm:$0xff] }
 0x76e   :  { %1520 = vmatprep.subr.bf16.mxu0 %v4587_v57  ;;  %1602 = vmatprep.subr.bf16.mxu1 %v4588_v46  ;;  %v4598_v57 = vld [vmem:[#allocation58_spill] sm:$0xff]  ;;  %v4599_v46 = vld [vmem:[#allocation59_spill] sm:$0xff] }
 0x771   :  { %1521 = vmatpush1.bf16.msra.mxu0 %v4589_v38  ;;  %1603 = vmatpush1.bf16.msra.mxu1 %v4590_v18  ;;  %v4600_v38 = vld [vmem:[#allocation60_spill] sm:$0xff]  ;;  %v4601_v18 = vld [vmem:[#allocation61_spill] sm:$0xff] }
 0x772   :  { %1522 = vmatprep.subr.bf16.mxu0 %v4591_v50  ;;  %1604 = vmatprep.subr.bf16.mxu1 %v4592_v21  ;;  %v4602_v50 = vld [vmem:[#allocation62_spill] sm:$0xff]  ;;  %v4603_v21 = vld [vmem:[#allocation63_spill] sm:$0xff] }
 0x775   :  { %1523 = vmatpush1.bf16.msra.mxu0 %v4593_v45  ;;  %1605 = vmatpush1.bf16.msra.mxu1 %v4594_v26  ;;  %v4604_v45 = vld [vmem:[#allocation64_spill] sm:$0xff]  ;;  %v4605_v26 = vld [vmem:[#allocation65_spill] sm:$0xff] }
 0x776   :  { %1524 = vmatprep.subr.bf16.mxu0 %v4595_v27  ;;  %1606 = vmatprep.subr.bf16.mxu1 %v4596_v53  ;;  %v4606_v27 = vld [vmem:[#allocation66_spill] sm:$0xff]  ;;  %v4607_v53 = vld [vmem:[#allocation67_spill] sm:$0xff] }
 0x779   :  { %1525 = vmatpush1.bf16.msra.mxu0 %v4597_v56  ;;  %1607 = vmatpush1.bf16.msra.mxu1 %v4598_v57  ;;  %v4608_v56 = vld [vmem:[#allocation13_spill] sm:$0xff]  ;;  %v4609_v57 = vld [vmem:[#allocation15_spill] sm:$0xff] }
 0x77a   :  { %1526 = vmatprep.subr.bf16.mxu0 %v4599_v46  ;;  %1608 = vmatprep.subr.bf16.mxu1 %v4600_v38  ;;  %v4610_v46 = vld [vmem:[#allocation16_spill] sm:$0xff]  ;;  %v4611_v38 = vld [vmem:[#allocation74_spill] sm:$0xff] }
 0x77d   :  { %1527 = vmatpush1.bf16.msra.mxu0 %v4601_v18  ;;  %1609 = vmatpush1.bf16.msra.mxu1 %v4602_v50  ;;  %v4612_v18 = vld [vmem:[#allocation75_spill] sm:$0xff] }
 0x77e   :  { %1528 = vmatprep.subr.bf16.mxu0 %v4603_v21  ;;  %1610 = vmatprep.subr.bf16.mxu1 %v4604_v45  ;;  %v4613_v45 = vld [vmem:[#allocation29_spill] sm:$0xff] }
 0x781   :  { %1529 = vmatpush1.bf16.msra.mxu0 %v4605_v26  ;;  %1611 = vmatpush1.bf16.msra.mxu1 %v4606_v27  ;;  %v4614_v27 = vld [vmem:[#allocation31_spill] sm:$0xff] }
 0x782   :  { %1530 = vmatprep.subr.bf16.mxu0 %v4607_v53  ;;  %1612 = vmatprep.subr.bf16.mxu1 %v4608_v56  ;;  %v4615_v53 = vld [vmem:[#allocation32_spill] sm:$0xff] }
 0x785   :  { %1531 = vmatpush1.bf16.msra.mxu0 %v4609_v57  ;;  %1613 = vmatpush1.bf16.msra.mxu1 %v4610_v46 }
 0x786   :  { %1541 = vmatprep.subr.bf16.mxu0 %v4611_v38  ;;  %1623 = vmatprep.subr.bf16.mxu1 %v4612_v18 }
 0x81b   :  { %v1399_v50 = vpop.f32.mrb[36].mxu0  ;;  %v3612_v21 = vpop.f32.mrb[36].mxu1 }
 0x81c   :  { %v1488_v24 = vadd.f32 %v1399_v50, %v4613_v45  ;;  %v1401_v26 = vpop.f32.mrb[37].mxu0  ;;  %v1483_v25 = vpop.f32.mrb[37].mxu1 }
 0x81d   :  { %v1489_v31 = vadd.f32 %v1401_v26, %v4614_v27  ;;  %v1491_v35 = vadd.f32 %v1483_v25, %v4615_v53  ;;  %v1403_v56 = vpop.f32.mrb[38].mxu0  ;;  %v1485_v17 = vpop.f32.mrb[38].mxu1 }
 0x81e   :  { %v1404_v57 = vpop.f32.mrb[39].mxu0  ;;  %v1486_v13 = vpop.f32.mrb[39].mxu1  ;;  %v1492_v46 = vpack.c.bf16 %v1488_v24, %v1488_v24 }
 0x81f   :  { %v1493_v11 = vpack.c.bf16 %v1489_v31, %v1489_v31  ;;  %v1495_v38 = vpack.c.bf16 %v1491_v35, %v1491_v35 }
 0x821   :  { %1876 = vtanh.bf16 %v1493_v11 }
 0x822   :  { %1878 = vtanh.bf16 %v1492_v46 }
 0x823   :  { %1880 = vtanh.bf16 %v1495_v38 }
 0x82c   :  { %v1877_v18 = vpop.eup %1876 }
 0x82d   :  { %v1879_v36 = vpop.eup %1878  ;;  %1532 = vmatprep.mubr.bf16.mxu0 %v1877_v18  ;;  %1614 = vmatprep.mubr.bf16.mxu1 %v1877_v18 }
 0x82e   :  { %1533 = vmatmul.mubr.bf16.vlgmr.msra.gmra.mrb[40].mxu0 %v1879_v36  ;;  %1615 = vmatmul.mubr.bf16.vlgmr.msra.gmra.mrb[40].mxu1 %v1879_v36  ;;  %v1881_v50 = vpop.eup %1880 }
 0x82f   :  { %1542 = vmatpush1.bf16.msra.mxu0 %v3088_v7  ;;  %1624 = vmatpush1.bf16.msra.mxu1 %v3091_v9  ;;  %v4616_v7 = vld [vmem:[#allocation94_spill] sm:$0xff]  ;;  %v4617_v9 = vld [vmem:[#allocation95_spill] sm:$0xff] }
 0x830   :  { %1573 = vmatprep.mubr.bf16.mxu0 %v1881_v50  ;;  %1655 = vmatprep.mubr.bf16.mxu1 %v1881_v50 }
 0x831   :  { %1543 = vmatprep.subr.bf16.mxu0 %v3094_v55  ;;  %1625 = vmatprep.subr.bf16.mxu1 %v3097_v63  ;;  %v4618_v55 = vld [vmem:[#allocation96_spill] sm:$0xff]  ;;  %v4619_v63 = vld [vmem:[#allocation97_spill] sm:$0xff] }
 0x833   :  { %1544 = vmatpush1.bf16.msra.mxu0 %v3100_v62  ;;  %1626 = vmatpush1.bf16.msra.mxu1 %v3103_v58  ;;  %v4620_v62 = vld [vmem:[#allocation98_spill] sm:$0xff]  ;;  %v4621_v58 = vld [vmem:[#allocation99_spill] sm:$0xff] }
 0x834   :  { %1545 = vmatprep.subr.bf16.mxu0 %v3106_v4  ;;  %1627 = vmatprep.subr.bf16.mxu1 %v3109_v61  ;;  %v4622_v4 = vld [vmem:[#allocation101_spill] sm:$0xff]  ;;  %v4623_v61 = vld [vmem:[#allocation30_spill] sm:$0xff] }
 0x837   :  { %1546 = vmatpush1.bf16.msra.mxu0 %v3112_v1  ;;  %1628 = vmatpush1.bf16.msra.mxu1 %v3115_v2  ;;  %v1490_v1 = vadd.f32 %v3612_v21, %v4623_v61  ;;  %v4624_v2 = vld [vmem:[#allocation102_spill] sm:$0xff] }
 0x838   :  { %1547 = vmatprep.subr.bf16.mxu0 %v3118_v6  ;;  %1629 = vmatprep.subr.bf16.mxu1 %v3121_v8  ;;  %v4625_v8 = vld [vmem:[#allocation108_spill] sm:$0xff] }
 0x839   :  { %v1494_v6 = vpack.c.bf16 %v1490_v1, %v1490_v1 }
 0x83b   :  { %1548 = vmatpush1.bf16.msra.mxu0 %v4445_v5  ;;  %1630 = vmatpush1.bf16.msra.mxu1 %v4446_v28  ;;  %1882 = vtanh.bf16 %v1494_v6  ;;  %v4632_v5 = vld [vmem:[#allocation23_spill] sm:$0xff]  ;;  %v4633_v28 = vld [vmem:[#allocation24_spill] sm:$0xff] }
 0x83c   :  { %1549 = vmatprep.subr.bf16.mxu0 %v4447_v33  ;;  %1631 = vmatprep.subr.bf16.mxu1 %v4448_v34 }
 0x83f   :  { %1550 = vmatpush1.bf16.msra.mxu0 %v4449_v37  ;;  %1632 = vmatpush1.bf16.msra.mxu1 %v4450_v43  ;;  %v4634_v43 = vld [vmem:[#allocation33_spill] sm:$0xff] }
 0x840   :  { %1551 = vmatprep.subr.bf16.mxu0 %v4451_v44  ;;  %1633 = vmatprep.subr.bf16.mxu1 %v4452_v42  ;;  %v4635_v42 = vld [vmem:[#allocation34_spill] sm:$0xff] }
 0x843   :  { %1552 = vmatpush1.bf16.msra.mxu0 %v4453_v49  ;;  %1634 = vmatpush1.bf16.msra.mxu1 %v4454_v52 }
 0x844   :  { %1553 = vmatprep.subr.bf16.mxu0 %v3154_v48  ;;  %1635 = vmatprep.subr.bf16.mxu1 %v3157_v12  ;;  %v4630_v48 = vld [vmem:[#allocation18_spill] sm:$0xff]  ;;  %v4631_v12 = vld [vmem:[#allocation21_spill] sm:$0xff] }
 0x846   :  { %v1883_v33 = vpop.eup %1882 }
 0x847   :  { %1554 = vmatpush1.bf16.msra.mxu0 %v3160_v16  ;;  %1636 = vmatpush1.bf16.msra.mxu1 %v3163_v20  ;;  %v4626_v16 = vld [vmem:[#allocation14_spill] sm:$0xff]  ;;  %v4627_v20 = vld [vmem:[#allocation17_spill] sm:$0xff] }
 0x848   :  { %1555 = vmatprep.subr.bf16.mxu0 %v3166_v22  ;;  %1637 = vmatprep.subr.bf16.mxu1 %v3169_v19  ;;  %v4628_v22 = vld [vmem:[#allocation19_spill] sm:$0xff]  ;;  %v4629_v19 = vld [vmem:[#allocation20_spill] sm:$0xff] }
 0x84b   :  { %1556 = vmatpush1.bf16.msra.mxu0 %v4529_v59  ;;  %1638 = vmatpush1.bf16.msra.mxu1 %v4530_v60 }
 0x84c   :  { %1557 = vmatprep.subr.bf16.mxu0 %v4531_v40  ;;  %1639 = vmatprep.subr.bf16.mxu1 %v4532_v41 }
 0x84f   :  { %1558 = vmatpush1.bf16.msra.mxu0 %v4533_v47  ;;  %1640 = vmatpush1.bf16.msra.mxu1 %v4534_v51 }
 0x850   :  { %1559 = vmatprep.subr.bf16.mxu0 %v4535_v54  ;;  %1641 = vmatprep.subr.bf16.mxu1 %v4536_v0  ;;  %v1680_v54 = vld [vmem:[%s3703_s4] sm:$0xf] }
 0x851   :  { %v4638_v0 = vld [vmem:[#allocation8_spill] sm:$0xff] }
 0x852   :  { %v4639_v13 = vsub.s32 0, %v4638_v0  ;;  %v4641_v45 = vsub.s32 2, %v4638_v0  ;;  %v4642_v56 = vsub.s32 3, %v4638_v0 }
 0x853   :  { %1560 = vmatpush1.bf16.msra.mxu0 %v4616_v7  ;;  %1642 = vmatpush1.bf16.msra.mxu1 %v4617_v9 }
 0x854   :  { %1561 = vmatprep.subr.bf16.mxu0 %v4618_v55  ;;  %1643 = vmatprep.subr.bf16.mxu1 %v4619_v63  ;;  %v1693_v26 = vrot.slane %v1680_v54, %v4641_v45  ;;  %v1697_v57 = vrot.slane %v1680_v54, %v4642_v56  ;;  %v1749_v55 = vld [vmem:[#allocation4] ss:$0 sm:$0xff] }
 0x857   :  { %1562 = vmatpush1.bf16.msra.mxu0 %v4620_v62  ;;  %1644 = vmatpush1.bf16.msra.mxu1 %v4621_v58 }
 0x858   :  { %1563 = vmatprep.subr.bf16.mxu0 %v4543_v3  ;;  %1645 = vmatprep.subr.bf16.mxu1 %v4622_v4  ;;  %v4640_v3 = vsub.s32 1, %v4638_v0 }
 0x85b   :  { %1564 = vmatpush1.bf16.msra.mxu0 %v3357_v29  ;;  %1646 = vmatpush1.bf16.msra.mxu1 %v4624_v2 }
 0x85c   :  { %1565 = vmatprep.subr.bf16.mxu0 %v4547_v14  ;;  %1647 = vmatprep.subr.bf16.mxu1 %v3366_v23  ;;  %v4636_v23 = vld [vmem:[#allocation35_spill] sm:$0xff]  ;;  %v1685_v14 = vrot.slane %v1680_v54, %v4639_v13 }
 0x85f   :  { %1566 = vmatpush1.bf16.msra.mxu0 %v4548_v15  ;;  %1648 = vmatpush1.bf16.msra.mxu1 %v4549_v32 }
 0x860   :  { %1567 = vmatprep.subr.bf16.mxu0 %v4550_v39  ;;  %1649 = vmatprep.subr.bf16.mxu1 %v3378_v30  ;;  %v4637_v30 = vld [vmem:[#allocation36_spill] sm:$0xff] }
 0x863   :  { %1568 = vmatpush1.bf16.msra.mxu0 %v4551_v10  ;;  %1650 = vmatpush1.bf16.msra.mxu1 %v4625_v8  ;;  %v1689_v10 = vrot.slane %v1680_v54, %v4640_v3 }
 0x864   :  { %1569 = vmatprep.subr.bf16.mxu0 %v4626_v16  ;;  %1651 = vmatprep.subr.bf16.mxu1 %v4627_v20 }
 0x867   :  { %1570 = vmatpush1.bf16.msra.mxu0 %v4628_v22  ;;  %1652 = vmatpush1.bf16.msra.mxu1 %v4629_v19 }
 0x868   :  { %1571 = vmatprep.subr.bf16.mxu0 %v4630_v48  ;;  %1653 = vmatprep.subr.bf16.mxu1 %v4631_v12 }
 0x86b   :  { %1572 = vmatpush1.bf16.msra.mxu0 %v4632_v5  ;;  %1654 = vmatpush1.bf16.msra.mxu1 %v4633_v28 }
 0x86e   :  { %1574 = vmatmul.mubr.bf16.vlgmr.msra.gmra.mrb[40].mxu0 %v1883_v33  ;;  %1656 = vmatmul.mubr.bf16.vlgmr.msra.gmra.mrb[40].mxu1 %v1883_v33 }
 0x941   :  { %v1575_v34 = vpop.f32.mrb[40].mxu0  ;;  %v1657_v37 = vpop.f32.mrb[40].mxu1 }
 0x942   :  { %v1664_v44 = vadd.f32 %v1575_v34, %v4634_v43  ;;  %v1666_v49 = vadd.f32 %v1657_v37, %v4635_v42  ;;  %v1577_v52 = vpop.f32.mrb[41].mxu0  ;;  %v1659_v24 = vpop.f32.mrb[41].mxu1 }
 0x943   :  { %v1665_v29 = vadd.f32 %v1577_v52, %v4636_v23  ;;  %v1667_v31 = vadd.f32 %v1659_v24, %v4637_v30  ;;  %v1579_v17 = vpop.f32.mrb[42].mxu0  ;;  %v1661_v25 = vpop.f32.mrb[42].mxu1 }
 0x944   :  { %v1668_v59 = vpack.c.bf16 %v1664_v44, %v1664_v44  ;;  %v1670_v60 = vpack.c.bf16 %v1666_v49, %v1666_v49  ;;  %v1580_v40 = vpop.f32.mrb[43].mxu0  ;;  %v1662_v41 = vpop.f32.mrb[43].mxu1 }
 0x945   :  { %v1669_v47 = vpack.c.bf16 %v1665_v29, %v1665_v29  ;;  %v1671_v51 = vpack.c.bf16 %v1667_v31, %v1667_v31 }
 0x946   :  { %1884 = vtanh.bf16 %v1668_v59 }
 0x947   :  { %1886 = vtanh.bf16 %v1670_v60 }
 0x948   :  { %1888 = vtanh.bf16 %v1669_v47 }
 0x949   :  { %1890 = vtanh.bf16 %v1671_v51 }
 0x951   :  { %v1885_v15 = vpop.eup %1884 }
 0x952   :  { %v1887_v32 = vpop.eup %1886  ;;  %v1676_v39 = vunpack.c.l.bf16 %v1885_v15 }
 0x953   :  { %v1889_v36 = vpop.eup %1888  ;;  %v1678_v35 = vunpack.c.l.bf16 %v1887_v32 }
 0x954   :  { %v1891_v11 = vpop.eup %1890  ;;  %v1677_v21 = vunpack.c.l.bf16 %v1889_v36  ;;  %v1702_v27 = vmul.f32 %v1685_v14, %v1676_v39 }
 0x955   :  { %v1679_v53 = vunpack.c.l.bf16 %v1891_v11  ;;  %v1704_v38 = vmul.f32 %v1693_v26, %v1678_v35 }
 0x956   :  { %v1703_v46 = vmul.f32 %v1689_v10, %v1677_v21 }
 0x957   :  { %v1705_v50 = vmul.f32 %v1697_v57, %v1679_v53 }
 0x958   :  { %v1706_v18 = vadd.f32 %v1703_v46, %v1702_v27 }
 0x95a   :  { %v1707_v7 = vadd.f32 %v1706_v18, %v1704_v38 }
 0x95c   :  { %v1708_v9 = vadd.f32 %v1707_v7, %v1705_v50 }
 0x95e   :  { %1709 = vadd.xlane.f32.xlu0 %v1708_v9 }
 0x9eb   :  { %v1710_v63 = vpop.xlane.xlu0 %1709 }
 0x9ec   :  { %v1718_v62 = vadd.f32 %v1749_v55, %v1710_v63 }
 0x9ee   :  { %1720 = vst.msk [vmem:[%s3705_s6] sm:$0xff] %vm1719_vm3, %v1718_v62 }
 0x9ef   :  { %1725 = vsyncmov [#allocation3] }
 0x9f2   :  { %s1726_s30 = vpop.sfrf %1725 }
 0x9f3   :  { %p1750_p0 = scmp.ne.s32.totalorder %s1726_s30, 0 }
 0x9f5   :  { %1730 = shalt.err (%p1750_p0)  }

</bundles_post_ra>
